<compile_context>
chip_gen: v7x
topology: tpu7x:2x2x1
jax: 0.10.0
libtpu: 0.0.40
codegen_flags: <defaults>
</compile_context>

<pallas_src>
import functools

import jax
import jax.numpy as jnp
from jax.experimental import pallas as pl
from jax.experimental.pallas import tpu as pltpu


# ----------------------------------------------------------------------------
# Kernel 1: fused  ReLU( BN_train( x @ w ) ), tiled over output features
# (the Linear bias is mathematically cancelled by train-mode BN -> no bias op)
# ----------------------------------------------------------------------------
def _matmul_bn_relu_kernel(x_ref, w_ref, g_ref, b_ref, o_ref, *, eps):
    acc = jnp.dot(x_ref[...], w_ref[...], preferred_element_type=jnp.float32)
    mean = jnp.mean(acc, axis=0, keepdims=True)
    var = jnp.mean((acc - mean) ** 2, axis=0, keepdims=True)   # biased (train BN)
    y = (acc - mean) * (g_ref[...] * jax.lax.rsqrt(var + eps)) + b_ref[...]
    o_ref[...] = jnp.maximum(y, 0.0).astype(o_ref.dtype)


def linear_bn_relu(x_bf16, w_bf16, gamma, beta, *, tn, eps=1e-5):
    """bf16( ReLU(BN_train(x @ w)) ); N tiled, full batch per tile (exact stats)."""
    M, K = x_bf16.shape
    N = w_bf16.shape[1]
    assert N % tn == 0 and (tn == N or tn % 128 == 0), (N, tn)
    return pl.pallas_call(
        functools.partial(_matmul_bn_relu_kernel, eps=eps),
        out_shape=jax.ShapeDtypeStruct((M, N), jnp.bfloat16),
        grid=(N // tn,),
        in_specs=[
            pl.BlockSpec((M, K), lambda j: (0, 0)),
            pl.BlockSpec((K, tn), lambda j: (0, j)),
            pl.BlockSpec((1, tn), lambda j: (0, j)),
            pl.BlockSpec((1, tn), lambda j: (0, j)),
        ],
        out_specs=pl.BlockSpec((M, tn), lambda j: (0, j)),
        compiler_params=pltpu.CompilerParams(
            dimension_semantics=("parallel",)),   # independent N tiles (v7x 2-TC)
    )(x_bf16, w_bf16,
      gamma.reshape(1, N).astype(jnp.float32),
      beta.reshape(1, N).astype(jnp.float32))


# ----------------------------------------------------------------------------
# Kernel 2: bf16 matmul, f32 accumulation, M-tiled (ConvTranspose "cols")
# ----------------------------------------------------------------------------
def _matmul_kernel(x_ref, w_ref, o_ref):
    o_ref[...] = jnp.dot(x_ref[...], w_ref[...],
                         preferred_element_type=jnp.float32).astype(o_ref.dtype)


def matmul_bf16(x_bf16, w_bf16, *, tm=512):
    """x @ w (bf16 in/out, f32 acc), tiled over rows so VMEM is bounded and
    the pipeline double-buffers / shards across TensorCores."""
    M, K = x_bf16.shape
    N = w_bf16.shape[1]
    tm = min(tm, M)
    return pl.pallas_call(
        _matmul_kernel,
        out_shape=jax.ShapeDtypeStruct((M, N), jnp.bfloat16),
        grid=(pl.cdiv(M, tm),),
        in_specs=[pl.BlockSpec((tm, K), lambda i: (i, 0)),
                  pl.BlockSpec((K, N), lambda i: (0, 0))],
        out_specs=pl.BlockSpec((tm, N), lambda i: (i, 0)),
        compiler_params=pltpu.CompilerParams(
            dimension_semantics=("parallel",)),
    )(x_bf16, w_bf16)


# ----------------------------------------------------------------------------
# Kernel 3: ReLU( BN2d_train(x) ) on a packed (rows, 128) layout.
# Each row holds TWO spatial positions of 64 channels (lane c and lane 64+c
# are the same channel), so loads/stores are full 128-lane vregs.
# ----------------------------------------------------------------------------
def _bn2d_relu_packed_kernel(x_ref, g2_ref, b2_ref, o_ref, *, eps):
    x = x_ref[...].astype(jnp.float32)                             # (M, 128)
    s1 = jnp.mean(x, axis=0, keepdims=True)                        # per-lane mean
    mean = 0.5 * (s1 + pltpu.roll(s1, shift=64, axis=1))           # fold packed halves
    d = x - mean
    s2 = jnp.mean(d * d, axis=0, keepdims=True)
    var = 0.5 * (s2 + pltpu.roll(s2, shift=64, axis=1))
    y = d * (g2_ref[...] * jax.lax.rsqrt(var + eps)) + b2_ref[...]
    o_ref[...] = jnp.maximum(y, 0.0).astype(o_ref.dtype)


def bn2d_relu_packed(x2d_bf16, gamma, beta, *, eps=1e-5):
    M, L = x2d_bf16.shape
    assert L == 128 and gamma.shape == (64,)
    g2 = jnp.concatenate([gamma, gamma]).reshape(1, L).astype(jnp.float32)
    b2 = jnp.concatenate([beta, beta]).reshape(1, L).astype(jnp.float32)
    return pl.pallas_call(
        functools.partial(_bn2d_relu_packed_kernel, eps=eps),
        out_shape=jax.ShapeDtypeStruct((M, L), jnp.bfloat16),
        grid=(1,),
        in_specs=[pl.BlockSpec((M, L), lambda i: (0, 0)),
                  pl.BlockSpec((1, L), lambda i: (0, 0)),
                  pl.BlockSpec((1, L), lambda i: (0, 0))],
        out_specs=pl.BlockSpec((M, L), lambda i: (0, 0)),
        compiler_params=pltpu.CompilerParams(dimension_semantics=("arbitrary",)),
    )(x2d_bf16, g2, b2)


# ----------------------------------------------------------------------------
# Kernel 4: tanh(x + bias) — spatial folded into lanes (lane-dense output)
# ----------------------------------------------------------------------------
def _bias_tanh_kernel(x_ref, b_ref, o_ref):
    o_ref[...] = jnp.tanh(x_ref[...] + b_ref[...]).astype(o_ref.dtype)


def bias_tanh(x2d, bias_scalar):
    M, N = x2d.shape
    b = jnp.broadcast_to(bias_scalar.reshape(1, 1).astype(jnp.float32), (1, N))
    return pl.pallas_call(
        _bias_tanh_kernel,
        out_shape=jax.ShapeDtypeStruct((M, N), jnp.float32),
        grid=(1,),
        in_specs=[pl.BlockSpec((M, N), lambda i: (0, 0)),
                  pl.BlockSpec((1, N), lambda i: (0, 0))],
        out_specs=pl.BlockSpec((M, N), lambda i: (0, 0)),
        compiler_params=pltpu.CompilerParams(dimension_semantics=("arbitrary",)),
    )(x2d.astype(jnp.float32), b)


# ----------------------------------------------------------------------------
# col2im for ConvTranspose2d(k=4, s=2, p=1): oh = 2*ih + kh - 1.
# For a fixed output-row parity ph = oh % 2 only two kh taps contribute, each
# with a fixed input-row shift; same along W.  parity -> ((kh, shift), ...)
# ----------------------------------------------------------------------------
_PARITY_TAPS = {0: ((1, 0), (3, 1)), 1: ((2, 0), (0, -1))}


def _shift(x, axis, s):
    """result[i] = x[i - s] along `axis`, zero padded (s in {-1, 0, 1})."""
    if s == 0:
        return x
    n = x.shape[axis]
    pad = [(0, 0)] * x.ndim
    pad[axis] = (s, 0) if s > 0 else (0, -s)
    lo = 0 if s > 0 else -s
    idx = [slice(None)] * x.ndim
    idx[axis] = slice(lo, lo + n)
    return jnp.pad(x, pad)[tuple(idx)]


def col2im_s2k4p1(cols, out_dtype):
    """Overlap-add, 4-parity-group form (no stride-2 scatter).

    cols: (B, H, W, 4, 4, Cout) tap values -> (B, 2H, 2W, Cout).
    Each output-parity plane is a plain sum of 4 shifted tap planes; a single
    reshape interleaves the planes into the full-resolution output.
    """
    B, H, W, _, _, C = cols.shape
    colsf = cols.astype(jnp.float32)
    ph_planes = []
    for ph in (0, 1):
        pw_planes = []
        for pw in (0, 1):
            acc = jnp.zeros((B, H, W, C), jnp.float32)
            for kh, sh in _PARITY_TAPS[ph]:
                for kw, sw in _PARITY_TAPS[pw]:
                    acc = acc + _shift(_shift(colsf[:, :, :, kh, kw, :], 1, sh), 2, sw)
            pw_planes.append(acc)
        ph_planes.append(jnp.stack(pw_planes, axis=3))   # (B, H, W, 2, C)
    out = jnp.stack(ph_planes, axis=2)                    # (B, H, 2, W, 2, C)
    return out.reshape(B, 2 * H, 2 * W, C).astype(out_dtype)


# ----------------------------------------------------------------------------
# Parameters (deterministic synthetic init) and forward
# ----------------------------------------------------------------------------
def _chw_to_hwc_cols(a, c=128, hw=49):
    """Permute the last axis from index (ch*hw + s) to (s*c + ch) order."""
    return a.reshape(*a.shape[:-1], c, hw).swapaxes(-1, -2).reshape(*a.shape[:-1], c * hw)


def init_params(key, z_dim=128, cc_dim=1, dc_dim=10):
    in_dim = z_dim + cc_dim + dc_dim
    ks = jax.random.split(key, 4)

    def rnd(k, shape):
        return 0.02 * jax.random.normal(k, shape, jnp.float32)

    fc2_w = _chw_to_hwc_cols(rnd(ks[1], (1024, 128 * 7 * 7)))        # HWC col order
    dc1_w = rnd(ks[2], (128, 64, 4, 4))                              # (Cin, Cout, kh, kw)
    dc2_w = rnd(ks[3], (64, 1, 4, 4))
    dc1_w_mat = dc1_w.transpose(0, 2, 3, 1).reshape(128, 16 * 64)    # (Cin, (kh,kw,Cout))
    dc2_w_mat = jnp.pad(dc2_w.transpose(0, 2, 3, 1).reshape(64, 16),
                        ((0, 0), (0, 112)))                          # lane-pad 16 -> 128

    return {
        # matmul weights live in bf16 (MXU-native); BN affine params stay f32.
        "fc1_w": rnd(ks[0], (in_dim, 1024)).astype(jnp.bfloat16),
        "bn1_g": jnp.ones((1024,), jnp.float32),
        "bn1_b": jnp.zeros((1024,), jnp.float32),
        "fc2_w": fc2_w.astype(jnp.bfloat16),
        "bn2_g": _chw_to_hwc_cols(jnp.ones((6272,), jnp.float32)),
        "bn2_b": _chw_to_hwc_cols(jnp.zeros((6272,), jnp.float32)),
        "dc1_w_mat": dc1_w_mat.astype(jnp.bfloat16),
        "bn3_g": jnp.ones((64,), jnp.float32),
        "bn3_b": jnp.zeros((64,), jnp.float32),
        "dc2_w_mat": dc2_w_mat.astype(jnp.bfloat16),
        "dc2_b": jnp.zeros((1,), jnp.float32),
        # fc1_b / fc2_b / dc1_b omitted: a per-feature bias feeding train-mode
        # BatchNorm is exactly cancelled by the mean subtraction.
    }


def generator_forward(params, z):
    B = z.shape[0]
    zb = z.astype(jnp.bfloat16)

    # fc block: Linear -> BN1d(train) -> ReLU fused; bf16 activations out.
    h = linear_bn_relu(zb, params["fc1_w"], params["bn1_g"], params["bn1_b"], tn=512)
    h = linear_bn_relu(h, params["fc2_w"], params["bn2_g"], params["bn2_b"], tn=896)
    # fc2 columns are pre-permuted to HWC, so this reshape IS the reference
    # module's view(-1, 128, 7, 7) followed by the NCHW->NHWC transpose.
    x = h.reshape(B * 7 * 7, 128)

    # dc1: ConvT(128->64, 4, 2, 1) -> BN2d -> ReLU
    cols1 = matmul_bf16(x, params["dc1_w_mat"])                           # (B*49, 1024)
    y = col2im_s2k4p1(cols1.reshape(B, 7, 7, 4, 4, 64), jnp.bfloat16)     # (B, 14, 14, 64)
    y = bn2d_relu_packed(y.reshape(B * 14 * 7, 128),                      # 2 spatial pos/row
                         params["bn3_g"], params["bn3_b"])                # (B*98, 128)

    # dc2: ConvT(64->1, 4, 2, 1) -> Tanh (weight lane-padded to 128 columns)
    cols2 = matmul_bf16(y.reshape(B * 14 * 14, 64), params["dc2_w_mat"])  # (B*196, 128)
    taps2 = cols2.reshape(B, 14, 14, 128)[..., :16].reshape(B, 14, 14, 4, 4, 1)
    o = col2im_s2k4p1(taps2, jnp.float32)                                 # (B, 28, 28, 1)
    o = bias_tanh(o.reshape(B, 28 * 28), params["dc2_b"])                 # (B, 784)

    return o.reshape(B, 1, 28, 28)                                        # NCHW (C=1)
# TODO(synk): BatchNorm running-statistics buffer updates (module state
# mutation) are not modeled; forward matches a train()-mode nn.Module.


if __name__ == "__main__":
    key = jax.random.PRNGKey(0)
    pkey, zkey = jax.random.split(key)
    params = init_params(pkey)

    B = 2
    z = jax.random.normal(zkey, (B, 128 + 1 + 10), jnp.float32)

    fwd = jax.jit(generator_forward)
    out = jax.block_until_ready(fwd(params, z))

    assert out.shape == (B, 1, 28, 28), out.shape
    assert out.dtype == jnp.float32
    assert bool(jnp.all(jnp.isfinite(out)))
    assert bool(jnp.all(jnp.abs(out) <= 1.0 + 1e-6))  # tanh range
    print("KERNEL_OK")
</pallas_src>

<mosaic_0001>
module attributes {stable_mosaic.version = 11 : i64} {
  func.func @_matmul_bn_relu_kernel(%arg0: i32, %arg1: memref<2x139xbf16, #tpu.memory_space<vmem>>, %arg2: memref<139x512xbf16, #tpu.memory_space<vmem>>, %arg3: memref<1x512xf32, #tpu.memory_space<vmem>>, %arg4: memref<1x512xf32, #tpu.memory_space<vmem>>, %arg5: memref<2x512xbf16, #tpu.memory_space<vmem>>) attributes {dimension_semantics = [#tpu.dimension_semantics<parallel>], iteration_bounds = array<i64: 2>, scalar_prefetch = 0 : i64, scratch_operands = 0 : i64, tpu.core_type = #tpu.core_type<tc>, window_params = [{pipeline_mode = #tpu.pipeline_mode<synchronous>, transform_indices = @transform_0, window_bounds = array<i64: 2, 139>}, {transform_indices = @transform_1, window_bounds = array<i64: 139, 512>}, {transform_indices = @transform_2, window_bounds = array<i64: 1, 512>}, {transform_indices = @transform_3, window_bounds = array<i64: 1, 512>}, {transform_indices = @transform_4, window_bounds = array<i64: 2, 512>}]} {
    %c0 = arith.constant 0 : index
    %c0_0 = arith.constant 0 : index
    %0 = vector.load %arg1[%c0, %c0_0] : memref<2x139xbf16, #tpu.memory_space<vmem>>, vector<2x139xbf16>
    %c0_1 = arith.constant 0 : index
    %c0_2 = arith.constant 0 : index
    %1 = vector.load %arg2[%c0_1, %c0_2] : memref<139x512xbf16, #tpu.memory_space<vmem>>, vector<139x512xbf16>
    %cst = arith.constant dense<0.000000e+00> : vector<2x512xf32>
    %2 = tpu.matmul %0, %1, %cst {dimension_numbers = #tpu.dot_dimension_numbers<[1], [0], [0], [1], [0, 0, 1, 1], [], []>} : vector<2x139xbf16>, vector<139x512xbf16>, vector<2x512xf32> -> vector<2x512xf32>
    %cst_3 = arith.constant dense<0.000000e+00> : vector<512xf32>
    %3 = vector.multi_reduction <add>, %2, %cst_3 [0] : vector<2x512xf32> to vector<512xf32>
    %4 = vector.shape_cast %3 : vector<512xf32> to vector<1x512xf32>
    %cst_4 = arith.constant 2.000000e+00 : f32
    %5 = vector.broadcast %cst_4 : f32 to vector<1x512xf32>
    %6 = arith.divf %4, %5 : vector<1x512xf32>
    %7 = vector.broadcast %6 : vector<1x512xf32> to vector<2x512xf32>
    %8 = arith.subf %2, %7 : vector<2x512xf32>
    %9 = arith.mulf %8, %8 : vector<2x512xf32>
    %cst_5 = arith.constant dense<0.000000e+00> : vector<512xf32>
    %10 = vector.multi_reduction <add>, %9, %cst_5 [0] : vector<2x512xf32> to vector<512xf32>
    %11 = vector.shape_cast %10 : vector<512xf32> to vector<1x512xf32>
    %cst_6 = arith.constant 2.000000e+00 : f32
    %12 = vector.broadcast %cst_6 : f32 to vector<1x512xf32>
    %13 = arith.divf %11, %12 : vector<1x512xf32>
    %14 = vector.broadcast %6 : vector<1x512xf32> to vector<2x512xf32>
    %15 = arith.subf %2, %14 : vector<2x512xf32>
    %c0_7 = arith.constant 0 : index
    %c0_8 = arith.constant 0 : index
    %16 = vector.load %arg3[%c0_7, %c0_8] : memref<1x512xf32, #tpu.memory_space<vmem>>, vector<1x512xf32>
    %cst_9 = arith.constant 9.99999974E-6 : f32
    %17 = vector.broadcast %cst_9 : f32 to vector<1x512xf32>
    %18 = arith.addf %13, %17 : vector<1x512xf32>
    %19 = math.rsqrt %18 : vector<1x512xf32>
    %20 = arith.mulf %16, %19 : vector<1x512xf32>
    %21 = vector.broadcast %20 : vector<1x512xf32> to vector<2x512xf32>
    %22 = arith.mulf %15, %21 : vector<2x512xf32>
    %c0_10 = arith.constant 0 : index
    %c0_11 = arith.constant 0 : index
    %23 = vector.load %arg4[%c0_10, %c0_11] : memref<1x512xf32, #tpu.memory_space<vmem>>, vector<1x512xf32>
    %24 = vector.broadcast %23 : vector<1x512xf32> to vector<2x512xf32>
    %25 = arith.addf %22, %24 : vector<2x512xf32>
    %cst_12 = arith.constant 0.000000e+00 : f32
    %26 = vector.broadcast %cst_12 : f32 to vector<2x512xf32>
    %27 = arith.maximumf %25, %26 : vector<2x512xf32>
    %28 = arith.truncf %27 : vector<2x512xf32> to vector<2x512xbf16>
    %c0_13 = arith.constant 0 : index
    %c0_14 = arith.constant 0 : index
    %29 = vector.load %arg5[%c0_13, %c0_14] : memref<2x512xbf16, #tpu.memory_space<vmem>>, vector<2x512xbf16>
    tpu.vector_store %arg5[%c0_13, %c0_14], %28 {strides = array<i32>} : memref<2x512xbf16, #tpu.memory_space<vmem>>, vector<2x512xbf16>,
    return
  }
  func.func @transform_0(%arg0: i32) -> (i32, i32) {
    %c0_i32 = arith.constant 0 : i32
    %c0_i32_0 = arith.constant 0 : i32
    %c0_i32_1 = arith.constant 0 : i32
    return %c0_i32, %c0_i32_0 : i32, i32
  }
  func.func @transform_1(%arg0: i32) -> (i32, i32) {
    %c0_i32 = arith.constant 0 : i32
    %c0_i32_0 = arith.constant 0 : i32
    return %c0_i32, %arg0 : i32, i32
  }
  func.func @transform_2(%arg0: i32) -> (i32, i32) {
    %c0_i32 = arith.constant 0 : i32
    %c0_i32_0 = arith.constant 0 : i32
    return %c0_i32, %arg0 : i32, i32
  }
  func.func @transform_3(%arg0: i32) -> (i32, i32) {
    %c0_i32 = arith.constant 0 : i32
    %c0_i32_0 = arith.constant 0 : i32
    return %c0_i32, %arg0 : i32, i32
  }
  func.func @transform_4(%arg0: i32) -> (i32, i32) {
    %c0_i32 = arith.constant 0 : i32
    %c0_i32_0 = arith.constant 0 : i32
    return %c0_i32, %arg0 : i32, i32
  }
}

module attributes {stable_mosaic.version = 11 : i64} {
  func.func @_matmul_bn_relu_kernel(%arg0: i32, %arg1: memref<2x1024xbf16, #tpu.memory_space<vmem>>, %arg2: memref<1024x896xbf16, #tpu.memory_space<vmem>>, %arg3: memref<1x896xf32, #tpu.memory_space<vmem>>, %arg4: memref<1x896xf32, #tpu.memory_space<vmem>>, %arg5: memref<2x896xbf16, #tpu.memory_space<vmem>>) attributes {dimension_semantics = [#tpu.dimension_semantics<parallel>], iteration_bounds = array<i64: 7>, scalar_prefetch = 0 : i64, scratch_operands = 0 : i64, tpu.core_type = #tpu.core_type<tc>, window_params = [{pipeline_mode = #tpu.pipeline_mode<synchronous>, transform_indices = @transform_0, window_bounds = array<i64: 2, 1024>}, {transform_indices = @transform_1, window_bounds = array<i64: 1024, 896>}, {transform_indices = @transform_2, window_bounds = array<i64: 1, 896>}, {transform_indices = @transform_3, window_bounds = array<i64: 1, 896>}, {transform_indices = @transform_4, window_bounds = array<i64: 2, 896>}]} {
    %c0 = arith.constant 0 : index
    %c0_0 = arith.constant 0 : index
    %0 = vector.load %arg1[%c0, %c0_0] : memref<2x1024xbf16, #tpu.memory_space<vmem>>, vector<2x1024xbf16>
    %c0_1 = arith.constant 0 : index
    %c0_2 = arith.constant 0 : index
    %1 = vector.load %arg2[%c0_1, %c0_2] : memref<1024x896xbf16, #tpu.memory_space<vmem>>, vector<1024x896xbf16>
    %cst = arith.constant dense<0.000000e+00> : vector<2x896xf32>
    %2 = tpu.matmul %0, %1, %cst {dimension_numbers = #tpu.dot_dimension_numbers<[1], [0], [0], [1], [0, 0, 1, 1], [], []>} : vector<2x1024xbf16>, vector<1024x896xbf16>, vector<2x896xf32> -> vector<2x896xf32>
    %cst_3 = arith.constant dense<0.000000e+00> : vector<896xf32>
    %3 = vector.multi_reduction <add>, %2, %cst_3 [0] : vector<2x896xf32> to vector<896xf32>
    %4 = vector.shape_cast %3 : vector<896xf32> to vector<1x896xf32>
    %cst_4 = arith.constant 2.000000e+00 : f32
    %5 = vector.broadcast %cst_4 : f32 to vector<1x896xf32>
    %6 = arith.divf %4, %5 : vector<1x896xf32>
    %7 = vector.broadcast %6 : vector<1x896xf32> to vector<2x896xf32>
    %8 = arith.subf %2, %7 : vector<2x896xf32>
    %9 = arith.mulf %8, %8 : vector<2x896xf32>
    %cst_5 = arith.constant dense<0.000000e+00> : vector<896xf32>
    %10 = vector.multi_reduction <add>, %9, %cst_5 [0] : vector<2x896xf32> to vector<896xf32>
    %11 = vector.shape_cast %10 : vector<896xf32> to vector<1x896xf32>
    %cst_6 = arith.constant 2.000000e+00 : f32
    %12 = vector.broadcast %cst_6 : f32 to vector<1x896xf32>
    %13 = arith.divf %11, %12 : vector<1x896xf32>
    %14 = vector.broadcast %6 : vector<1x896xf32> to vector<2x896xf32>
    %15 = arith.subf %2, %14 : vector<2x896xf32>
    %c0_7 = arith.constant 0 : index
    %c0_8 = arith.constant 0 : index
    %16 = vector.load %arg3[%c0_7, %c0_8] : memref<1x896xf32, #tpu.memory_space<vmem>>, vector<1x896xf32>
    %cst_9 = arith.constant 9.99999974E-6 : f32
    %17 = vector.broadcast %cst_9 : f32 to vector<1x896xf32>
    %18 = arith.addf %13, %17 : vector<1x896xf32>
    %19 = math.rsqrt %18 : vector<1x896xf32>
    %20 = arith.mulf %16, %19 : vector<1x896xf32>
    %21 = vector.broadcast %20 : vector<1x896xf32> to vector<2x896xf32>
    %22 = arith.mulf %15, %21 : vector<2x896xf32>
    %c0_10 = arith.constant 0 : index
    %c0_11 = arith.constant 0 : index
    %23 = vector.load %arg4[%c0_10, %c0_11] : memref<1x896xf32, #tpu.memory_space<vmem>>, vector<1x896xf32>
    %24 = vector.broadcast %23 : vector<1x896xf32> to vector<2x896xf32>
    %25 = arith.addf %22, %24 : vector<2x896xf32>
    %cst_12 = arith.constant 0.000000e+00 : f32
    %26 = vector.broadcast %cst_12 : f32 to vector<2x896xf32>
    %27 = arith.maximumf %25, %26 : vector<2x896xf32>
    %28 = arith.truncf %27 : vector<2x896xf32> to vector<2x896xbf16>
    %c0_13 = arith.constant 0 : index
    %c0_14 = arith.constant 0 : index
    %29 = vector.load %arg5[%c0_13, %c0_14] : memref<2x896xbf16, #tpu.memory_space<vmem>>, vector<2x896xbf16>
    tpu.vector_store %arg5[%c0_13, %c0_14], %28 {strides = array<i32>} : memref<2x896xbf16, #tpu.memory_space<vmem>>, vector<2x896xbf16>,
    return
  }
  func.func @transform_0(%arg0: i32) -> (i32, i32) {
    %c0_i32 = arith.constant 0 : i32
    %c0_i32_0 = arith.constant 0 : i32
    %c0_i32_1 = arith.constant 0 : i32
    return %c0_i32, %c0_i32_0 : i32, i32
  }
  func.func @transform_1(%arg0: i32) -> (i32, i32) {
    %c0_i32 = arith.constant 0 : i32
    %c0_i32_0 = arith.constant 0 : i32
    return %c0_i32, %arg0 : i32, i32
  }
  func.func @transform_2(%arg0: i32) -> (i32, i32) {
    %c0_i32 = arith.constant 0 : i32
    %c0_i32_0 = arith.constant 0 : i32
    return %c0_i32, %arg0 : i32, i32
  }
  func.func @transform_3(%arg0: i32) -> (i32, i32) {
    %c0_i32 = arith.constant 0 : i32
    %c0_i32_0 = arith.constant 0 : i32
    return %c0_i32, %arg0 : i32, i32
  }
  func.func @transform_4(%arg0: i32) -> (i32, i32) {
    %c0_i32 = arith.constant 0 : i32
    %c0_i32_0 = arith.constant 0 : i32
    return %c0_i32, %arg0 : i32, i32
  }
}

module attributes {stable_mosaic.version = 11 : i64} {
  func.func @_matmul_kernel(%arg0: i32, %arg1: memref<98x128xbf16, #tpu.memory_space<vmem>>, %arg2: memref<128x1024xbf16, #tpu.memory_space<vmem>>, %arg3: memref<98x1024xbf16, #tpu.memory_space<vmem>>) attributes {dimension_semantics = [#tpu.dimension_semantics<parallel>], iteration_bounds = array<i64: 1>, scalar_prefetch = 0 : i64, scratch_operands = 0 : i64, tpu.core_type = #tpu.core_type<tc>, window_params = [{transform_indices = @transform_0, window_bounds = array<i64: 98, 128>}, {pipeline_mode = #tpu.pipeline_mode<synchronous>, transform_indices = @transform_1, window_bounds = array<i64: 128, 1024>}, {transform_indices = @transform_2, window_bounds = array<i64: 98, 1024>}]} {
    %c0 = arith.constant 0 : index
    %c0_0 = arith.constant 0 : index
    %0 = vector.load %arg1[%c0, %c0_0] : memref<98x128xbf16, #tpu.memory_space<vmem>>, vector<98x128xbf16>
    %c0_1 = arith.constant 0 : index
    %c0_2 = arith.constant 0 : index
    %1 = vector.load %arg2[%c0_1, %c0_2] : memref<128x1024xbf16, #tpu.memory_space<vmem>>, vector<128x1024xbf16>
    %cst = arith.constant dense<0.000000e+00> : vector<98x1024xf32>
    %2 = tpu.matmul %0, %1, %cst {dimension_numbers = #tpu.dot_dimension_numbers<[1], [0], [0], [1], [0, 0, 1, 1], [], []>} : vector<98x128xbf16>, vector<128x1024xbf16>, vector<98x1024xf32> -> vector<98x1024xf32>
    %3 = arith.truncf %2 : vector<98x1024xf32> to vector<98x1024xbf16>
    %c0_3 = arith.constant 0 : index
    %c0_4 = arith.constant 0 : index
    %4 = vector.load %arg3[%c0_3, %c0_4] : memref<98x1024xbf16, #tpu.memory_space<vmem>>, vector<98x1024xbf16>
    tpu.vector_store %arg3[%c0_3, %c0_4], %3 {strides = array<i32>} : memref<98x1024xbf16, #tpu.memory_space<vmem>>, vector<98x1024xbf16>,
    return
  }
  func.func @transform_0(%arg0: i32) -> (i32, i32) {
    %c0_i32 = arith.constant 0 : i32
    %c0_i32_0 = arith.constant 0 : i32
    return %arg0, %c0_i32 : i32, i32
  }
  func.func @transform_1(%arg0: i32) -> (i32, i32) {
    %c0_i32 = arith.constant 0 : i32
    %c0_i32_0 = arith.constant 0 : i32
    %c0_i32_1 = arith.constant 0 : i32
    return %c0_i32, %c0_i32_0 : i32, i32
  }
  func.func @transform_2(%arg0: i32) -> (i32, i32) {
    %c0_i32 = arith.constant 0 : i32
    %c0_i32_0 = arith.constant 0 : i32
    return %arg0, %c0_i32 : i32, i32
  }
}

module attributes {stable_mosaic.version = 11 : i64} {
  func.func @_bn2d_relu_packed_kernel(%arg0: i32, %arg1: memref<196x128xbf16, #tpu.memory_space<vmem>>, %arg2: memref<1x128xf32, #tpu.memory_space<vmem>>, %arg3: memref<1x128xf32, #tpu.memory_space<vmem>>, %arg4: memref<196x128xbf16, #tpu.memory_space<vmem>>) attributes {dimension_semantics = [#tpu.dimension_semantics<arbitrary>], iteration_bounds = array<i64: 1>, scalar_prefetch = 0 : i64, scratch_operands = 0 : i64, tpu.core_type = #tpu.core_type<tc>, window_params = [{pipeline_mode = #tpu.pipeline_mode<synchronous>, transform_indices = @transform_0, window_bounds = array<i64: 196, 128>}, {pipeline_mode = #tpu.pipeline_mode<synchronous>, transform_indices = @transform_1, window_bounds = array<i64: 1, 128>}, {pipeline_mode = #tpu.pipeline_mode<synchronous>, transform_indices = @transform_2, window_bounds = array<i64: 1, 128>}, {pipeline_mode = #tpu.pipeline_mode<synchronous>, transform_indices = @transform_3, window_bounds = array<i64: 196, 128>}]} {
    %c0 = arith.constant 0 : index
    %c0_0 = arith.constant 0 : index
    %0 = vector.load %arg1[%c0, %c0_0] : memref<196x128xbf16, #tpu.memory_space<vmem>>, vector<196x128xbf16>
    %1 = arith.extf %0 : vector<196x128xbf16> to vector<196x128xf32>
    %cst = arith.constant dense<0.000000e+00> : vector<128xf32>
    %2 = vector.multi_reduction <add>, %1, %cst [0] : vector<196x128xf32> to vector<128xf32>
    %3 = vector.shape_cast %2 : vector<128xf32> to vector<1x128xf32>
    %cst_1 = arith.constant 1.960000e+02 : f32
    %4 = vector.broadcast %cst_1 : f32 to vector<1x128xf32>
    %5 = arith.divf %3, %4 : vector<1x128xf32>
    %c64_i32 = arith.constant 64 : i32
    %6 = tpu.dynamic_rotate %5 by %c64_i32 dim 1 : vector<1x128xf32>, i32 -> vector<1x128xf32>
    %7 = arith.addf %5, %6 : vector<1x128xf32>
    %cst_2 = arith.constant 5.000000e-01 : f32
    %8 = vector.broadcast %cst_2 : f32 to vector<1x128xf32>
    %9 = arith.mulf %8, %7 : vector<1x128xf32>
    %10 = vector.broadcast %9 : vector<1x128xf32> to vector<196x128xf32>
    %11 = arith.subf %1, %10 : vector<196x128xf32>
    %12 = arith.mulf %11, %11 : vector<196x128xf32>
    %cst_3 = arith.constant dense<0.000000e+00> : vector<128xf32>
    %13 = vector.multi_reduction <add>, %12, %cst_3 [0] : vector<196x128xf32> to vector<128xf32>
    %14 = vector.shape_cast %13 : vector<128xf32> to vector<1x128xf32>
    %cst_4 = arith.constant 1.960000e+02 : f32
    %15 = vector.broadcast %cst_4 : f32 to vector<1x128xf32>
    %16 = arith.divf %14, %15 : vector<1x128xf32>
    %c64_i32_5 = arith.constant 64 : i32
    %17 = tpu.dynamic_rotate %16 by %c64_i32_5 dim 1 : vector<1x128xf32>, i32 -> vector<1x128xf32>
    %18 = arith.addf %16, %17 : vector<1x128xf32>
    %cst_6 = arith.constant 5.000000e-01 : f32
    %19 = vector.broadcast %cst_6 : f32 to vector<1x128xf32>
    %20 = arith.mulf %19, %18 : vector<1x128xf32>
    %c0_7 = arith.constant 0 : index
    %c0_8 = arith.constant 0 : index
    %21 = vector.load %arg2[%c0_7, %c0_8] : memref<1x128xf32, #tpu.memory_space<vmem>>, vector<1x128xf32>
    %cst_9 = arith.constant 9.99999974E-6 : f32
    %22 = vector.broadcast %cst_9 : f32 to vector<1x128xf32>
    %23 = arith.addf %20, %22 : vector<1x128xf32>
    %24 = math.rsqrt %23 : vector<1x128xf32>
    %25 = arith.mulf %21, %24 : vector<1x128xf32>
    %26 = vector.broadcast %25 : vector<1x128xf32> to vector<196x128xf32>
    %27 = arith.mulf %11, %26 : vector<196x128xf32>
    %c0_10 = arith.constant 0 : index
    %c0_11 = arith.constant 0 : index
    %28 = vector.load %arg3[%c0_10, %c0_11] : memref<1x128xf32, #tpu.memory_space<vmem>>, vector<1x128xf32>
    %29 = vector.broadcast %28 : vector<1x128xf32> to vector<196x128xf32>
    %30 = arith.addf %27, %29 : vector<196x128xf32>
    %cst_12 = arith.constant 0.000000e+00 : f32
    %31 = vector.broadcast %cst_12 : f32 to vector<196x128xf32>
    %32 = arith.maximumf %30, %31 : vector<196x128xf32>
    %33 = arith.truncf %32 : vector<196x128xf32> to vector<196x128xbf16>
    %c0_13 = arith.constant 0 : index
    %c0_14 = arith.constant 0 : index
    %34 = vector.load %arg4[%c0_13, %c0_14] : memref<196x128xbf16, #tpu.memory_space<vmem>>, vector<196x128xbf16>
    tpu.vector_store %arg4[%c0_13, %c0_14], %33 {strides = array<i32>} : memref<196x128xbf16, #tpu.memory_space<vmem>>, vector<196x128xbf16>,
    return
  }
  func.func @transform_0(%arg0: i32) -> (i32, i32) {
    %c0_i32 = arith.constant 0 : i32
    %c0_i32_0 = arith.constant 0 : i32
    %c0_i32_1 = arith.constant 0 : i32
    return %c0_i32, %c0_i32_0 : i32, i32
  }
  func.func @transform_1(%arg0: i32) -> (i32, i32) {
    %c0_i32 = arith.constant 0 : i32
    %c0_i32_0 = arith.constant 0 : i32
    %c0_i32_1 = arith.constant 0 : i32
    return %c0_i32, %c0_i32_0 : i32, i32
  }
  func.func @transform_2(%arg0: i32) -> (i32, i32) {
    %c0_i32 = arith.constant 0 : i32
    %c0_i32_0 = arith.constant 0 : i32
    %c0_i32_1 = arith.constant 0 : i32
    return %c0_i32, %c0_i32_0 : i32, i32
  }
  func.func @transform_3(%arg0: i32) -> (i32, i32) {
    %c0_i32 = arith.constant 0 : i32
    %c0_i32_0 = arith.constant 0 : i32
    %c0_i32_1 = arith.constant 0 : i32
    return %c0_i32, %c0_i32_0 : i32, i32
  }
}

module attributes {stable_mosaic.version = 11 : i64} {
  func.func @_matmul_kernel(%arg0: i32, %arg1: memref<392x64xbf16, #tpu.memory_space<vmem>>, %arg2: memref<64x128xbf16, #tpu.memory_space<vmem>>, %arg3: memref<392x128xbf16, #tpu.memory_space<vmem>>) attributes {dimension_semantics = [#tpu.dimension_semantics<parallel>], iteration_bounds = array<i64: 1>, scalar_prefetch = 0 : i64, scratch_operands = 0 : i64, tpu.core_type = #tpu.core_type<tc>, window_params = [{transform_indices = @transform_0, window_bounds = array<i64: 392, 64>}, {pipeline_mode = #tpu.pipeline_mode<synchronous>, transform_indices = @transform_1, window_bounds = array<i64: 64, 128>}, {transform_indices = @transform_2, window_bounds = array<i64: 392, 128>}]} {
    %c0 = arith.constant 0 : index
    %c0_0 = arith.constant 0 : index
    %0 = vector.load %arg1[%c0, %c0_0] : memref<392x64xbf16, #tpu.memory_space<vmem>>, vector<392x64xbf16>
    %c0_1 = arith.constant 0 : index
    %c0_2 = arith.constant 0 : index
    %1 = vector.load %arg2[%c0_1, %c0_2] : memref<64x128xbf16, #tpu.memory_space<vmem>>, vector<64x128xbf16>
    %cst = arith.constant dense<0.000000e+00> : vector<392x128xf32>
    %2 = tpu.matmul %0, %1, %cst {dimension_numbers = #tpu.dot_dimension_numbers<[1], [0], [0], [1], [0, 0, 1, 1], [], []>} : vector<392x64xbf16>, vector<64x128xbf16>, vector<392x128xf32> -> vector<392x128xf32>
    %3 = arith.truncf %2 : vector<392x128xf32> to vector<392x128xbf16>
    %c0_3 = arith.constant 0 : index
    %c0_4 = arith.constant 0 : index
    %4 = vector.load %arg3[%c0_3, %c0_4] : memref<392x128xbf16, #tpu.memory_space<vmem>>, vector<392x128xbf16>
    tpu.vector_store %arg3[%c0_3, %c0_4], %3 {strides = array<i32>} : memref<392x128xbf16, #tpu.memory_space<vmem>>, vector<392x128xbf16>,
    return
  }
  func.func @transform_0(%arg0: i32) -> (i32, i32) {
    %c0_i32 = arith.constant 0 : i32
    %c0_i32_0 = arith.constant 0 : i32
    return %arg0, %c0_i32 : i32, i32
  }
  func.func @transform_1(%arg0: i32) -> (i32, i32) {
    %c0_i32 = arith.constant 0 : i32
    %c0_i32_0 = arith.constant 0 : i32
    %c0_i32_1 = arith.constant 0 : i32
    return %c0_i32, %c0_i32_0 : i32, i32
  }
  func.func @transform_2(%arg0: i32) -> (i32, i32) {
    %c0_i32 = arith.constant 0 : i32
    %c0_i32_0 = arith.constant 0 : i32
    return %arg0, %c0_i32 : i32, i32
  }
}

module attributes {stable_mosaic.version = 11 : i64} {
  func.func @_bias_tanh_kernel(%arg0: i32, %arg1: memref<2x784xf32, #tpu.memory_space<vmem>>, %arg2: memref<1x784xf32, #tpu.memory_space<vmem>>, %arg3: memref<2x784xf32, #tpu.memory_space<vmem>>) attributes {dimension_semantics = [#tpu.dimension_semantics<arbitrary>], iteration_bounds = array<i64: 1>, scalar_prefetch = 0 : i64, scratch_operands = 0 : i64, tpu.core_type = #tpu.core_type<tc>, window_params = [{pipeline_mode = #tpu.pipeline_mode<synchronous>, transform_indices = @transform_0, window_bounds = array<i64: 2, 784>}, {pipeline_mode = #tpu.pipeline_mode<synchronous>, transform_indices = @transform_1, window_bounds = array<i64: 1, 784>}, {pipeline_mode = #tpu.pipeline_mode<synchronous>, transform_indices = @transform_2, window_bounds = array<i64: 2, 784>}]} {
    %c0 = arith.constant 0 : index
    %c0_0 = arith.constant 0 : index
    %0 = vector.load %arg1[%c0, %c0_0] : memref<2x784xf32, #tpu.memory_space<vmem>>, vector<2x784xf32>
    %c0_1 = arith.constant 0 : index
    %c0_2 = arith.constant 0 : index
    %1 = vector.load %arg2[%c0_1, %c0_2] : memref<1x784xf32, #tpu.memory_space<vmem>>, vector<1x784xf32>
    %2 = vector.broadcast %1 : vector<1x784xf32> to vector<2x784xf32>
    %3 = arith.addf %0, %2 : vector<2x784xf32>
    %4 = math.tanh %3 : vector<2x784xf32>
    %c0_3 = arith.constant 0 : index
    %c0_4 = arith.constant 0 : index
    %5 = vector.load %arg3[%c0_3, %c0_4] : memref<2x784xf32, #tpu.memory_space<vmem>>, vector<2x784xf32>
    tpu.vector_store %arg3[%c0_3, %c0_4], %4 {strides = array<i32>} : memref<2x784xf32, #tpu.memory_space<vmem>>, vector<2x784xf32>,
    return
  }
  func.func @transform_0(%arg0: i32) -> (i32, i32) {
    %c0_i32 = arith.constant 0 : i32
    %c0_i32_0 = arith.constant 0 : i32
    %c0_i32_1 = arith.constant 0 : i32
    return %c0_i32, %c0_i32_0 : i32, i32
  }
  func.func @transform_1(%arg0: i32) -> (i32, i32) {
    %c0_i32 = arith.constant 0 : i32
    %c0_i32_0 = arith.constant 0 : i32
    %c0_i32_1 = arith.constant 0 : i32
    return %c0_i32, %c0_i32_0 : i32, i32
  }
  func.func @transform_2(%arg0: i32) -> (i32, i32) {
    %c0_i32 = arith.constant 0 : i32
    %c0_i32_0 = arith.constant 0 : i32
    %c0_i32_1 = arith.constant 0 : i32
    return %c0_i32, %c0_i32_0 : i32, i32
  }
}

</mosaic_0001>

<bundles_post_ra>
// kernel: generator_forward.6
= control target key start
LH: loop header
LB: loop body
LE: loop exit
PB: predicated region body
PF: predicated region fallthrough
CT: control target
= control target key end

     0   :  { %9 = vsyncpa [#allocation3], 0  ;;  %s1571_s0 = inlined_call_operand.vmem [shape: bf16[2,139], index: 0, kind: input, shape index: {}]   ;;  %s1572_s1 = inlined_call_operand.hbm [shape: bf16[139,1024], index: 1, kind: input, shape index: {}]   ;;  %s1573_s2 = inlined_call_operand.hbm [shape: f32[1,1024], index: 2, kind: input, shape index: {}]   ;;  %s1574_s3 = inlined_call_operand.hbm [shape: f32[1,1024], index: 3, kind: input, shape index: {}]   ;;  %s1575_s4 = inlined_call_operand.vmem [shape: bf16[2,1024], index: 4, kind: output, shape index: {}]  }
   0x1   :  { %11 = vsyncpa [#allocation3 + $0x1], 0 }
   0x2   :  { %12 = vsyncpa [#allocation5], 0 }
   0x3   :  { %14 = vsyncpa [#allocation5 + $0x1], 0  ;;  %s1283_s15 = smov 0   ;;  %s1285_s16 = smov 0  }
   0x4   :  { %s1287_s17 = smov 0   ;;  %s1289_s18 = smov 0  }
   0x5 LB: > { %s1302_s19 = sadd.s32 4294967295, %s1248_s18   ;;  %s1305_s20 = sadd.s32 1, %s1248_s18   ;;  %s1248_s18 = sphi %s1289_s18, %s1588_s18   ;;  %s1244_s17 = sphi %s1287_s17, %s1587_s17   ;;  %s1240_s16 = sphi %s1285_s16, %s1586_s16   ;;  %s1236_s15 = sphi %s1283_s15, %s1585_s15  }
   0x6   : > { %s45_s21 = ssub.s32 %s1248_s18, %s1305_s20  ;;  %s48_s22 = sadd.s32 1, %s1244_s17 }
   0x7   : > { %p46_p0 = scmp.eq.s32.totalorder %s45_s21, 0  ;;  %p55_p1 = scmp.ne.s32.totalorder %s1244_s17, %s1240_s16 }
   0x8   : > { %p56_p2 = scmp.eq.s32.totalorder %s1248_s18, 0  ;;  %p61_p3 = scmp.ne.s32.totalorder %s1240_s16, %s1236_s15 }
   0x9   : > { %s1315_s23 = scalar_select %p46_p0, %s1244_s17, %s48_s22  }
   0xa   : > { %p57_p4 = por %p56_p2, %p55_p1  ;;  %p62_p5 = scmp.eq.s32.totalorder %s1302_s19, 0 }
   0xb   : > { %p1020_p6 = scmp.lt.s32.totalorder %s1248_s18, 2  ;;  %s1324_s25 = sand.u32 1, %s1244_s17  }
   0xc   : > { %p1319_p7 = por %p62_p5, %p61_p3  ;;  %s1002_s26 = smul.u32 288, %s1324_s25 }
   0xd   : > { %p1327_p8 = pnand %p1020_p6, %p57_p4  ;;  %s187_s28 = sand.u32 1, %s1248_s18  }
   0xe   : > { %s1578_s24 = scalar_select %p1319_p7, 1, 0 }
   0xf   : > { %s1579_s27 = scalar_select %p1327_p8, 1, 0 }
  0x10   : > { %s170_s29 = scalar_lea.vmem [#allocation2], %s1002_s26  ;;  %s945_s5 = sshll.u32 %s1324_s25, 2 }
  0x11   : > { %s177_s30 = sshll.u32 %s170_s29, 4  ;;  %s1000_s6 = sshll.u32 %s1248_s18, 6  ;;  %s1332_s30 = int_to_ptr.vmem [resolvable:$true] %s177_s30 }
  0x12   : > { %s1341_s9 = scalar_lea.hbm %s1573_s2, %s1000_s6  ;;  %s191_s10 = scalar_lea.vmem [#allocation4], %s945_s5 }
  0x13   : > { %s199_s11 = sshll.u32 %s191_s10, 4  ;;  %s1347_s12 = scalar_lea.sflag [#allocation5], %s187_s28  ;;  %s1345_s11 = int_to_ptr.vmem [resolvable:$true] %s199_s11 }
  0x14   : > { %s1120_s13 = scalar_lea.hbm %s1341_s9, 64  ;;  %p1353_p10 = pneg %p1327_p8 }
  0x15   : > { %p1121_p9 = scmp.ne.s32.totalorder %s1341_s9, %s1120_s13  ;;  %s1125_s22 = scalar_lea.hbm %s1573_s2, 128 }
  0x16   : > { %p1126_p13 = scmp.lt.u32.totalorder %s1341_s9, %s1573_s2  ;;  %p1127_p0 = scmp.lt.u32.totalorder %s1125_s22, %s1120_s13 }
  0x17   : > { %p1123_p11 = pnand %p1353_p10, %p1121_p9  ;;  %p1129_p2 = scmp.lt.u32.totalorder %s1120_s13, %s1341_s9 }
  0x18   : > { %p1128_p1 = por %p1127_p0, %p1126_p13 }
  0x19   : > { %p1124_p12 = pneg %p1123_p11 }
  0x1a   : > { %p1130_p3 = por %p1129_p2, %p1128_p1 }
  0x1c   : > { %p1131_p4 = pnand %p1130_p3, %p1124_p12 }
  0x1e   : > { %1134 = shalt.err (!%p1131_p4)
}
  0x1f   : > { %s1135_s28 = scalar_lea.vmem %s1345_s11, 64  ;;  %s1250_s7 = smov [#allocation4]  }
  0x20   : > { %p1136_p5 = scmp.ne.s32.totalorder %s1345_s11, %s1135_s28  ;;  %s1140_s8 = sshll.u32 %s1250_s7, 4  ;;  %s1141_s8 = int_to_ptr.vmem [resolvable:$false] %s1140_s8 }
  0x21   : > { %s1142_s10 = scalar_lea.vmem %s1141_s8, 128  ;;  %p1143_p11 = scmp.lt.s32.totalorder %s1345_s11, %s1141_s8 }
  0x22   : > { %p1138_p6 = pnand %p1136_p5, %p1353_p10  ;;  %p1144_p7 = scmp.lt.s32.totalorder %s1142_s10, %s1135_s28 }
  0x24   : > { %p1139_p9 = pneg %p1138_p6  ;;  %p1145_p13 = por %p1144_p7, %p1143_p11 }
  0x26   : > { %p1146_p0 = pnand %p1145_p13, %p1139_p9 }
  0x28   : > { %1149 = shalt.err (!%p1146_p0)
}
  0x29   : > { %1016 = dma.hbm_to_vmem [thread:$0]  (!%p1327_p8), %s1341_s9, 64, %s1345_s11, %s1347_s12  }
  0x2a   : > { %s1382_s21 = scalar_lea.hbm %s1574_s3, %s1000_s6  ;;  %p951_p7 = scmp.ge.s32.totalorder %s1248_s18, 1 }
  0x2b   : > { %p223_p12 = scmp.lt.s32.totalorder %s1248_s18, 3  ;;  %s999_s22 = sshll.u32 %s1248_s18, 8 }
  0x2c   : > { %s1390_s28 = scalar_lea.hbm %s1572_s1, %s999_s22  ;;  %s1398_s11 = scalar_lea.vmem [#allocation6], %s945_s5 }
  0x2d   : > { %p1392_p1 = pnand %p951_p7, %p223_p12  ;;  %s218_s6 = sshll.u32 %s1398_s11, 4  ;;  %s219_s6 = int_to_ptr.vmem [resolvable:$true] %s218_s6 }
  0x2e   : > { %s167_s7 = scalar_lea.sflag [#allocation3], %s1324_s25  ;;  %s1150_s18 = scalar_lea.hbm %s1390_s28, 4608 }
  0x2f   : > { %s1581_s9 = scalar_select %p1392_p1, 1, 0 }
  0x30   : > { %p1151_p2 = scmp.ne.s32.totalorder %s1390_s28, %s1150_s18  ;;  %s1155_s13 = scalar_lea.hbm %s1572_s1, 9216 }
  0x31   : > { %p1156_p5 = scmp.lt.u32.totalorder %s1390_s28, %s1572_s1  ;;  %p1157_p6 = scmp.lt.u32.totalorder %s1155_s13, %s1150_s18 }
  0x32   : > { %p1153_p3 = pnand %p1151_p2, %p1353_p10  ;;  %p1159_p11 = scmp.lt.u32.totalorder %s1150_s18, %s1390_s28 }
  0x33   : > { %p1158_p9 = por %p1157_p6, %p1156_p5 }
  0x34   : > { %p1154_p4 = pneg %p1153_p3 }
  0x35   : > { %p1160_p13 = por %p1159_p11, %p1158_p9 }
  0x37   : > { %p1161_p0 = pnand %p1160_p13, %p1154_p4 }
  0x39   : > { %1164 = shalt.err (!%p1161_p0)
}
  0x3a   : > { %s1165_s5 = scalar_lea.vmem %s1332_s30, 4608  ;;  %s1251_s26 = smov [#allocation2]  }
  0x3b   : > { %p1166_p7 = scmp.ne.s32.totalorder %s1332_s30, %s1165_s5  ;;  %s1170_s29 = sshll.u32 %s1251_s26, 4  ;;  %s1171_s29 = int_to_ptr.vmem [resolvable:$false] %s1170_s29 }
  0x3c   : > { %s1172_s8 = scalar_lea.vmem %s1171_s29, 9216  ;;  %p1173_p3 = scmp.lt.s32.totalorder %s1332_s30, %s1171_s29 }
  0x3d   : > { %p1168_p12 = pnand %p1166_p7, %p1353_p10  ;;  %p1174_p1 = scmp.lt.s32.totalorder %s1172_s8, %s1165_s5 }
  0x3f   : > { %p1169_p2 = pneg %p1168_p12  ;;  %p1175_p5 = por %p1174_p1, %p1173_p3 }
  0x41   : > { %p1176_p6 = pnand %p1175_p5, %p1169_p2 }
  0x43   : > { %1179 = shalt.err (!%p1176_p6)
}
  0x44   : > { %s1252_s18 = smov 512   ;;  %s1253_s10 = smov 256  }
  0x45   : > { %s1254_s13 = smov 16   ;;  %s1180_s15 = scalar_lea.hbm %s1382_s21, 64 }
  0x46   : > { %1013 = dma.hbm_to_vmem [thread:$0]  (!%p1327_p8), %s1390_s28, 4608, %s1332_s30, %s167_s7, %s1252_s18, %s1253_s10, %s1254_s13  }
  0x47   : > { %p1181_p1 = scmp.ne.s32.totalorder %s1382_s21, %s1180_s15  ;;  %s1185_s26 = scalar_lea.hbm %s1574_s3, 128 }
  0x48   : > { %p1186_p11 = scmp.lt.u32.totalorder %s1382_s21, %s1574_s3  ;;  %p1187_p13 = scmp.lt.u32.totalorder %s1185_s26, %s1180_s15 }
  0x49   : > { %p1183_p4 = pnand %p1181_p1, %p1353_p10  ;;  %p1189_p7 = scmp.lt.u32.totalorder %s1180_s15, %s1382_s21 }
  0x4a   : > { %p1188_p0 = por %p1187_p13, %p1186_p11 }
  0x4b   : > { %p1184_p9 = pneg %p1183_p4 }
  0x4c   : > { %p1190_p12 = por %p1189_p7, %p1188_p0 }
  0x4e   : > { %p1191_p2 = pnand %p1190_p12, %p1184_p9 }
  0x50   : > { %1194 = shalt.err (!%p1191_p2)
}
  0x51   : > { %s1195_s25 = scalar_lea.vmem %s219_s6, 64  ;;  %s1255_s30 = smov [#allocation6]  }
  0x52   : > { %p1196_p3 = scmp.ne.s32.totalorder %s219_s6, %s1195_s25  ;;  %s1200_s28 = sshll.u32 %s1255_s30, 4  ;;  %s1201_s28 = int_to_ptr.vmem [resolvable:$false] %s1200_s28 }
  0x53   : > { %s1202_s11 = scalar_lea.vmem %s1201_s28, 128  ;;  %p1203_p1 = scmp.lt.s32.totalorder %s219_s6, %s1201_s28 }
  0x54   : > { %p1198_p5 = pnand %p1196_p3, %p1353_p10  ;;  %p1204_p4 = scmp.lt.s32.totalorder %s1202_s11, %s1195_s25 }
  0x56   : > { %p1199_p6 = pneg %p1198_p5  ;;  %p1205_p8 = por %p1204_p4, %p1203_p1 }
  0x58   : > { %p1206_p11 = pnand %p1205_p8, %p1199_p6 }
  0x5a   : > { %1209 = shalt.err (!%p1206_p11)
}
  0x5b   : > { %p1582_p13 = scmp.ne.s32.totalorder %s1579_s27, 0  ;;  %p1583_p9 = scmp.ne.s32.totalorder %s1581_s9, 0 }
  0x5c   : > { %s1448_s14 = sand.u32 (!%p1583_p9), 1, %s1240_s16   ;;  %p1584_p8 = scmp.ne.s32.totalorder (!%p1583_p9), %s1578_s24, 0 }
  0x5d   : > { %1019 = dma.hbm_to_vmem [thread:$0]  (!%p1582_p13), %s1382_s21, 64, %s219_s6, %s1347_s12  }
  0x5e   : > { %227 = sbr.rel (%p1583_p9) target bundleno = 429 (0x1ad), region = 36  ;;  %s230_s18 = scalar_lea.sflag (!%p1583_p9), [#allocation3], %s1448_s14 }
  0x5f   : > { %s1003_s7 = smul.u32 (!%p1583_p9), 288, %s1448_s14 }
  0x61   : > { %s1452_s10 = scalar_lea.vmem (!%p1583_p9), [#allocation2], %s1003_s7 }
  0x65   : > { %1227 = dma.done.wait (%p1584_p8), %s230_s18, 4608  }
  0x66   : > { %1229 = vsyncadd (%p1584_p8), %s230_s18, 4294962688  ;;  %s238_s27 = sand.u32 1, %s1302_s19   ;;  %s952_s12 = sshll.u32 %s1448_s14, 2 }
  0x67   : > { %s239_s21 = scalar_lea.sflag [#allocation5], %s238_s27  ;;  %s1462_s9 = scalar_lea.vmem [#allocation4], %s952_s12 }
  0x68   : > { %1231 = dma.done.wait (%p1584_p8), %s239_s21, 128  }
  0x69   : > { %1233 = vsyncadd (%p1584_p8), %s239_s21, 4294967168  ;;  %v1058_v0 = vld [vmem:[%s1452_s10 + $0x4] ss:$16 sps:$4 sm:$0xff]   ;;  %v1060_v1 = vld [vmem:[%s1452_s10 + $0xc] ss:$16 sps:$4 sm:$0xff]   ;;  %v343_v23 = vlaneseq  ;;  %vm535_vm0 = vcmask 1044480  }
  0x6a   : > { %551 = vmatprep.subr.bf16.mxu0 %v1058_v0  ;;  %v1062_v2 = vld [vmem:[%s1452_s10] ss:$16 sps:$4 sm:$0xff]   ;;  %v1063_v3 = vld [vmem:[%s1452_s10 + $0x8] ss:$16 sps:$4 sm:$0xff]   ;;  %592 = vmatprep.subr.bf16.mxu1 %v1060_v1  ;;  %v1064_v4 = vld [vmem:[%s1452_s10 + $0x24] ss:$16 sps:$4 sm:$0xff]  }
  0x6b   : > { %552 = vmatpush1.bf16.msra.mxu0 %v1062_v2  ;;  %593 = vmatpush1.bf16.msra.mxu1 %v1063_v3  ;;  %v1066_v5 = vld [vmem:[%s1452_s10 + $0x2c] ss:$16 sps:$4 sm:$0xff]   ;;  %v1068_v6 = vld [vmem:[%s1452_s10 + $0x20] ss:$16 sps:$4 sm:$0xff]   ;;  %v1069_v7 = vld [vmem:[%s1452_s10 + $0x28] ss:$16 sps:$4 sm:$0xff]  }
  0x6c   : > { %553 = vmatprep.subr.bf16.mxu0 %v1064_v4  ;;  %594 = vmatprep.subr.bf16.mxu1 %v1066_v5  ;;  %v1070_v8 = vld [vmem:[%s1452_s10 + $0x44] ss:$16 sps:$4 sm:$0xff]   ;;  %v1072_v9 = vld [vmem:[%s1452_s10 + $0x4c] ss:$16 sps:$4 sm:$0xff]   ;;  %v1074_v10 = vld [vmem:[%s1452_s10 + $0x40] ss:$16 sps:$4 sm:$0xff]  }
  0x6d   : > { %v1075_v11 = vld [vmem:[%s1452_s10 + $0x48] ss:$16 sps:$4 sm:$0xff]   ;;  %v1076_v12 = vld [vmem:[%s1452_s10 + $0x64] ss:$16 sps:$4 sm:$0xff]   ;;  %v1078_v13 = vld [vmem:[%s1452_s10 + $0x6c] ss:$16 sps:$4 sm:$0xff]  }
  0x6e   : > { %v1080_v14 = vld [vmem:[%s1452_s10 + $0x60] ss:$16 sps:$4 sm:$0xff]   ;;  %v1081_v15 = vld [vmem:[%s1452_s10 + $0x68] ss:$16 sps:$4 sm:$0xff]   ;;  %v1082_v16 = vld [vmem:[%s1452_s10 + $0x84] ss:$16 sps:$4 sm:$0xff]  }
  0x6f   : > { %554 = vmatpush1.bf16.msra.mxu0 %v1068_v6  ;;  %595 = vmatpush1.bf16.msra.mxu1 %v1069_v7  ;;  %v1084_v17 = vld [vmem:[%s1452_s10 + $0x8c] ss:$16 sps:$4 sm:$0xff]   ;;  %v1086_v18 = vld [vmem:[%s1452_s10 + $0x80] ss:$16 sps:$4 sm:$0xff]   ;;  %v1087_v19 = vld [vmem:[%s1452_s10 + $0x88] ss:$16 sps:$4 sm:$0xff]  }
  0x70   : > { %555 = vmatprep.subr.bf16.mxu0 %v1070_v8  ;;  %596 = vmatprep.subr.bf16.mxu1 %v1072_v9  ;;  %v1088_v20 = vld [vmem:[%s1452_s10 + $0xa4] ss:$16 sps:$4 sm:$0xff]   ;;  %v1256_v21 = vmov 1966171168   ;;  %v1090_v24 = vld [vmem:[%s1452_s10 + $0xac] ss:$16 sps:$4 sm:$0xff]  }
  0x71   : > { %v341_v22 = vunpack.c.l.s4 %v1256_v21  ;;  %v1092_v25 = vld [vmem:[%s1452_s10 + $0xa0] ss:$16 sps:$4 sm:$0xff]   ;;  %v1093_v26 = vld [vmem:[%s1452_s10 + $0xa8] ss:$16 sps:$4 sm:$0xff]   ;;  %v1094_v27 = vld [vmem:[%s1452_s10 + $0xc4] ss:$16 sps:$4 sm:$0xff]  }
  0x72   : > { %v1493_v29 = vshrl.u32 %v343_v23, 7  ;;  %v1096_v30 = vld [vmem:[%s1452_s10 + $0xcc] ss:$16 sps:$4 sm:$0xff]   ;;  %vm536_vm1 = vcmask 1045504   ;;  %v1257_v31 = vmov 65535   ;;  %vm531_vm2 = vcmask 89088  }
  0x73   : > { %556 = vmatpush1.bf16.msra.mxu0 %v1074_v10  ;;  %597 = vmatpush1.bf16.msra.mxu1 %v1075_v11  ;;  %v342_v28 = vunpack.c.0.s8 %v341_v22  ;;  %v537_v32 = vsel %vm535_vm0, 4294967295, %v1257_v31  ;;  %v1098_v33 = vld [vmem:[%s1452_s10 + $0xc0] ss:$16 sps:$4 sm:$0xff]   ;;  %v1099_v34 = vld [vmem:[%s1452_s10 + $0xc8] ss:$16 sps:$4 sm:$0xff]   ;;  %vm633_vm3 = vcmask 1041408  }
  0x74   : > { %557 = vmatprep.subr.bf16.mxu0 %v1076_v12  ;;  %598 = vmatprep.subr.bf16.mxu1 %v1078_v13  ;;  %v1100_v35 = vld [vmem:[%s1452_s10 + $0xe4] ss:$16 sps:$4 sm:$0xff]   ;;  %v1108_v37 = vld [vmem:[%s1452_s10 + $0x10c] ss:$16 sps:$4 sm:$0x3f]   ;;  %v538_v41 = vsel %vm536_vm1, %v537_v32, 0 }
  0x75   : > { %v1106_v36 = vld [vmem:[%s1452_s10 + $0x104] ss:$16 sps:$4 sm:$0x3f]   ;;  %v1502_v38 = vsub.s32 %v342_v28, %v1493_v29  ;;  %v1102_v39 = vld [vmem:[%s1452_s10 + $0xec] ss:$16 sps:$4 sm:$0xff]   ;;  %v549_v49 = vand.u32 %v1108_v37, %v538_v41  ;;  %s251_s13 = scalar_lea.vmem [#allocation6], %s952_s12 }
  0x76   : > { %v955_v40 = vld.sshfl [vmem:[%s1571_s0] sm:$0x11 pattern:$0x75316420]  ;;  %v1105_v44 = vld [vmem:[%s1452_s10 + $0xe8] ss:$16 sps:$4 sm:$0xff]   ;;  %v543_v48 = vand.u32 %v1106_v36, %v538_v41 }
  0x77   : > { %558 = vmatpush1.bf16.msra.mxu0 %v1080_v14  ;;  %599 = vmatpush1.bf16.msra.mxu1 %v1081_v15  ;;  %v339_v42 = vcombine.high %v955_v40, %v955_v40  ;;  %v1104_v43 = vld [vmem:[%s1452_s10 + $0xe0] ss:$16 sps:$4 sm:$0xff]   ;;  %v1111_v46 = vld [vmem:[%s1452_s10 + $0x108] ss:$16 sps:$4 sm:$0x3f]   ;;  %v346_v52 = vrot.slane %v955_v40, %v1502_v38  ;;  %s954_s15 = sshll.u32 %s1302_s19, 2 }
  0x78   : > { %559 = vmatprep.subr.bf16.mxu0 %v1082_v16  ;;  %600 = vmatprep.subr.bf16.mxu1 %v1084_v17  ;;  %v1110_v45 = vld [vmem:[%s1452_s10 + $0x100] ss:$16 sps:$4 sm:$0x3f]   ;;  %v546_v51 = vand.u32 %v1111_v46, %v538_v41  ;;  %p289_p10 = scmp.lt.s32.totalorder %s954_s15, 7 }
  0x79   : > { %v353_v47 = vrot.slane %v339_v42, %v1502_v38  ;;  %v540_v50 = vand.u32 %v1110_v45, %v538_v41 }
  0x7a   : > { %s1590_s15 = smov (!%p289_p10, %s954_s15), 7 }
  0x7b   : > { %560 = vmatpush1.bf16.msra.mxu0 %v1086_v18  ;;  %601 = vmatpush1.bf16.msra.mxu1 %v1087_v19  ;;  %s291_s5 = scalar_lea.vmem %s1575_s4, %s1590_s15 }
  0x7c   : > { %561 = vmatprep.subr.bf16.mxu0 %v1088_v20  ;;  %602 = vmatprep.subr.bf16.mxu1 %v1090_v24 }
  0x7d   : > { %992 = vmatprep.mubr.msk.bf16.mxu0 %vm531_vm2, %v353_v47  ;;  %993 = vmatprep.mubr.msk.bf16.mxu1 %vm531_vm2, %v353_v47 }
  0x7f   : > { %562 = vmatpush1.bf16.msra.mxu0 %v1092_v25  ;;  %603 = vmatpush1.bf16.msra.mxu1 %v1093_v26 }
  0x80   : > { %563 = vmatprep.subr.bf16.mxu0 %v1094_v27  ;;  %604 = vmatprep.subr.bf16.mxu1 %v1096_v30 }
  0x83   : > { %564 = vmatpush1.bf16.msra.mxu0 %v1098_v33  ;;  %605 = vmatpush1.bf16.msra.mxu1 %v1099_v34 }
  0x84   : > { %565 = vmatprep.subr.bf16.mxu0 %v1100_v35  ;;  %606 = vmatprep.subr.bf16.mxu1 %v1102_v39 }
  0x87   : > { %566 = vmatpush1.bf16.msra.mxu0 %v1104_v43  ;;  %607 = vmatpush1.bf16.msra.mxu1 %v1105_v44 }
  0x88   : > { %567 = vmatprep.subr.bf16.mxu0 %v543_v48  ;;  %608 = vmatprep.subr.bf16.mxu1 %v549_v49 }
  0x8b   : > { %568 = vmatpush1.bf16.msra.mxu0 %v540_v50  ;;  %609 = vmatpush1.bf16.msra.mxu1 %v546_v51 }
  0x8e   : > { %584 = vmatmul.mubr.bf16.vlgmr.msra.gmra.mrb[0].mxu0 %v346_v52  ;;  %625 = vmatmul.mubr.bf16.vlgmr.msra.gmra.mrb[0].mxu1 %v346_v52 }
 0x161   : > { %v585_v53 = vpop.f32.mrb[0].mxu0  ;;  %v626_v54 = vpop.f32.mrb[0].mxu1 }
 0x162   : > { %v634_v55 = vsel %vm633_vm3, %v585_v53, 0.0  ;;  %v648_v56 = vsel %vm633_vm3, %v626_v54, 0.0  ;;  %v587_v57 = vpop.f32.mrb[1].mxu0  ;;  %v628_v58 = vpop.f32.mrb[1].mxu1 }
 0x163   : > { %v635_v59 = vrot.slane %v634_v55, 4  ;;  %v649_v60 = vrot.slane %v648_v56, 4  ;;  %v641_v61 = vsel %vm633_vm3, %v587_v57, 0.0  ;;  %v655_v62 = vsel %vm633_vm3, %v628_v58, 0.0  ;;  %v589_v63 = vpop.f32.mrb[2].mxu0  ;;  %v630_v0 = vpop.f32.mrb[2].mxu1 }
 0x164   : > { %v642_v1 = vrot.slane %v641_v61, 4  ;;  %v656_v2 = vrot.slane %v655_v62, 4  ;;  %v590_v3 = vpop.f32.mrb[3].mxu0  ;;  %v631_v4 = vpop.f32.mrb[3].mxu1 }
 0x165   : > { %v636_v5 = vadd.f32 %v635_v59, %v634_v55  ;;  %v650_v6 = vadd.f32 %v649_v60, %v648_v56 }
 0x166   : > { %v643_v7 = vadd.f32 %v642_v1, %v641_v61  ;;  %v657_v8 = vadd.f32 %v656_v2, %v655_v62 }
 0x167   : > { %v637_v9 = vrot.slane %v636_v5, 2  ;;  %v651_v10 = vrot.slane %v650_v6, 2 }
 0x168   : > { %v644_v11 = vrot.slane %v643_v7, 2  ;;  %v658_v12 = vrot.slane %v657_v8, 2 }
 0x169   : > { %v638_v13 = vadd.f32 %v637_v9, %v636_v5  ;;  %v652_v14 = vadd.f32 %v651_v10, %v650_v6 }
 0x16a   : > { %v645_v15 = vadd.f32 %v644_v11, %v643_v7  ;;  %v659_v16 = vadd.f32 %v658_v12, %v657_v8 }
 0x16b   : > { %v639_v17 = vrot.slane %v638_v13, 1  ;;  %v653_v18 = vrot.slane %v652_v14, 1 }
 0x16c   : > { %v646_v19 = vrot.slane %v645_v15, 1  ;;  %v660_v20 = vrot.slane %v659_v16, 1 }
 0x16d   : > { %v640_v21 = vadd.f32 %v639_v17, %v638_v13  ;;  %v654_v22 = vadd.f32 %v653_v18, %v652_v14 }
 0x16e   : > { %v647_v23 = vadd.f32 %v646_v19, %v645_v15  ;;  %v661_v24 = vadd.f32 %v660_v20, %v659_v16  ;;  %v707_v20 = vld [vmem:[%s1462_s9] sm:$0xf] }
 0x16f   : > { %v663_v25 = vmul.f32 0.5, %v640_v21  ;;  %v665_v26 = vmul.f32 0.5, %v654_v22  ;;  %v749_v21 = vsub.s32 0, %v1493_v29 }
 0x170   : > { %v664_v27 = vmul.f32 0.5, %v647_v23  ;;  %v666_v28 = vmul.f32 0.5, %v661_v24  ;;  %v753_v23 = vsub.s32 1, %v1493_v29  ;;  %v757_v24 = vsub.s32 2, %v1493_v29 }
 0x171   : > { %v1518_v30 = vsub.f32 %v585_v53, %v663_v25  ;;  %v1520_v31 = vsub.f32 %v626_v54, %v665_v26  ;;  %v761_v25 = vsub.s32 3, %v1493_v29  ;;  %v771_v26 = vld [vmem:[%s251_s13] sm:$0xf] }
 0x172   : > { %v1522_v32 = vsub.f32 %v587_v57, %v664_v27  ;;  %v1524_v33 = vsub.f32 %v628_v58, %v666_v28  ;;  %v776_v28 = vrot.slane %v771_v26, %v749_v21 }
 0x173   : > { %v671_v34 = vmul.f32 %v1518_v30, %v1518_v30  ;;  %v673_v35 = vmul.f32 %v1520_v31, %v1520_v31 }
 0x174   : > { %v672_v36 = vmul.f32 %v1522_v32, %v1522_v32  ;;  %v674_v37 = vmul.f32 %v1524_v33, %v1524_v33 }
 0x175   : > { %v675_v39 = vsel %vm633_vm3, %v671_v34, 0.0  ;;  %v689_v40 = vsel %vm633_vm3, %v673_v35, 0.0  ;;  %v780_v34 = vrot.slane %v771_v26, %v753_v23  ;;  %v784_v35 = vrot.slane %v771_v26, %v757_v24 }
 0x176   : > { %v676_v41 = vrot.slane %v675_v39, 4  ;;  %v690_v42 = vrot.slane %v689_v40, 4  ;;  %v682_v43 = vsel %vm633_vm3, %v672_v36, 0.0  ;;  %v696_v44 = vsel %vm633_vm3, %v674_v37, 0.0 }
 0x177   : > { %v683_v45 = vrot.slane %v682_v43, 4  ;;  %v697_v46 = vrot.slane %v696_v44, 4  ;;  %v788_v36 = vrot.slane %v771_v26, %v761_v25 }
 0x178   : > { %v677_v47 = vadd.f32 %v676_v41, %v675_v39  ;;  %v691_v48 = vadd.f32 %v690_v42, %v689_v40 }
 0x179   : > { %v684_v49 = vadd.f32 %v683_v45, %v682_v43  ;;  %v698_v50 = vadd.f32 %v697_v46, %v696_v44 }
 0x17a   : > { %v678_v51 = vrot.slane %v677_v47, 2  ;;  %v692_v52 = vrot.slane %v691_v48, 2 }
 0x17b   : > { %v685_v53 = vrot.slane %v684_v49, 2  ;;  %v699_v54 = vrot.slane %v698_v50, 2 }
 0x17c   : > { %v679_v55 = vadd.f32 %v678_v51, %v677_v47  ;;  %v693_v56 = vadd.f32 %v692_v52, %v691_v48 }
 0x17d   : > { %v686_v57 = vadd.f32 %v685_v53, %v684_v49  ;;  %v700_v58 = vadd.f32 %v699_v54, %v698_v50 }
 0x17e   : > { %v680_v59 = vrot.slane %v679_v55, 1  ;;  %v694_v60 = vrot.slane %v693_v56, 1 }
 0x17f   : > { %v687_v61 = vrot.slane %v686_v57, 1  ;;  %v701_v62 = vrot.slane %v700_v58, 1 }
 0x180   : > { %v681_v63 = vadd.f32 %v680_v59, %v679_v55  ;;  %v695_v0 = vadd.f32 %v694_v60, %v693_v56 }
 0x181   : > { %v688_v1 = vadd.f32 %v687_v61, %v686_v57  ;;  %v702_v2 = vadd.f32 %v701_v62, %v700_v58 }
 0x182   : > { %v703_v3 = vmul.f32 0.5, %v681_v63  ;;  %v705_v4 = vmul.f32 0.5, %v695_v0 }
 0x183   : > { %v704_v5 = vmul.f32 0.5, %v688_v1  ;;  %v706_v6 = vmul.f32 0.5, %v702_v2 }
 0x184   : > { %v708_v7 = vadd.f32 1e-05, %v703_v3  ;;  %v710_v8 = vadd.f32 1e-05, %v705_v4 }
 0x185   : > { %v709_v9 = vadd.f32 1e-05, %v704_v5  ;;  %v711_v10 = vadd.f32 1e-05, %v706_v6 }
 0x186   : > { %1112 = vrsqrt.f32 %v708_v7 }
 0x187   : > { %1114 = vrsqrt.f32 %v710_v8 }
 0x188   : > { %1116 = vrsqrt.f32 %v709_v9 }
 0x189   : > { %1118 = vrsqrt.f32 %v711_v10 }
 0x190   : > { %v1113_v11 = vpop.eup %1112 }
 0x191   : > { %v1115_v12 = vpop.eup %1114 }
 0x192   : > { %v1117_v13 = vpop.eup %1116 }
 0x193   : > { %v1119_v14 = vpop.eup %1118  ;;  %v720_v15 = vcombine.low %v1113_v11, %v1117_v13 }
 0x194   : > { %v721_v16 = vcombine.low %v1115_v12, %v1119_v14 }
 0x195   : > { %v728_v17 = vrot.slane %v720_v15, %v1502_v38 }
 0x196   : > { %v735_v18 = vrot.slane %v721_v16, %v1502_v38 }
 0x198   : > { %v736_v19 = vcombine.low %v728_v17, %v735_v18 }
 0x19a   : > { %v743_v22 = vrot.slane %v736_v19, %v1502_v38 }
 0x19c   : > { %v745_v27 = vmul.f32 %v743_v22, %v707_v20 }
 0x19e   : > { %v750_v37 = vrot.slane %v745_v27, %v749_v21  ;;  %v754_v39 = vrot.slane %v745_v27, %v753_v23  ;;  %v758_v40 = vrot.slane %v745_v27, %v757_v24  ;;  %v762_v41 = vrot.slane %v745_v27, %v761_v25 }
 0x1a0   : > { %v767_v42 = vmul.f32 %v750_v37, %v1518_v30  ;;  %v768_v43 = vmul.f32 %v754_v39, %v1522_v32  ;;  %v769_v44 = vmul.f32 %v758_v40, %v1520_v31  ;;  %v770_v29 = vmul.f32 %v762_v41, %v1524_v33 }
 0x1a2   : > { %v793_v45 = vadd.f32 %v776_v28, %v767_v42  ;;  %v794_v46 = vadd.f32 %v780_v34, %v768_v43  ;;  %v795_v47 = vadd.f32 %v784_v35, %v769_v44  ;;  %v796_v48 = vadd.f32 %v788_v36, %v770_v29 }
 0x1a4   : > { %v797_v49 = vmax.f32 %v793_v45, 0.0  ;;  %v798_v50 = vmax.f32 %v794_v46, 0.0  ;;  %v799_v51 = vmax.f32 %v795_v47, 0.0  ;;  %v800_v52 = vmax.f32 %v796_v48, 0.0 }
 0x1a6   : > { %v994_v53 = vpack.c.bf16 %v798_v50, %v797_v49  ;;  %v995_v54 = vpack.c.bf16 %v800_v52, %v799_v51 }
 0x1a8   : > { %v817_v30 = vrot.slane %v994_v53, %v1502_v38  ;;  %v824_v32 = vrot.slane %v995_v54, %v1502_v38 }
 0x1aa   : > { %v825_v31 = vcombine.low %v817_v30, %v824_v32 }
 0x1ac   : > { %996 = vst.sshfl [vmem:[%s291_s5] sm:$0x55 pattern:$0x73625140] %v825_v31 }
 0x1ad PF: > { %p17_p0 = scmp.ge.s32.totalorder %s1305_s20, 4   ;;  %s1585_s15 = smov %s1240_s16 }
 0x1ae   : > { %s1586_s16 = smov %s1244_s17  ;;  %s1587_s17 = smov %s1315_s23 }
 0x1af   : > { %s1588_s18 = smov %s1305_s20  ;;  %19 = sbr.rel (!%p17_p0) target bundleno = 5 (0x5), region = 100 }
 0x1b6   :  { %855 = vsyncpa [#allocation3], 1 }
 0x1b7   :  { %857 = vsyncpa [#allocation3 + $0x1], 1 }
 0x1b8   :  { %858 = vsyncpa [#allocation5], 1 }
 0x1b9   :  { %860 = vsyncpa [#allocation5 + $0x1], 1 }

// kernel: generator_forward.8
= control target key start
LH: loop header
LB: loop body
LE: loop exit
PB: predicated region body
PF: predicated region fallthrough
CT: control target
= control target key end

     0   :  { %v1412_v3 = vmov 0   ;;  %s1843_s1 = inlined_call_operand.vmem [shape: bf16[128,1024], index: 1, kind: input, shape index: {}]   ;;  %s1844_s0 = inlined_call_operand.vmem [shape: bf16[98,128], index: 0, kind: input, shape index: {}]   ;;  %s1845_s2 = inlined_call_operand.vmem [shape: bf16[98,1024], index: 2, kind: output, shape index: {}]  }
   0x1   :  { %v25_v0 = vld [vmem:[%s1843_s1] sm:$0xff]  ;;  %v26_v2 = vld [vmem:[%s1843_s1 + $0x8] sm:$0xff]  ;;  %481 = vmatprep.mubr.bf16.mxu0 %v1412_v3  ;;  %582 = vmatprep.mubr.bf16.mxu1 %v1412_v3  ;;  %v27_v63 = vld [vmem:[%s1843_s1 + $0x10] sm:$0xff] }
   0x2   :  { %v29_v1 = vld [vmem:[%s1843_s1 + $0x20] sm:$0xff]  ;;  %v30_v5 = vld [vmem:[%s1843_s1 + $0x28] sm:$0xff] }
   0x3   :  { %v1237_v4 = vcombine.high %v25_v0, %v29_v1  ;;  %v1236_v6 = vcombine.low %v25_v0, %v29_v1  ;;  %v33_v7 = vld [vmem:[%s1843_s1 + $0x40] sm:$0xff]  ;;  %v1239_v9 = vcombine.high %v26_v2, %v30_v5  ;;  %v1238_v10 = vcombine.low %v26_v2, %v30_v5  ;;  %v34_v12 = vld [vmem:[%s1843_s1 + $0x48] sm:$0xff]  ;;  %v31_v0 = vld [vmem:[%s1843_s1 + $0x30] sm:$0xff] }
   0x4   :  { %v37_v8 = vld [vmem:[%s1843_s1 + $0x60] sm:$0xff]  ;;  %v38_v13 = vld [vmem:[%s1843_s1 + $0x68] sm:$0xff]  ;;  %v28_v1 = vld [vmem:[%s1843_s1 + $0x18] sm:$0xff] }
   0x5   :  { %v1245_v11 = vcombine.high %v33_v7, %v37_v8  ;;  %v41_v14 = vld [vmem:[%s1843_s1 + $0x80] sm:$0xff]  ;;  %449 = vmatprep.subr.bf16.mxu0 %v1237_v4  ;;  %v1247_v15 = vcombine.high %v34_v12, %v38_v13  ;;  %v42_v17 = vld [vmem:[%s1843_s1 + $0x88] sm:$0xff]  ;;  %550 = vmatprep.subr.bf16.mxu1 %v1239_v9  ;;  %v1244_v19 = vcombine.low %v33_v7, %v37_v8  ;;  %v32_v2 = vld [vmem:[%s1843_s1 + $0x38] sm:$0xff] }
   0x6   :  { %v45_v16 = vld [vmem:[%s1843_s1 + $0xa0] sm:$0xff]  ;;  %v46_v18 = vld [vmem:[%s1843_s1 + $0xa8] sm:$0xff]  ;;  %450 = vmatpush1.bf16.msra.mxu0 %v1236_v6  ;;  %551 = vmatpush1.bf16.msra.mxu1 %v1238_v10  ;;  %v1246_v20 = vcombine.low %v34_v12, %v38_v13  ;;  %v1241_v6 = vcombine.high %v27_v63, %v31_v0  ;;  %v1243_v7 = vcombine.high %v28_v1, %v32_v2  ;;  %v35_v9 = vld [vmem:[%s1843_s1 + $0x50] sm:$0xff] }
   0x7   :  { %451 = vmatprep.subr.bf16.mxu0 %v1245_v11  ;;  %v1253_v21 = vcombine.high %v41_v14, %v45_v16  ;;  %552 = vmatprep.subr.bf16.mxu1 %v1247_v15  ;;  %v1255_v22 = vcombine.high %v42_v17, %v46_v18  ;;  %v49_v23 = vld [vmem:[%s1843_s1 + $0xc0] sm:$0xff]  ;;  %v50_v25 = vld [vmem:[%s1843_s1 + $0xc8] sm:$0xff]  ;;  %v1252_v27 = vcombine.low %v41_v14, %v45_v16  ;;  %v39_v10 = vld [vmem:[%s1843_s1 + $0x70] sm:$0xff] }
   0x8   :  { %v53_v24 = vld [vmem:[%s1843_s1 + $0xe0] sm:$0xff]  ;;  %v54_v26 = vld [vmem:[%s1843_s1 + $0xe8] sm:$0xff]  ;;  %v1254_v28 = vcombine.low %v42_v17, %v46_v18  ;;  %v1240_v11 = vcombine.low %v27_v63, %v31_v0  ;;  %v36_v12 = vld [vmem:[%s1843_s1 + $0x58] sm:$0xff]  ;;  %v1242_v14 = vcombine.low %v28_v1, %v32_v2  ;;  %v1249_v15 = vcombine.high %v35_v9, %v39_v10 }
   0x9   :  { %v1261_v29 = vcombine.high %v49_v23, %v53_v24  ;;  %v1263_v30 = vcombine.high %v50_v25, %v54_v26  ;;  %v57_v31 = vld [vmem:[%s1843_s1 + $0x100] sm:$0xff]  ;;  %v58_v33 = vld [vmem:[%s1843_s1 + $0x108] sm:$0xff]  ;;  %v1260_v35 = vcombine.low %v49_v23, %v53_v24  ;;  %v1262_v36 = vcombine.low %v50_v25, %v54_v26  ;;  %v40_v13 = vld [vmem:[%s1843_s1 + $0x78] sm:$0xff] }
   0xa   :  { %452 = vmatpush1.bf16.msra.mxu0 %v1244_v19  ;;  %553 = vmatpush1.bf16.msra.mxu1 %v1246_v20  ;;  %v61_v32 = vld [vmem:[%s1843_s1 + $0x120] sm:$0xff]  ;;  %v62_v34 = vld [vmem:[%s1843_s1 + $0x128] sm:$0xff]  ;;  %v43_v16 = vld [vmem:[%s1843_s1 + $0x90] sm:$0xff]  ;;  %v1251_v18 = vcombine.high %v36_v12, %v40_v13 }
   0xb   :  { %453 = vmatprep.subr.bf16.mxu0 %v1253_v21  ;;  %554 = vmatprep.subr.bf16.mxu1 %v1255_v22  ;;  %v1269_v37 = vcombine.high %v57_v31, %v61_v32  ;;  %v65_v38 = vld [vmem:[%s1843_s1 + $0x140] sm:$0xff]  ;;  %v1271_v39 = vcombine.high %v58_v33, %v62_v34  ;;  %v66_v41 = vld [vmem:[%s1843_s1 + $0x148] sm:$0xff]  ;;  %v1268_v43 = vcombine.low %v57_v31, %v61_v32  ;;  %v47_v17 = vld [vmem:[%s1843_s1 + $0xb0] sm:$0xff] }
   0xc   :  { %v69_v40 = vld [vmem:[%s1843_s1 + $0x160] sm:$0xff]  ;;  %v70_v42 = vld [vmem:[%s1843_s1 + $0x168] sm:$0xff]  ;;  %v1270_v44 = vcombine.low %v58_v33, %v62_v34  ;;  %v44_v19 = vld [vmem:[%s1843_s1 + $0x98] sm:$0xff]  ;;  %v1248_v21 = vcombine.low %v35_v9, %v39_v10  ;;  %v1250_v22 = vcombine.low %v36_v12, %v40_v13  ;;  %v1257_v23 = vcombine.high %v43_v16, %v47_v17 }
   0xd   :  { %v1277_v45 = vcombine.high %v65_v38, %v69_v40  ;;  %v1279_v46 = vcombine.high %v66_v41, %v70_v42  ;;  %v73_v47 = vld [vmem:[%s1843_s1 + $0x180] sm:$0xff]  ;;  %v74_v49 = vld [vmem:[%s1843_s1 + $0x188] sm:$0xff]  ;;  %v1276_v51 = vcombine.low %v65_v38, %v69_v40  ;;  %v1278_v52 = vcombine.low %v66_v41, %v70_v42  ;;  %v48_v20 = vld [vmem:[%s1843_s1 + $0xb8] sm:$0xff] }
   0xe   :  { %454 = vmatpush1.bf16.msra.mxu0 %v1252_v27  ;;  %555 = vmatpush1.bf16.msra.mxu1 %v1254_v28  ;;  %v77_v48 = vld [vmem:[%s1843_s1 + $0x1a0] sm:$0xff]  ;;  %v78_v50 = vld [vmem:[%s1843_s1 + $0x1a8] sm:$0xff]  ;;  %v1259_v24 = vcombine.high %v44_v19, %v48_v20  ;;  %v51_v26 = vld [vmem:[%s1843_s1 + $0xd0] sm:$0xff]  ;;  %v1258_v31 = vcombine.low %v44_v19, %v48_v20 }
   0xf   :  { %455 = vmatprep.subr.bf16.mxu0 %v1261_v29  ;;  %556 = vmatprep.subr.bf16.mxu1 %v1263_v30  ;;  %v1285_v53 = vcombine.high %v73_v47, %v77_v48  ;;  %v1287_v54 = vcombine.high %v74_v49, %v78_v50  ;;  %v81_v55 = vld [vmem:[%s1843_s1 + $0x1c0] sm:$0xff]  ;;  %v82_v57 = vld [vmem:[%s1843_s1 + $0x1c8] sm:$0xff]  ;;  %v1284_v59 = vcombine.low %v73_v47, %v77_v48  ;;  %v55_v27 = vld [vmem:[%s1843_s1 + $0xf0] sm:$0xff] }
  0x10   :  { %v85_v56 = vld [vmem:[%s1843_s1 + $0x1e0] sm:$0xff]  ;;  %v86_v58 = vld [vmem:[%s1843_s1 + $0x1e8] sm:$0xff]  ;;  %v1286_v60 = vcombine.low %v74_v49, %v78_v50  ;;  %v52_v28 = vld [vmem:[%s1843_s1 + $0xd8] sm:$0xff]  ;;  %v1256_v30 = vcombine.low %v43_v16, %v47_v17  ;;  %v1265_v32 = vcombine.high %v51_v26, %v55_v27  ;;  %v1264_v38 = vcombine.low %v51_v26, %v55_v27 }
  0x11   :  { %v1293_v61 = vcombine.high %v81_v55, %v85_v56  ;;  %v1295_v62 = vcombine.high %v82_v57, %v86_v58  ;;  %v1292_v4 = vcombine.low %v81_v55, %v85_v56  ;;  %v1294_v5 = vcombine.low %v82_v57, %v86_v58  ;;  %v1541_v8 = vld [vmem:[%s1844_s0] sm:$0xff]   ;;  %v1574_v25 = vld [vmem:[%s1844_s0 + $0x8] sm:$0xff]   ;;  %v56_v29 = vld [vmem:[%s1843_s1 + $0xf8] sm:$0xff] }
  0x12   :  { %456 = vmatpush1.bf16.msra.mxu0 %v1260_v35  ;;  %557 = vmatpush1.bf16.msra.mxu1 %v1262_v36  ;;  %v1267_v33 = vcombine.high %v52_v28, %v56_v29  ;;  %v59_v34 = vld [vmem:[%s1843_s1 + $0x110] sm:$0xff]  ;;  %v60_v36 = vld [vmem:[%s1843_s1 + $0x118] sm:$0xff]  ;;  %v1410_v9 = vld [vmem:[%s1844_s0 + $0x28] sm:$0xff]  }
  0x13   :  { %457 = vmatprep.subr.bf16.mxu0 %v1269_v37  ;;  %558 = vmatprep.subr.bf16.mxu1 %v1271_v39  ;;  %v63_v35 = vld [vmem:[%s1843_s1 + $0x130] sm:$0xff]  ;;  %v64_v37 = vld [vmem:[%s1843_s1 + $0x138] sm:$0xff]  ;;  %v1266_v39 = vcombine.low %v52_v28, %v56_v29 }
  0x14   :  { %v1273_v40 = vcombine.high %v59_v34, %v63_v35  ;;  %v1607_v41 = vld [vmem:[%s1844_s0 + $0x10] sm:$0xff]   ;;  %v1275_v42 = vcombine.high %v60_v36, %v64_v37  ;;  %v1272_v47 = vcombine.low %v59_v34, %v63_v35  ;;  %v1274_v48 = vcombine.low %v60_v36, %v64_v37  ;;  %v1408_v58 = vld [vmem:[%s1844_s0 + $0x18] sm:$0xff]  }
  0x15   :  { %v88_v63 = vld [vmem:[%s1843_s1 + $0x1f8] sm:$0xff]  ;;  %v1411_v10 = vld [vmem:[%s1844_s0 + $0x30] ss:$0 sps:$4 sm:$0x11]  }
  0x16   :  { %458 = vmatpush1.bf16.msra.mxu0 %v1268_v43  ;;  %559 = vmatpush1.bf16.msra.mxu1 %v1270_v44  ;;  %v67_v43 = vld [vmem:[%s1843_s1 + $0x150] sm:$0xff] }
  0x17   :  { %459 = vmatprep.subr.bf16.mxu0 %v1277_v45  ;;  %560 = vmatprep.subr.bf16.mxu1 %v1279_v46  ;;  %v71_v44 = vld [vmem:[%s1843_s1 + $0x170] sm:$0xff]  ;;  %v68_v45 = vld [vmem:[%s1843_s1 + $0x158] sm:$0xff] }
  0x18   :  { %v72_v46 = vld [vmem:[%s1843_s1 + $0x178] sm:$0xff]  ;;  %v1281_v49 = vcombine.high %v67_v43, %v71_v44  ;;  %v1280_v55 = vcombine.low %v67_v43, %v71_v44 }
  0x19   :  { %v1283_v50 = vcombine.high %v68_v45, %v72_v46  ;;  %v1282_v56 = vcombine.low %v68_v45, %v72_v46 }
  0x1a   :  { %460 = vmatpush1.bf16.msra.mxu0 %v1276_v51  ;;  %561 = vmatpush1.bf16.msra.mxu1 %v1278_v52  ;;  %v75_v51 = vld [vmem:[%s1843_s1 + $0x190] sm:$0xff] }
  0x1b   :  { %461 = vmatprep.subr.bf16.mxu0 %v1285_v53  ;;  %562 = vmatprep.subr.bf16.mxu1 %v1287_v54  ;;  %v79_v52 = vld [vmem:[%s1843_s1 + $0x1b0] sm:$0xff]  ;;  %v76_v53 = vld [vmem:[%s1843_s1 + $0x198] sm:$0xff] }
  0x1c   :  { %v80_v54 = vld [vmem:[%s1843_s1 + $0x1b8] sm:$0xff]  ;;  %v1289_v57 = vcombine.high %v75_v51, %v79_v52  ;;  %v1288_v0 = vcombine.low %v75_v51, %v79_v52 }
  0x1d   :  { %v1290_v1 = vcombine.low %v76_v53, %v80_v54 }
  0x1e   :  { %462 = vmatpush1.bf16.msra.mxu0 %v1284_v59  ;;  %563 = vmatpush1.bf16.msra.mxu1 %v1286_v60  ;;  %v1291_v59 = vcombine.high %v76_v53, %v80_v54  ;;  %v83_v60 = vld [vmem:[%s1843_s1 + $0x1d0] sm:$0xff] }
  0x1f   :  { %463 = vmatprep.subr.bf16.mxu0 %v1293_v61  ;;  %564 = vmatprep.subr.bf16.mxu1 %v1295_v62  ;;  %v87_v61 = vld [vmem:[%s1843_s1 + $0x1f0] sm:$0xff]  ;;  %v84_v62 = vld [vmem:[%s1843_s1 + $0x1d8] sm:$0xff] }
  0x20   :  { %v1297_v2 = vcombine.high %v83_v60, %v87_v61 }
  0x22   :  { %464 = vmatpush1.bf16.msra.mxu0 %v1292_v4  ;;  %565 = vmatpush1.bf16.msra.mxu1 %v1294_v5  ;;  %v1299_v4 = vcombine.high %v84_v62, %v88_v63  ;;  %v1296_v5 = vcombine.low %v83_v60, %v87_v61 }
  0x23   :  { %651 = vmatprep.subr.bf16.mxu0 %v1241_v6  ;;  %752 = vmatprep.subr.bf16.mxu1 %v1243_v7  ;;  %v1298_v6 = vcombine.low %v84_v62, %v88_v63  ;;  %v1409_v7 = vld [vmem:[%s1844_s0 + $0x20] sm:$0xff]  }
  0x25   :  { %482 = vmatmul.mubr.bf16.vlgmr.msra.gmra.mrb[0].mxu0 %v1541_v8  ;;  %583 = vmatmul.mubr.bf16.vlgmr.msra.gmra.mrb[0].mxu1 %v1541_v8 }
  0x26   :  { %652 = vmatpush1.bf16.msra.mxu0 %v1240_v11  ;;  %753 = vmatpush1.bf16.msra.mxu1 %v1242_v14 }
  0x27   :  { %491 = vmatprep.mubr.bf16.mxu0 %v1412_v3  ;;  %592 = vmatprep.mubr.bf16.mxu1 %v1412_v3 }
  0x28   :  { %653 = vmatprep.subr.bf16.mxu0 %v1249_v15  ;;  %754 = vmatprep.subr.bf16.mxu1 %v1251_v18 }
  0x2a   :  { %654 = vmatpush1.bf16.msra.mxu0 %v1248_v21  ;;  %755 = vmatpush1.bf16.msra.mxu1 %v1250_v22 }
  0x2b   :  { %655 = vmatprep.subr.bf16.mxu0 %v1257_v23  ;;  %756 = vmatprep.subr.bf16.mxu1 %v1259_v24 }
  0x2d   :  { %492 = vmatmul.mubr.bf16.gmra.mrb[4].mxu0 %v1574_v25  ;;  %593 = vmatmul.mubr.bf16.gmra.mrb[4].mxu1 %v1574_v25 }
  0x2e   :  { %501 = vmatprep.mubr.bf16.mxu0 %v1412_v3  ;;  %602 = vmatprep.mubr.bf16.mxu1 %v1412_v3 }
  0x2f   :  { %656 = vmatpush1.bf16.msra.mxu0 %v1256_v30  ;;  %757 = vmatpush1.bf16.msra.mxu1 %v1258_v31 }
  0x30   :  { %657 = vmatprep.subr.bf16.mxu0 %v1265_v32  ;;  %758 = vmatprep.subr.bf16.mxu1 %v1267_v33 }
  0x33   :  { %658 = vmatpush1.bf16.msra.mxu0 %v1264_v38  ;;  %759 = vmatpush1.bf16.msra.mxu1 %v1266_v39 }
  0x34   :  { %659 = vmatprep.subr.bf16.mxu0 %v1273_v40  ;;  %760 = vmatprep.subr.bf16.mxu1 %v1275_v42 }
  0x35   :  { %502 = vmatmul.mubr.bf16.gmra.mrb[8].mxu0 %v1607_v41  ;;  %603 = vmatmul.mubr.bf16.gmra.mrb[8].mxu1 %v1607_v41 }
  0x36   :  { %511 = vmatprep.mubr.bf16.mxu0 %v1412_v3  ;;  %612 = vmatprep.mubr.bf16.mxu1 %v1412_v3 }
  0x37   :  { %660 = vmatpush1.bf16.msra.mxu0 %v1272_v47  ;;  %761 = vmatpush1.bf16.msra.mxu1 %v1274_v48 }
  0x38   :  { %661 = vmatprep.subr.bf16.mxu0 %v1281_v49  ;;  %762 = vmatprep.subr.bf16.mxu1 %v1283_v50 }
  0x3b   :  { %662 = vmatpush1.bf16.msra.mxu0 %v1280_v55  ;;  %763 = vmatpush1.bf16.msra.mxu1 %v1282_v56 }
  0x3c   :  { %663 = vmatprep.subr.bf16.mxu0 %v1289_v57  ;;  %764 = vmatprep.subr.bf16.mxu1 %v1291_v59 }
  0x3d   :  { %512 = vmatmul.mubr.bf16.gmra.mrb[12].mxu0 %v1408_v58  ;;  %613 = vmatmul.mubr.bf16.gmra.mrb[12].mxu1 %v1408_v58 }
  0x3e   :  { %521 = vmatprep.mubr.bf16.mxu0 %v1412_v3  ;;  %622 = vmatprep.mubr.bf16.mxu1 %v1412_v3 }
  0x3f   :  { %664 = vmatpush1.bf16.msra.mxu0 %v1288_v0  ;;  %765 = vmatpush1.bf16.msra.mxu1 %v1290_v1 }
  0x40   :  { %665 = vmatprep.subr.bf16.mxu0 %v1297_v2  ;;  %766 = vmatprep.subr.bf16.mxu1 %v1299_v4 }
  0x43   :  { %666 = vmatpush1.bf16.msra.mxu0 %v1296_v5  ;;  %767 = vmatpush1.bf16.msra.mxu1 %v1298_v6 }
  0x45   :  { %522 = vmatmul.mubr.bf16.gmra.mrb[16].mxu0 %v1409_v7  ;;  %623 = vmatmul.mubr.bf16.gmra.mrb[16].mxu1 %v1409_v7 }
  0x46   :  { %531 = vmatprep.mubr.bf16.mxu0 %v1412_v3  ;;  %632 = vmatprep.mubr.bf16.mxu1 %v1412_v3 }
  0x4d   :  { %532 = vmatmul.mubr.bf16.gmra.mrb[20].mxu0 %v1410_v9  ;;  %633 = vmatmul.mubr.bf16.gmra.mrb[20].mxu1 %v1410_v9 }
  0x4e   :  { %541 = vmatprep.mubr.bf16.mxu0 %v1412_v3  ;;  %642 = vmatprep.mubr.bf16.mxu1 %v1412_v3 }
  0x55   :  { %542 = vmatmul.mubr.bf16.gmra.mrb[24].mxu0 %v1411_v10  ;;  %643 = vmatmul.mubr.bf16.gmra.mrb[24].mxu1 %v1411_v10 }
  0x56   :  { %683 = vmatprep.mubr.bf16.mxu0 %v1412_v3  ;;  %784 = vmatprep.mubr.bf16.mxu1 %v1412_v3 }
  0x5d   :  { %684 = vmatmul.mubr.bf16.vlgmr.msra.gmra.mrb[28].mxu0 %v1541_v8  ;;  %785 = vmatmul.mubr.bf16.vlgmr.msra.gmra.mrb[28].mxu1 %v1541_v8 }
  0x5e   :  { %693 = vmatprep.mubr.bf16.mxu0 %v1412_v3  ;;  %794 = vmatprep.mubr.bf16.mxu1 %v1412_v3 }
  0x65   :  { %694 = vmatmul.mubr.bf16.gmra.mrb[32].mxu0 %v1574_v25  ;;  %795 = vmatmul.mubr.bf16.gmra.mrb[32].mxu1 %v1574_v25 }
  0x66   :  { %703 = vmatprep.mubr.bf16.mxu0 %v1412_v3  ;;  %804 = vmatprep.mubr.bf16.mxu1 %v1412_v3 }
  0x6d   :  { %704 = vmatmul.mubr.bf16.gmra.mrb[36].mxu0 %v1607_v41  ;;  %805 = vmatmul.mubr.bf16.gmra.mrb[36].mxu1 %v1607_v41 }
  0x6e   :  { %713 = vmatprep.mubr.bf16.mxu0 %v1412_v3  ;;  %814 = vmatprep.mubr.bf16.mxu1 %v1412_v3 }
  0x75   :  { %714 = vmatmul.mubr.bf16.gmra.mrb[40].mxu0 %v1408_v58  ;;  %815 = vmatmul.mubr.bf16.gmra.mrb[40].mxu1 %v1408_v58 }
  0x76   :  { %723 = vmatprep.mubr.bf16.mxu0 %v1412_v3  ;;  %824 = vmatprep.mubr.bf16.mxu1 %v1412_v3 }
  0x7d   :  { %724 = vmatmul.mubr.bf16.gmra.mrb[44].mxu0 %v1409_v7  ;;  %825 = vmatmul.mubr.bf16.gmra.mrb[44].mxu1 %v1409_v7 }
  0x7e   :  { %733 = vmatprep.mubr.bf16.mxu0 %v1412_v3  ;;  %834 = vmatprep.mubr.bf16.mxu1 %v1412_v3 }
  0x85   :  { %734 = vmatmul.mubr.bf16.gmra.mrb[48].mxu0 %v1410_v9  ;;  %835 = vmatmul.mubr.bf16.gmra.mrb[48].mxu1 %v1410_v9 }
  0x86   :  { %743 = vmatprep.mubr.bf16.mxu0 %v1412_v3  ;;  %844 = vmatprep.mubr.bf16.mxu1 %v1412_v3 }
  0x8d   :  { %744 = vmatmul.mubr.bf16.gmra.mrb[52].mxu0 %v1411_v10  ;;  %845 = vmatmul.mubr.bf16.gmra.mrb[52].mxu1 %v1411_v10 }
  0xf8   :  { %v483_v8 = vpop.f32.mrb[0].mxu0  ;;  %v584_v11 = vpop.f32.mrb[0].mxu1 }
  0xf9   :  { %v485_v12 = vpop.f32.mrb[1].mxu0  ;;  %v586_v14 = vpop.f32.mrb[1].mxu1 }
  0xfa   :  { %v1352_v13 = vpack.c.bf16 %v485_v12, %v483_v8  ;;  %v487_v15 = vpop.f32.mrb[2].mxu0  ;;  %v1353_v16 = vpack.c.bf16 %v586_v14, %v584_v11  ;;  %v588_v17 = vpop.f32.mrb[2].mxu1 }
  0xfb   :  { %v489_v18 = vpop.f32.mrb[3].mxu0  ;;  %v590_v20 = vpop.f32.mrb[3].mxu1 }
  0xfc   :  { %1173 = vst [vmem:[%s1845_s2] sm:$0xff] %v1352_v13  ;;  %v1356_v19 = vpack.c.bf16 %v489_v18, %v487_v15  ;;  %1174 = vst [vmem:[%s1845_s2 + $0x8] sm:$0xff] %v1353_v16  ;;  %v1357_v3 = vpack.c.bf16 %v590_v20, %v588_v17 }
  0xfe   :  { %1177 = vst [vmem:[%s1845_s2 + $0x20] sm:$0xff] %v1356_v19  ;;  %1178 = vst [vmem:[%s1845_s2 + $0x28] sm:$0xff] %v1357_v3 }
 0x100   :  { %v493_v21 = vpop.f32.mrb[4].mxu0  ;;  %v594_v22 = vpop.f32.mrb[4].mxu1 }
 0x101   :  { %v495_v23 = vpop.f32.mrb[5].mxu0  ;;  %v596_v25 = vpop.f32.mrb[5].mxu1 }
 0x102   :  { %v1360_v24 = vpack.c.bf16 %v495_v23, %v493_v21  ;;  %v497_v26 = vpop.f32.mrb[6].mxu0  ;;  %v1361_v27 = vpack.c.bf16 %v596_v25, %v594_v22  ;;  %v598_v28 = vpop.f32.mrb[6].mxu1 }
 0x103   :  { %v499_v29 = vpop.f32.mrb[7].mxu0  ;;  %v600_v31 = vpop.f32.mrb[7].mxu1 }
 0x104   :  { %1181 = vst [vmem:[%s1845_s2 + $0x40] sm:$0xff] %v1360_v24  ;;  %v1364_v30 = vpack.c.bf16 %v499_v29, %v497_v26  ;;  %1182 = vst [vmem:[%s1845_s2 + $0x48] sm:$0xff] %v1361_v27  ;;  %v1365_v32 = vpack.c.bf16 %v600_v31, %v598_v28 }
 0x106   :  { %1185 = vst [vmem:[%s1845_s2 + $0x60] sm:$0xff] %v1364_v30  ;;  %1186 = vst [vmem:[%s1845_s2 + $0x68] sm:$0xff] %v1365_v32 }
 0x108   :  { %v503_v33 = vpop.f32.mrb[8].mxu0  ;;  %v604_v34 = vpop.f32.mrb[8].mxu1 }
 0x109   :  { %v505_v35 = vpop.f32.mrb[9].mxu0  ;;  %v606_v37 = vpop.f32.mrb[9].mxu1 }
 0x10a   :  { %v1368_v36 = vpack.c.bf16 %v505_v35, %v503_v33  ;;  %v507_v38 = vpop.f32.mrb[10].mxu0  ;;  %v1369_v39 = vpack.c.bf16 %v606_v37, %v604_v34  ;;  %v608_v40 = vpop.f32.mrb[10].mxu1 }
 0x10b   :  { %v509_v41 = vpop.f32.mrb[11].mxu0  ;;  %v610_v43 = vpop.f32.mrb[11].mxu1 }
 0x10c   :  { %1189 = vst [vmem:[%s1845_s2 + $0x80] sm:$0xff] %v1368_v36  ;;  %v1372_v42 = vpack.c.bf16 %v509_v41, %v507_v38  ;;  %1190 = vst [vmem:[%s1845_s2 + $0x88] sm:$0xff] %v1369_v39  ;;  %v1373_v44 = vpack.c.bf16 %v610_v43, %v608_v40 }
 0x10e   :  { %1193 = vst [vmem:[%s1845_s2 + $0xa0] sm:$0xff] %v1372_v42  ;;  %1194 = vst [vmem:[%s1845_s2 + $0xa8] sm:$0xff] %v1373_v44 }
 0x110   :  { %v513_v45 = vpop.f32.mrb[12].mxu0  ;;  %v614_v46 = vpop.f32.mrb[12].mxu1 }
 0x111   :  { %v515_v47 = vpop.f32.mrb[13].mxu0  ;;  %v616_v49 = vpop.f32.mrb[13].mxu1 }
 0x112   :  { %v1376_v48 = vpack.c.bf16 %v515_v47, %v513_v45  ;;  %v517_v50 = vpop.f32.mrb[14].mxu0  ;;  %v1377_v51 = vpack.c.bf16 %v616_v49, %v614_v46  ;;  %v618_v52 = vpop.f32.mrb[14].mxu1 }
 0x113   :  { %v519_v53 = vpop.f32.mrb[15].mxu0  ;;  %v620_v55 = vpop.f32.mrb[15].mxu1 }
 0x114   :  { %1197 = vst [vmem:[%s1845_s2 + $0xc0] sm:$0xff] %v1376_v48  ;;  %v1380_v54 = vpack.c.bf16 %v519_v53, %v517_v50  ;;  %1198 = vst [vmem:[%s1845_s2 + $0xc8] sm:$0xff] %v1377_v51  ;;  %v1381_v56 = vpack.c.bf16 %v620_v55, %v618_v52 }
 0x116   :  { %1201 = vst [vmem:[%s1845_s2 + $0xe0] sm:$0xff] %v1380_v54  ;;  %1202 = vst [vmem:[%s1845_s2 + $0xe8] sm:$0xff] %v1381_v56 }
 0x118   :  { %v523_v57 = vpop.f32.mrb[16].mxu0  ;;  %v624_v58 = vpop.f32.mrb[16].mxu1 }
 0x119   :  { %v525_v59 = vpop.f32.mrb[17].mxu0  ;;  %v626_v61 = vpop.f32.mrb[17].mxu1 }
 0x11a   :  { %v1384_v60 = vpack.c.bf16 %v525_v59, %v523_v57  ;;  %v527_v62 = vpop.f32.mrb[18].mxu0  ;;  %v1385_v63 = vpack.c.bf16 %v626_v61, %v624_v58  ;;  %v628_v0 = vpop.f32.mrb[18].mxu1 }
 0x11b   :  { %v529_v1 = vpop.f32.mrb[19].mxu0  ;;  %v630_v4 = vpop.f32.mrb[19].mxu1 }
 0x11c   :  { %1205 = vst [vmem:[%s1845_s2 + $0x100] sm:$0xff] %v1384_v60  ;;  %v1388_v2 = vpack.c.bf16 %v529_v1, %v527_v62  ;;  %1206 = vst [vmem:[%s1845_s2 + $0x108] sm:$0xff] %v1385_v63  ;;  %v1389_v5 = vpack.c.bf16 %v630_v4, %v628_v0 }
 0x11e   :  { %1209 = vst [vmem:[%s1845_s2 + $0x120] sm:$0xff] %v1388_v2  ;;  %1210 = vst [vmem:[%s1845_s2 + $0x128] sm:$0xff] %v1389_v5 }
 0x120   :  { %v533_v6 = vpop.f32.mrb[20].mxu0  ;;  %v634_v7 = vpop.f32.mrb[20].mxu1 }
 0x121   :  { %v535_v9 = vpop.f32.mrb[21].mxu0  ;;  %v636_v8 = vpop.f32.mrb[21].mxu1 }
 0x122   :  { %v1392_v10 = vpack.c.bf16 %v535_v9, %v533_v6  ;;  %v537_v11 = vpop.f32.mrb[22].mxu0  ;;  %v1393_v12 = vpack.c.bf16 %v636_v8, %v634_v7  ;;  %v638_v13 = vpop.f32.mrb[22].mxu1 }
 0x123   :  { %v539_v14 = vpop.f32.mrb[23].mxu0  ;;  %v640_v16 = vpop.f32.mrb[23].mxu1 }
 0x124   :  { %1213 = vst [vmem:[%s1845_s2 + $0x140] sm:$0xff] %v1392_v10  ;;  %v1396_v15 = vpack.c.bf16 %v539_v14, %v537_v11  ;;  %1214 = vst [vmem:[%s1845_s2 + $0x148] sm:$0xff] %v1393_v12  ;;  %v1397_v17 = vpack.c.bf16 %v640_v16, %v638_v13 }
 0x126   :  { %1217 = vst [vmem:[%s1845_s2 + $0x160] sm:$0xff] %v1396_v15  ;;  %1218 = vst [vmem:[%s1845_s2 + $0x168] sm:$0xff] %v1397_v17 }
 0x128   :  { %v543_v18 = vpop.f32.mrb[24].mxu0  ;;  %v644_v19 = vpop.f32.mrb[24].mxu1 }
 0x129   :  { %v545_v20 = vpop.f32.mrb[25].mxu0  ;;  %v646_v21 = vpop.f32.mrb[25].mxu1 }
 0x12a   :  { %v1400_v3 = vpack.c.bf16 %v545_v20, %v543_v18  ;;  %v547_v22 = vpop.f32.mrb[26].mxu0  ;;  %v1401_v23 = vpack.c.bf16 %v646_v21, %v644_v19  ;;  %v648_v24 = vpop.f32.mrb[26].mxu1 }
 0x12b   :  { %v548_v25 = vpop.f32.mrb[27].mxu0  ;;  %v649_v26 = vpop.f32.mrb[27].mxu1 }
 0x12c   :  { %1221 = vst [vmem:[%s1845_s2 + $0x180] sm:$0x11] %v1400_v3  ;;  %1222 = vst [vmem:[%s1845_s2 + $0x188] sm:$0x11] %v1401_v23 }
 0x130   :  { %v685_v27 = vpop.f32.mrb[28].mxu0  ;;  %v786_v28 = vpop.f32.mrb[28].mxu1 }
 0x131   :  { %v687_v29 = vpop.f32.mrb[29].mxu0  ;;  %v788_v31 = vpop.f32.mrb[29].mxu1 }
 0x132   :  { %v1354_v30 = vpack.c.bf16 %v687_v29, %v685_v27  ;;  %v689_v32 = vpop.f32.mrb[30].mxu0  ;;  %v1355_v33 = vpack.c.bf16 %v788_v31, %v786_v28  ;;  %v790_v34 = vpop.f32.mrb[30].mxu1 }
 0x133   :  { %v691_v35 = vpop.f32.mrb[31].mxu0  ;;  %v792_v37 = vpop.f32.mrb[31].mxu1 }
 0x134   :  { %1175 = vst [vmem:[%s1845_s2 + $0x10] sm:$0xff] %v1354_v30  ;;  %v1358_v36 = vpack.c.bf16 %v691_v35, %v689_v32  ;;  %1176 = vst [vmem:[%s1845_s2 + $0x18] sm:$0xff] %v1355_v33  ;;  %v1359_v38 = vpack.c.bf16 %v792_v37, %v790_v34 }
 0x136   :  { %1179 = vst [vmem:[%s1845_s2 + $0x30] sm:$0xff] %v1358_v36  ;;  %1180 = vst [vmem:[%s1845_s2 + $0x38] sm:$0xff] %v1359_v38 }
 0x138   :  { %v695_v39 = vpop.f32.mrb[32].mxu0  ;;  %v796_v40 = vpop.f32.mrb[32].mxu1 }
 0x139   :  { %v697_v41 = vpop.f32.mrb[33].mxu0  ;;  %v798_v43 = vpop.f32.mrb[33].mxu1 }
 0x13a   :  { %v1362_v42 = vpack.c.bf16 %v697_v41, %v695_v39  ;;  %v699_v44 = vpop.f32.mrb[34].mxu0  ;;  %v1363_v45 = vpack.c.bf16 %v798_v43, %v796_v40  ;;  %v800_v46 = vpop.f32.mrb[34].mxu1 }
 0x13b   :  { %v701_v47 = vpop.f32.mrb[35].mxu0  ;;  %v802_v49 = vpop.f32.mrb[35].mxu1 }
 0x13c   :  { %1183 = vst [vmem:[%s1845_s2 + $0x50] sm:$0xff] %v1362_v42  ;;  %v1366_v48 = vpack.c.bf16 %v701_v47, %v699_v44  ;;  %1184 = vst [vmem:[%s1845_s2 + $0x58] sm:$0xff] %v1363_v45  ;;  %v1367_v50 = vpack.c.bf16 %v802_v49, %v800_v46 }
 0x13e   :  { %1187 = vst [vmem:[%s1845_s2 + $0x70] sm:$0xff] %v1366_v48  ;;  %1188 = vst [vmem:[%s1845_s2 + $0x78] sm:$0xff] %v1367_v50 }
 0x140   :  { %v705_v51 = vpop.f32.mrb[36].mxu0  ;;  %v806_v52 = vpop.f32.mrb[36].mxu1 }
 0x141   :  { %v707_v53 = vpop.f32.mrb[37].mxu0  ;;  %v808_v55 = vpop.f32.mrb[37].mxu1 }
 0x142   :  { %v1370_v54 = vpack.c.bf16 %v707_v53, %v705_v51  ;;  %v709_v56 = vpop.f32.mrb[38].mxu0  ;;  %v1371_v57 = vpack.c.bf16 %v808_v55, %v806_v52  ;;  %v810_v58 = vpop.f32.mrb[38].mxu1 }
 0x143   :  { %v711_v59 = vpop.f32.mrb[39].mxu0  ;;  %v812_v61 = vpop.f32.mrb[39].mxu1 }
 0x144   :  { %1191 = vst [vmem:[%s1845_s2 + $0x90] sm:$0xff] %v1370_v54  ;;  %v1374_v60 = vpack.c.bf16 %v711_v59, %v709_v56  ;;  %1192 = vst [vmem:[%s1845_s2 + $0x98] sm:$0xff] %v1371_v57  ;;  %v1375_v62 = vpack.c.bf16 %v812_v61, %v810_v58 }
 0x146   :  { %1195 = vst [vmem:[%s1845_s2 + $0xb0] sm:$0xff] %v1374_v60  ;;  %1196 = vst [vmem:[%s1845_s2 + $0xb8] sm:$0xff] %v1375_v62 }
 0x148   :  { %v715_v63 = vpop.f32.mrb[40].mxu0  ;;  %v816_v0 = vpop.f32.mrb[40].mxu1 }
 0x149   :  { %v717_v1 = vpop.f32.mrb[41].mxu0  ;;  %v818_v4 = vpop.f32.mrb[41].mxu1 }
 0x14a   :  { %v1378_v2 = vpack.c.bf16 %v717_v1, %v715_v63  ;;  %v719_v5 = vpop.f32.mrb[42].mxu0  ;;  %v1379_v6 = vpack.c.bf16 %v818_v4, %v816_v0  ;;  %v820_v7 = vpop.f32.mrb[42].mxu1 }
 0x14b   :  { %v721_v9 = vpop.f32.mrb[43].mxu0  ;;  %v822_v8 = vpop.f32.mrb[43].mxu1 }
 0x14c   :  { %1199 = vst [vmem:[%s1845_s2 + $0xd0] sm:$0xff] %v1378_v2  ;;  %v1382_v10 = vpack.c.bf16 %v721_v9, %v719_v5  ;;  %1200 = vst [vmem:[%s1845_s2 + $0xd8] sm:$0xff] %v1379_v6  ;;  %v1383_v11 = vpack.c.bf16 %v822_v8, %v820_v7 }
 0x14e   :  { %1203 = vst [vmem:[%s1845_s2 + $0xf0] sm:$0xff] %v1382_v10  ;;  %1204 = vst [vmem:[%s1845_s2 + $0xf8] sm:$0xff] %v1383_v11 }
 0x150   :  { %v725_v12 = vpop.f32.mrb[44].mxu0  ;;  %v826_v13 = vpop.f32.mrb[44].mxu1 }
 0x151   :  { %v727_v14 = vpop.f32.mrb[45].mxu0  ;;  %v828_v16 = vpop.f32.mrb[45].mxu1 }
 0x152   :  { %v1386_v15 = vpack.c.bf16 %v727_v14, %v725_v12  ;;  %v729_v17 = vpop.f32.mrb[46].mxu0  ;;  %v1387_v18 = vpack.c.bf16 %v828_v16, %v826_v13  ;;  %v830_v19 = vpop.f32.mrb[46].mxu1 }
 0x153   :  { %v731_v20 = vpop.f32.mrb[47].mxu0  ;;  %v832_v21 = vpop.f32.mrb[47].mxu1 }
 0x154   :  { %1207 = vst [vmem:[%s1845_s2 + $0x110] sm:$0xff] %v1386_v15  ;;  %v1390_v3 = vpack.c.bf16 %v731_v20, %v729_v17  ;;  %1208 = vst [vmem:[%s1845_s2 + $0x118] sm:$0xff] %v1387_v18  ;;  %v1391_v22 = vpack.c.bf16 %v832_v21, %v830_v19 }
 0x156   :  { %1211 = vst [vmem:[%s1845_s2 + $0x130] sm:$0xff] %v1390_v3  ;;  %1212 = vst [vmem:[%s1845_s2 + $0x138] sm:$0xff] %v1391_v22 }
 0x158   :  { %v735_v23 = vpop.f32.mrb[48].mxu0  ;;  %v836_v24 = vpop.f32.mrb[48].mxu1 }
 0x159   :  { %v737_v25 = vpop.f32.mrb[49].mxu0  ;;  %v838_v27 = vpop.f32.mrb[49].mxu1 }
 0x15a   :  { %v1394_v26 = vpack.c.bf16 %v737_v25, %v735_v23  ;;  %v739_v28 = vpop.f32.mrb[50].mxu0  ;;  %v1395_v29 = vpack.c.bf16 %v838_v27, %v836_v24  ;;  %v840_v30 = vpop.f32.mrb[50].mxu1 }
 0x15b   :  { %v741_v31 = vpop.f32.mrb[51].mxu0  ;;  %v842_v33 = vpop.f32.mrb[51].mxu1 }
 0x15c   :  { %1215 = vst [vmem:[%s1845_s2 + $0x150] sm:$0xff] %v1394_v26  ;;  %v1398_v32 = vpack.c.bf16 %v741_v31, %v739_v28  ;;  %1216 = vst [vmem:[%s1845_s2 + $0x158] sm:$0xff] %v1395_v29  ;;  %v1399_v34 = vpack.c.bf16 %v842_v33, %v840_v30 }
 0x15e   :  { %1219 = vst [vmem:[%s1845_s2 + $0x170] sm:$0xff] %v1398_v32  ;;  %1220 = vst [vmem:[%s1845_s2 + $0x178] sm:$0xff] %v1399_v34 }
 0x160   :  { %v745_v35 = vpop.f32.mrb[52].mxu0  ;;  %v846_v36 = vpop.f32.mrb[52].mxu1 }
 0x161   :  { %v747_v37 = vpop.f32.mrb[53].mxu0  ;;  %v848_v39 = vpop.f32.mrb[53].mxu1 }
 0x162   :  { %v1402_v38 = vpack.c.bf16 %v747_v37, %v745_v35  ;;  %v749_v40 = vpop.f32.mrb[54].mxu0  ;;  %v1403_v41 = vpack.c.bf16 %v848_v39, %v846_v36  ;;  %v850_v42 = vpop.f32.mrb[54].mxu1 }
 0x163   :  { %v750_v43 = vpop.f32.mrb[55].mxu0  ;;  %v851_v44 = vpop.f32.mrb[55].mxu1 }
 0x164   :  { %1223 = vst [vmem:[%s1845_s2 + $0x190] sm:$0x11] %v1402_v38  ;;  %1224 = vst [vmem:[%s1845_s2 + $0x198] sm:$0x11] %v1403_v41 }

// kernel: generator_forward.7
= control target key start
LH: loop header
LB: loop body
LE: loop exit
PB: predicated region body
PF: predicated region fallthrough
CT: control target
= control target key end

     0   :  { %9 = vsyncpa [#allocation3], 0  ;;  %s6323_s0 = inlined_call_operand.vmem [shape: bf16[2,1024], index: 0, kind: input, shape index: {}]   ;;  %s6324_s1 = inlined_call_operand.hbm [shape: bf16[1024,6272], index: 1, kind: input, shape index: {}]   ;;  %s6325_s2 = inlined_call_operand.vmem [shape: f32[1,6272], index: 2, kind: input, shape index: {}]   ;;  %s6326_s3 = inlined_call_operand.vmem [shape: f32[1,6272], index: 3, kind: input, shape index: {}]   ;;  %s6327_s4 = inlined_call_operand.vmem [shape: bf16[2,6272], index: 4, kind: output, shape index: {}]  }
   0x1   :  { %11 = vsyncpa [#allocation3 + $0x1], 0  ;;  %s5599_s15 = smov 0   ;;  %s5601_s16 = smov 0  }
   0x2   :  { %s5603_s17 = smov 0   ;;  %s5605_s18 = smov 0  }
   0x3 LB: > { %s4221_s19 = sadd.s32 4294967295, %s5567_s18   ;;  %s5619_s20 = sadd.s32 1, %s5567_s18   ;;  %s5567_s18 = sphi %s5605_s18, %s6333_s18   ;;  %s5563_s17 = sphi %s5603_s17, %s6332_s17   ;;  %s5559_s16 = sphi %s5601_s16, %s6331_s16   ;;  %s5555_s15 = sphi %s5599_s15, %s6330_s15  }
   0x4   : > { %s42_s21 = ssub.s32 %s5567_s18, %s5619_s20  ;;  %s45_s22 = sadd.s32 1, %s5563_s17 }
   0x5   : > { %p43_p0 = scmp.eq.s32.totalorder %s42_s21, 0  ;;  %p52_p1 = scmp.ne.s32.totalorder %s5563_s17, %s5559_s16 }
   0x6   : > { %p53_p2 = scmp.eq.s32.totalorder %s5567_s18, 0  ;;  %p58_p3 = scmp.ne.s32.totalorder %s5559_s16, %s5555_s15 }
   0x7   : > { %s5629_s23 = scalar_select %p43_p0, %s5563_s17, %s45_s22  }
   0x8   : > { %p54_p4 = por %p53_p2, %p52_p1  ;;  %p59_p5 = scmp.eq.s32.totalorder %s4221_s19, 0 }
   0x9   : > { %p4811_p6 = scmp.lt.s32.totalorder %s5567_s18, 7  ;;  %s163_s25 = sand.u32 1, %s5563_s17  }
   0xa   : > { %p5634_p7 = por %p59_p5, %p58_p3  ;;  %s4803_s26 = smul.u32 3584, %s163_s25 }
   0xb   : > { %s4680_s27 = smul.u32 448, %s5567_s18  ;;  %p5640_p8 = pnand %p4811_p6, %p54_p4 }
   0xc   : > { %s167_s6 = scalar_lea.vmem [#allocation2], %s4803_s26  ;;  %s5651_s8 = scalar_lea.sflag [#allocation3], %s163_s25 }
   0xd   : > { %s5647_s5 = scalar_lea.hbm %s6324_s1, %s4680_s27  ;;  %s174_s7 = sshll.u32 %s167_s6, 4  ;;  %s5649_s7 = int_to_ptr.vmem [resolvable:$true] %s174_s7 }
   0xe   : > { %s5503_s9 = scalar_lea.hbm %s5647_s5, 57344  ;;  %p5505_p10 = pneg %p5640_p8 }
   0xf   : > { %p5504_p9 = scmp.ne.s32.totalorder %s5647_s5, %s5503_s9  ;;  %s5508_s12 = scalar_lea.hbm %s6324_s1, 401408 }
  0x10   : > { %p5509_p13 = scmp.lt.u32.totalorder %s5647_s5, %s6324_s1  ;;  %p5510_p0 = scmp.lt.u32.totalorder %s5508_s12, %s5503_s9 }
  0x11   : > { %p5506_p11 = pnand %p5505_p10, %p5504_p9  ;;  %p5512_p2 = scmp.lt.u32.totalorder %s5503_s9, %s5647_s5 }
  0x12   : > { %p5511_p1 = por %p5510_p0, %p5509_p13 }
  0x13   : > { %p5507_p12 = pneg %p5506_p11 }
  0x14   : > { %p5513_p3 = por %p5512_p2, %p5511_p1 }
  0x16   : > { %p5514_p4 = pnand %p5513_p3, %p5507_p12 }
  0x18   : > { %5517 = shalt.err (!%p5514_p4)
}
  0x19   : > { %s5518_s15 = scalar_lea.vmem %s5649_s7, 57344  ;;  %s5569_s21 = smov [#allocation2]  }
  0x1a   : > { %p5519_p5 = scmp.ne.s32.totalorder %s5649_s7, %s5518_s15  ;;  %s5523_s22 = sshll.u32 %s5569_s21, 4  ;;  %s5524_s22 = int_to_ptr.vmem [resolvable:$false] %s5523_s22 }
  0x1b   : > { %s5525_s25 = scalar_lea.vmem %s5524_s22, 114688  ;;  %p5526_p11 = scmp.lt.s32.totalorder %s5649_s7, %s5524_s22 }
  0x1c   : > { %p5521_p6 = pnand %p5519_p5, %p5505_p10  ;;  %p5527_p13 = scmp.lt.s32.totalorder %s5525_s25, %s5518_s15 }
  0x1e   : > { %p5522_p9 = pneg %p5521_p6  ;;  %p5528_p0 = por %p5527_p13, %p5526_p11 }
  0x20   : > { %p5529_p1 = pnand %p5528_p0, %p5522_p9 }
  0x22   : > { %5532 = shalt.err (!%p5529_p1)
}
  0x23   : > { %s5570_s26 = smov 3136   ;;  %s5571_s27 = smov 448  }
  0x24   : > { %s5572_s29 = smov 28   ;;  %p4226_p10 = scmp.ge.s32.totalorder %s5567_s18, 1 }
  0x25   : > { %4810 = dma.hbm_to_vmem [thread:$0]  (!%p5640_p8), %s5647_s5, 57344, %s5649_s7, %s5651_s8, %s5570_s26, %s5571_s27, %s5572_s29  }
  0x26   : > { %p198_p12 = scmp.lt.s32.totalorder %s5567_s18, 8 }
  0x28   : > { %p199_p2 = pnand %p4226_p10, %p198_p12 }
  0x29   : > { %s204_s30 = sand.u32 (!%p199_p2), 1, %s5559_s16  }
  0x2a   : > { %202 = sbr.rel (%p199_p2) target bundleno = 794 (0x31a), region = 36  ;;  %s205_s9 = scalar_lea.sflag (!%p199_p2), [#allocation3], %s204_s30 }
  0x2b   : > { %s4804_s6 = smul.u32 (!%p199_p2), 3584, %s204_s30 }
  0x2d   : > { %s5682_s10 = scalar_lea.vmem (!%p199_p2), [#allocation2], %s4804_s6 }
  0x31   : > { %5550 = dma.done.wait (%p5634_p7), %s205_s9, 57344  }
  0x32   : > { %5552 = vsyncadd (%p5634_p7), %s205_s9, 4294909952  ;;  %v4848_v0 = vld [vmem:[%s5682_s10 + $0x4] ss:$28 sps:$4 sm:$0xff]   ;;  %v4854_v4 = vld [vmem:[%s5682_s10 + $0x3c] ss:$28 sps:$4 sm:$0xff]   ;;  %v775_v38 = vlaneseq  ;;  %vm3784_vm0 = vcmask 1041408  }
  0x33   : > { %v4850_v1 = vld [vmem:[%s5682_s10 + $0x384] ss:$28 sps:$4 sm:$0xff]   ;;  %3132 = vmatprep.subr.bf16.mxu1 %v4848_v0  ;;  %v4856_v5 = vld [vmem:[%s5682_s10 + $0x3bc] ss:$28 sps:$4 sm:$0xff]   ;;  %v4860_v8 = vld [vmem:[%s5682_s10 + $0x74] ss:$28 sps:$4 sm:$0xff]  }
  0x34   : > { %v4852_v2 = vld [vmem:[%s5682_s10] ss:$28 sps:$4 sm:$0xff]   ;;  %3173 = vmatprep.subr.bf16.mxu0 %v4850_v1  ;;  %v4858_v6 = vld [vmem:[%s5682_s10 + $0x38] ss:$28 sps:$4 sm:$0xff]   ;;  %v4864_v10 = vld [vmem:[%s5682_s10 + $0x70] ss:$28 sps:$4 sm:$0xff]  }
  0x35   : > { %v4853_v3 = vld [vmem:[%s5682_s10 + $0x380] ss:$28 sps:$4 sm:$0xff]   ;;  %3133 = vmatpush1.bf16.msra.mxu1 %v4852_v2  ;;  %v4859_v7 = vld [vmem:[%s5682_s10 + $0x3b8] ss:$28 sps:$4 sm:$0xff]   ;;  %v4865_v11 = vld [vmem:[%s5682_s10 + $0x3f0] ss:$28 sps:$4 sm:$0xff]  }
  0x36   : > { %3174 = vmatpush1.bf16.msra.mxu0 %v4853_v3  ;;  %3134 = vmatprep.subr.bf16.mxu1 %v4854_v4  ;;  %v4862_v9 = vld [vmem:[%s5682_s10 + $0x3f4] ss:$28 sps:$4 sm:$0xff]   ;;  %v4866_v12 = vld [vmem:[%s5682_s10 + $0xac] ss:$28 sps:$4 sm:$0xff]   ;;  %v4872_v16 = vld [vmem:[%s5682_s10 + $0xe4] ss:$28 sps:$4 sm:$0xff]  }
  0x37   : > { %3175 = vmatprep.subr.bf16.mxu0 %v4856_v5  ;;  %v4868_v13 = vld [vmem:[%s5682_s10 + $0x42c] ss:$28 sps:$4 sm:$0xff]   ;;  %v4874_v17 = vld [vmem:[%s5682_s10 + $0x464] ss:$28 sps:$4 sm:$0xff]   ;;  %v4878_v20 = vld [vmem:[%s5682_s10 + $0x11c] ss:$28 sps:$4 sm:$0xff]  }
  0x38   : > { %v4870_v14 = vld [vmem:[%s5682_s10 + $0xa8] ss:$28 sps:$4 sm:$0xff]   ;;  %v4876_v18 = vld [vmem:[%s5682_s10 + $0xe0] ss:$28 sps:$4 sm:$0xff]   ;;  %v4882_v22 = vld [vmem:[%s5682_s10 + $0x118] ss:$28 sps:$4 sm:$0xff]  }
  0x39   : > { %3135 = vmatpush1.bf16.msra.mxu1 %v4858_v6  ;;  %v4871_v15 = vld [vmem:[%s5682_s10 + $0x428] ss:$28 sps:$4 sm:$0xff]   ;;  %v4877_v19 = vld [vmem:[%s5682_s10 + $0x460] ss:$28 sps:$4 sm:$0xff]   ;;  %v4883_v23 = vld [vmem:[%s5682_s10 + $0x498] ss:$28 sps:$4 sm:$0xff]  }
  0x3a   : > { %3176 = vmatpush1.bf16.msra.mxu0 %v4859_v7  ;;  %3136 = vmatprep.subr.bf16.mxu1 %v4860_v8  ;;  %v4880_v21 = vld [vmem:[%s5682_s10 + $0x49c] ss:$28 sps:$4 sm:$0xff]   ;;  %v4884_v24 = vld [vmem:[%s5682_s10 + $0x154] ss:$28 sps:$4 sm:$0xff]   ;;  %v4890_v28 = vld [vmem:[%s5682_s10 + $0x18c] ss:$28 sps:$4 sm:$0xff]  }
  0x3b   : > { %3177 = vmatprep.subr.bf16.mxu0 %v4862_v9  ;;  %v4886_v25 = vld [vmem:[%s5682_s10 + $0x4d4] ss:$28 sps:$4 sm:$0xff]   ;;  %v4892_v29 = vld [vmem:[%s5682_s10 + $0x50c] ss:$28 sps:$4 sm:$0xff]   ;;  %v4896_v32 = vld [vmem:[%s5682_s10 + $0x1c4] ss:$28 sps:$4 sm:$0xff]  }
  0x3c   : > { %v4888_v26 = vld [vmem:[%s5682_s10 + $0x150] ss:$28 sps:$4 sm:$0xff]   ;;  %v4894_v30 = vld [vmem:[%s5682_s10 + $0x188] ss:$28 sps:$4 sm:$0xff]   ;;  %v4900_v34 = vld [vmem:[%s5682_s10 + $0x1c0] ss:$28 sps:$4 sm:$0xff]  }
  0x3d   : > { %3137 = vmatpush1.bf16.msra.mxu1 %v4864_v10  ;;  %v4889_v27 = vld [vmem:[%s5682_s10 + $0x4d0] ss:$28 sps:$4 sm:$0xff]   ;;  %v4895_v31 = vld [vmem:[%s5682_s10 + $0x508] ss:$28 sps:$4 sm:$0xff]   ;;  %v4901_v35 = vld [vmem:[%s5682_s10 + $0x540] ss:$28 sps:$4 sm:$0xff]  }
  0x3e   : > { %3178 = vmatpush1.bf16.msra.mxu0 %v4865_v11  ;;  %3138 = vmatprep.subr.bf16.mxu1 %v4866_v12  ;;  %v4898_v33 = vld [vmem:[%s5682_s10 + $0x544] ss:$28 sps:$4 sm:$0xff]   ;;  %v5573_v36 = vmov 1966171168   ;;  %v4902_v39 = vld [vmem:[%s5682_s10 + $0x1fc] ss:$28 sps:$4 sm:$0xff]  }
  0x3f   : > { %3179 = vmatprep.subr.bf16.mxu0 %v4868_v13  ;;  %v773_v37 = vunpack.c.l.s4 %v5573_v36  ;;  %v4904_v40 = vld [vmem:[%s5682_s10 + $0x57c] ss:$28 sps:$4 sm:$0xff]   ;;  %v5727_v43 = vshrl.u32 %v775_v38, 7  ;;  %v4908_v45 = vld [vmem:[%s5682_s10 + $0x234] ss:$28 sps:$4 sm:$0xff]   ;;  %v257_v52 = vld [vmem:[%s6323_s0] sm:$0xff] }
  0x40   : > { %v4906_v41 = vld [vmem:[%s5682_s10 + $0x1f8] ss:$28 sps:$4 sm:$0xff]   ;;  %v4912_v47 = vld [vmem:[%s5682_s10 + $0x230] ss:$28 sps:$4 sm:$0xff]   ;;  %v4918_v53 = vld [vmem:[%s5682_s10 + $0x268] ss:$28 sps:$4 sm:$0xff]   ;;  %v771_v5 = vcombine.high %v257_v52, %v257_v52 }
  0x41   : > { %3139 = vmatpush1.bf16.msra.mxu1 %v4870_v14  ;;  %v774_v42 = vunpack.c.0.s8 %v773_v37  ;;  %v4907_v44 = vld [vmem:[%s5682_s10 + $0x578] ss:$28 sps:$4 sm:$0xff]   ;;  %v4913_v48 = vld [vmem:[%s5682_s10 + $0x5b0] ss:$28 sps:$4 sm:$0xff]   ;;  %v4919_v55 = vld [vmem:[%s5682_s10 + $0x5e8] ss:$28 sps:$4 sm:$0xff]  }
  0x42   : > { %3180 = vmatpush1.bf16.msra.mxu0 %v4871_v15  ;;  %3140 = vmatprep.subr.bf16.mxu1 %v4872_v16  ;;  %v4910_v46 = vld [vmem:[%s5682_s10 + $0x5b4] ss:$28 sps:$4 sm:$0xff]   ;;  %v4914_v50 = vld [vmem:[%s5682_s10 + $0x26c] ss:$28 sps:$4 sm:$0xff]   ;;  %v4920_v56 = vld [vmem:[%s5682_s10 + $0x2a4] ss:$28 sps:$4 sm:$0xff]  }
  0x43   : > { %3181 = vmatprep.subr.bf16.mxu0 %v4874_v17  ;;  %v5735_v49 = vsub.s32 %v774_v42, %v5727_v43  ;;  %v4916_v51 = vld [vmem:[%s5682_s10 + $0x5ec] ss:$28 sps:$4 sm:$0xff]   ;;  %v4922_v57 = vld [vmem:[%s5682_s10 + $0x624] ss:$28 sps:$4 sm:$0xff]   ;;  %v4926_v62 = vld [vmem:[%s5682_s10 + $0x2dc] ss:$28 sps:$4 sm:$0xff]  }
  0x44   : > { %v4924_v59 = vld [vmem:[%s5682_s10 + $0x2a0] ss:$28 sps:$4 sm:$0xff]   ;;  %v4930_v1 = vld [vmem:[%s5682_s10 + $0x2d8] ss:$28 sps:$4 sm:$0xff]   ;;  %v4936_v6 = vld [vmem:[%s5682_s10 + $0x310] ss:$28 sps:$4 sm:$0xff]  }
  0x45   : > { %3141 = vmatpush1.bf16.msra.mxu1 %v4876_v18  ;;  %v778_v54 = vrot.slane %v257_v52, %v5735_v49  ;;  %v4925_v61 = vld [vmem:[%s5682_s10 + $0x620] ss:$28 sps:$4 sm:$0xff]   ;;  %v4931_v2 = vld [vmem:[%s5682_s10 + $0x658] ss:$28 sps:$4 sm:$0xff]   ;;  %v4937_v7 = vld [vmem:[%s5682_s10 + $0x690] ss:$28 sps:$4 sm:$0xff]   ;;  %v5769_v10 = vrot.slane %v771_v5, %v5735_v49 }
  0x46   : > { %3182 = vmatpush1.bf16.msra.mxu0 %v4877_v19  ;;  %3142 = vmatprep.subr.bf16.mxu1 %v4878_v20  ;;  %v4928_v63 = vld [vmem:[%s5682_s10 + $0x65c] ss:$28 sps:$4 sm:$0xff]   ;;  %v4932_v3 = vld [vmem:[%s5682_s10 + $0x314] ss:$28 sps:$4 sm:$0xff]   ;;  %v4938_v8 = vld [vmem:[%s5682_s10 + $0x34c] ss:$28 sps:$4 sm:$0xff]  }
  0x47   : > { %3183 = vmatprep.subr.bf16.mxu0 %v4880_v21  ;;  %v786_v58 = vcombine.high %v778_v54, %v778_v54  ;;  %v4934_v4 = vld [vmem:[%s5682_s10 + $0x694] ss:$28 sps:$4 sm:$0xff]   ;;  %v4940_v9 = vld [vmem:[%s5682_s10 + $0x6cc] ss:$28 sps:$4 sm:$0xff]   ;;  %v5773_v12 = vrot.slane %v778_v54, %v5735_v49  ;;  %v4946_v14 = vld [vmem:[%s5682_s10 + $0x704] ss:$28 sps:$4 sm:$0xff]   ;;  %v787_v16 = vcombine.high %v5769_v10, %v5769_v10 }
  0x48   : > { %v4942_v11 = vld [vmem:[%s5682_s10 + $0x348] ss:$28 sps:$4 sm:$0xff]   ;;  %v4944_v17 = vld [vmem:[%s5682_s10 + $0x700] ss:$28 sps:$4 sm:$0xff]   ;;  %s241_s5 = smul.u32 7, %s4221_s19 }
  0x49   : > { %3143 = vmatpush1.bf16.msra.mxu1 %v4882_v22  ;;  %v5749_v60 = vrot.slane %v786_v58, %v5735_v49  ;;  %v4943_v13 = vld [vmem:[%s5682_s10 + $0x6c8] ss:$28 sps:$4 sm:$0xff]   ;;  %v5783_v18 = vcombine.high %v5773_v12, %v5773_v12  ;;  %v4952_v20 = vld [vmem:[%s5682_s10 + $0x73c] ss:$28 sps:$4 sm:$0xff]   ;;  %v5789_v22 = vrot.slane %v787_v16, %v5735_v49 }
  0x4a   : > { %3184 = vmatpush1.bf16.msra.mxu0 %v4883_v23  ;;  %3144 = vmatprep.subr.bf16.mxu1 %v4884_v24  ;;  %v4949_v15 = vld [vmem:[%s5682_s10 + $0xc] ss:$28 sps:$4 sm:$0xff]   ;;  %v4955_v21 = vld [vmem:[%s5682_s10 + $0x44] ss:$28 sps:$4 sm:$0xff]   ;;  %v4950_v23 = vld [vmem:[%s5682_s10 + $0x738] ss:$28 sps:$4 sm:$0xff]  }
  0x4b   : > { %3185 = vmatprep.subr.bf16.mxu0 %v4886_v25  ;;  %v5756_v0 = vcombine.high %v5749_v60, %v5749_v60  ;;  %3164 = vmatprep.mubr.bf16.mxu1 %v5749_v60  ;;  %v4947_v19 = vld [vmem:[%s5682_s10 + $0x8] ss:$28 sps:$4 sm:$0xff]   ;;  %v4953_v24 = vld [vmem:[%s5682_s10 + $0x40] ss:$28 sps:$4 sm:$0xff]   ;;  %v4958_v25 = vld [vmem:[%s5682_s10 + $0x774] ss:$28 sps:$4 sm:$0xff]  }
  0x4c   : > { %v4971_v36 = vld [vmem:[%s5682_s10 + $0xe8] ss:$28 sps:$4 sm:$0xff]   ;;  %v4976_v37 = vld [vmem:[%s5682_s10 + $0x81c] ss:$28 sps:$4 sm:$0xff]   ;;  %p242_p7 = scmp.lt.s32.totalorder %s241_s5, 48 }
  0x4d   : > { %3145 = vmatpush1.bf16.msra.mxu1 %v4888_v26  ;;  %3205 = vmatprep.mubr.bf16.mxu0 %v5756_v0  ;;  %v4961_v26 = vld [vmem:[%s5682_s10 + $0x7c] ss:$28 sps:$4 sm:$0xff]   ;;  %v4979_v38 = vld [vmem:[%s5682_s10 + $0x124] ss:$28 sps:$4 sm:$0xff]   ;;  %v4997_v52 = vld [vmem:[%s5682_s10 + $0x1cc] ss:$28 sps:$4 sm:$0xff]  }
  0x4e   : > { %3186 = vmatpush1.bf16.msra.mxu0 %v4889_v27  ;;  %3146 = vmatprep.subr.bf16.mxu1 %v4890_v28  ;;  %v4956_v27 = vld [vmem:[%s5682_s10 + $0x770] ss:$28 sps:$4 sm:$0xff]   ;;  %v4959_v28 = vld [vmem:[%s5682_s10 + $0x78] ss:$28 sps:$4 sm:$0xff]   ;;  %v4995_v54 = vld [vmem:[%s5682_s10 + $0x1c8] ss:$28 sps:$4 sm:$0xff]  }
  0x4f   : > { %3187 = vmatprep.subr.bf16.mxu0 %v4892_v29  ;;  %v4964_v29 = vld [vmem:[%s5682_s10 + $0x7ac] ss:$28 sps:$4 sm:$0xff]   ;;  %v4985_v42 = vld [vmem:[%s5682_s10 + $0x15c] ss:$28 sps:$4 sm:$0xff]   ;;  %v5018_v5 = vld [vmem:[%s5682_s10 + $0x9a4] ss:$28 sps:$4 sm:$0xff]  }
  0x50   : > { %v5001_v58 = vld [vmem:[%s5682_s10 + $0x200] ss:$28 sps:$4 sm:$0xff]   ;;  %s6335_s5 = smov (!%p242_p7, %s241_s5), 48 }
  0x51   : > { %3147 = vmatpush1.bf16.msra.mxu1 %v4894_v30  ;;  %v4967_v30 = vld [vmem:[%s5682_s10 + $0xb4] ss:$28 sps:$4 sm:$0xff]   ;;  %v5033_v16 = vld [vmem:[%s5682_s10 + $0x31c] ss:$28 sps:$4 sm:$0xff]   ;;  %s244_s11 = scalar_lea.vmem %s6325_s2, %s6335_s5  ;;  %s249_s19 = scalar_lea.vmem %s6326_s3, %s6335_s5 }
  0x52   : > { %3188 = vmatpush1.bf16.msra.mxu0 %v4895_v31  ;;  %3148 = vmatprep.subr.bf16.mxu1 %v4896_v32  ;;  %v4962_v31 = vld [vmem:[%s5682_s10 + $0x7a8] ss:$28 sps:$4 sm:$0xff]   ;;  %v4965_v32 = vld [vmem:[%s5682_s10 + $0xb0] ss:$28 sps:$4 sm:$0xff]   ;;  %s254_s15 = scalar_lea.vmem %s6327_s4, %s6335_s5 }
  0x53   : > { %3189 = vmatprep.subr.bf16.mxu0 %v4898_v33  ;;  %v4970_v33 = vld [vmem:[%s5682_s10 + $0x7e4] ss:$28 sps:$4 sm:$0xff]  }
  0x55   : > { %3149 = vmatpush1.bf16.msra.mxu1 %v4900_v34  ;;  %v4973_v34 = vld [vmem:[%s5682_s10 + $0xec] ss:$28 sps:$4 sm:$0xff]  }
  0x56   : > { %3190 = vmatpush1.bf16.msra.mxu0 %v4901_v35  ;;  %3150 = vmatprep.subr.bf16.mxu1 %v4902_v39  ;;  %v4968_v35 = vld [vmem:[%s5682_s10 + $0x7e0] ss:$28 sps:$4 sm:$0xff]   ;;  %v4974_v39 = vld [vmem:[%s5682_s10 + $0x818] ss:$28 sps:$4 sm:$0xff]  }
  0x57   : > { %3191 = vmatprep.subr.bf16.mxu0 %v4904_v40  ;;  %v4977_v40 = vld [vmem:[%s5682_s10 + $0x120] ss:$28 sps:$4 sm:$0xff]  }
  0x59   : > { %3151 = vmatpush1.bf16.msra.mxu1 %v4906_v41  ;;  %v4982_v41 = vld [vmem:[%s5682_s10 + $0x854] ss:$28 sps:$4 sm:$0xff]  }
  0x5a   : > { %3192 = vmatpush1.bf16.msra.mxu0 %v4907_v44  ;;  %3152 = vmatprep.subr.bf16.mxu1 %v4908_v45  ;;  %v4980_v44 = vld [vmem:[%s5682_s10 + $0x850] ss:$28 sps:$4 sm:$0xff]   ;;  %v4983_v45 = vld [vmem:[%s5682_s10 + $0x158] ss:$28 sps:$4 sm:$0xff]  }
  0x5b   : > { %3193 = vmatprep.subr.bf16.mxu0 %v4910_v46  ;;  %v4988_v46 = vld [vmem:[%s5682_s10 + $0x88c] ss:$28 sps:$4 sm:$0xff]  }
  0x5d   : > { %3153 = vmatpush1.bf16.msra.mxu1 %v4912_v47  ;;  %v4991_v47 = vld [vmem:[%s5682_s10 + $0x194] ss:$28 sps:$4 sm:$0xff]  }
  0x5e   : > { %3194 = vmatpush1.bf16.msra.mxu0 %v4913_v48  ;;  %3154 = vmatprep.subr.bf16.mxu1 %v4914_v50  ;;  %v4986_v48 = vld [vmem:[%s5682_s10 + $0x888] ss:$28 sps:$4 sm:$0xff]   ;;  %v4989_v50 = vld [vmem:[%s5682_s10 + $0x190] ss:$28 sps:$4 sm:$0xff]  }
  0x5f   : > { %3195 = vmatprep.subr.bf16.mxu0 %v4916_v51  ;;  %v4994_v51 = vld [vmem:[%s5682_s10 + $0x8c4] ss:$28 sps:$4 sm:$0xff]  }
  0x61   : > { %3155 = vmatpush1.bf16.msra.mxu1 %v4918_v53  ;;  %v4992_v53 = vld [vmem:[%s5682_s10 + $0x8c0] ss:$28 sps:$4 sm:$0xff]  }
  0x62   : > { %3196 = vmatpush1.bf16.msra.mxu0 %v4919_v55  ;;  %3156 = vmatprep.subr.bf16.mxu1 %v4920_v56  ;;  %v5000_v55 = vld [vmem:[%s5682_s10 + $0x8fc] ss:$28 sps:$4 sm:$0xff]   ;;  %v5003_v56 = vld [vmem:[%s5682_s10 + $0x204] ss:$28 sps:$4 sm:$0xff]  }
  0x63   : > { %3197 = vmatprep.subr.bf16.mxu0 %v4922_v57  ;;  %v4998_v57 = vld [vmem:[%s5682_s10 + $0x8f8] ss:$28 sps:$4 sm:$0xff]  }
  0x65   : > { %3157 = vmatpush1.bf16.msra.mxu1 %v4924_v59  ;;  %v5006_v59 = vld [vmem:[%s5682_s10 + $0x934] ss:$28 sps:$4 sm:$0xff]  }
  0x66   : > { %3198 = vmatpush1.bf16.msra.mxu0 %v4925_v61  ;;  %3158 = vmatprep.subr.bf16.mxu1 %v4926_v62  ;;  %v5009_v61 = vld [vmem:[%s5682_s10 + $0x23c] ss:$28 sps:$4 sm:$0xff]   ;;  %v5004_v62 = vld [vmem:[%s5682_s10 + $0x930] ss:$28 sps:$4 sm:$0xff]  }
  0x67   : > { %3199 = vmatprep.subr.bf16.mxu0 %v4928_v63  ;;  %v5007_v63 = vld [vmem:[%s5682_s10 + $0x238] ss:$28 sps:$4 sm:$0xff]  }
  0x69   : > { %3159 = vmatpush1.bf16.msra.mxu1 %v4930_v1  ;;  %v5012_v1 = vld [vmem:[%s5682_s10 + $0x96c] ss:$28 sps:$4 sm:$0xff]  }
  0x6a   : > { %3200 = vmatpush1.bf16.msra.mxu0 %v4931_v2  ;;  %3160 = vmatprep.subr.bf16.mxu1 %v4932_v3  ;;  %v5015_v2 = vld [vmem:[%s5682_s10 + $0x274] ss:$28 sps:$4 sm:$0xff]   ;;  %v5010_v3 = vld [vmem:[%s5682_s10 + $0x968] ss:$28 sps:$4 sm:$0xff]  }
  0x6b   : > { %3201 = vmatprep.subr.bf16.mxu0 %v4934_v4  ;;  %v5013_v4 = vld [vmem:[%s5682_s10 + $0x270] ss:$28 sps:$4 sm:$0xff]  }
  0x6d   : > { %3161 = vmatpush1.bf16.msra.mxu1 %v4936_v6  ;;  %v5021_v6 = vld [vmem:[%s5682_s10 + $0x2ac] ss:$28 sps:$4 sm:$0xff]  }
  0x6e   : > { %3202 = vmatpush1.bf16.msra.mxu0 %v4937_v7  ;;  %3162 = vmatprep.subr.bf16.mxu1 %v4938_v8  ;;  %v5016_v7 = vld [vmem:[%s5682_s10 + $0x9a0] ss:$28 sps:$4 sm:$0xff]   ;;  %v5019_v8 = vld [vmem:[%s5682_s10 + $0x2a8] ss:$28 sps:$4 sm:$0xff]  }
  0x6f   : > { %3203 = vmatprep.subr.bf16.mxu0 %v4940_v9  ;;  %v5024_v9 = vld [vmem:[%s5682_s10 + $0x9dc] ss:$28 sps:$4 sm:$0xff]  }
  0x71   : > { %3163 = vmatpush1.bf16.msra.mxu1 %v4942_v11  ;;  %v5027_v11 = vld [vmem:[%s5682_s10 + $0x2e4] ss:$28 sps:$4 sm:$0xff]  }
  0x72   : > { %3204 = vmatpush1.bf16.msra.mxu0 %v4943_v13  ;;  %3296 = vmatprep.subr.bf16.mxu1 %v4949_v15  ;;  %v5022_v13 = vld [vmem:[%s5682_s10 + $0x9d8] ss:$28 sps:$4 sm:$0xff]  }
  0x73   : > { %3214 = vmatprep.subr.bf16.mxu0 %v4946_v14  ;;  %v5025_v14 = vld [vmem:[%s5682_s10 + $0x2e0] ss:$28 sps:$4 sm:$0xff]   ;;  %v5030_v15 = vld [vmem:[%s5682_s10 + $0xa14] ss:$28 sps:$4 sm:$0xff]  }
  0x74   : > { %3165 = vmatmul.mubr.bf16.vlgmr.msra.gmra.mrb[0].mxu1 %v5773_v12 }
  0x75   : > { %3206 = vmatmul.mubr.bf16.vlgmr.msra.gmra.mrb[0].mxu0 %v5783_v18  ;;  %3297 = vmatpush1.bf16.msra.mxu1 %v4947_v19  ;;  %v5031_v19 = vld [vmem:[%s5682_s10 + $0x318] ss:$28 sps:$4 sm:$0xff]  }
  0x76   : > { %3215 = vmatpush1.bf16.msra.mxu0 %v4944_v17  ;;  %3298 = vmatprep.subr.bf16.mxu1 %v4955_v21  ;;  %v5028_v17 = vld [vmem:[%s5682_s10 + $0xa10] ss:$28 sps:$4 sm:$0xff]  }
  0x77   : > { %3216 = vmatprep.subr.bf16.mxu0 %v4952_v20  ;;  %3246 = vmatprep.mubr.bf16.mxu0 %v5789_v22  ;;  %v5036_v20 = vld [vmem:[%s5682_s10 + $0xa4c] ss:$28 sps:$4 sm:$0xff]   ;;  %v5039_v21 = vld [vmem:[%s5682_s10 + $0x354] ss:$28 sps:$4 sm:$0xff]  }
  0x78   : > { %3328 = vmatprep.mubr.bf16.mxu1 %v5749_v60 }
  0x79   : > { %3299 = vmatpush1.bf16.msra.mxu1 %v4953_v24  ;;  %v5037_v24 = vld [vmem:[%s5682_s10 + $0x350] ss:$28 sps:$4 sm:$0xff]  }
  0x7a   : > { %3217 = vmatpush1.bf16.msra.mxu0 %v4950_v23  ;;  %3300 = vmatprep.subr.bf16.mxu1 %v4961_v26  ;;  %v5034_v23 = vld [vmem:[%s5682_s10 + $0xa48] ss:$28 sps:$4 sm:$0xff]  }
  0x7b   : > { %3218 = vmatprep.subr.bf16.mxu0 %v4958_v25  ;;  %v5043_v25 = vld [vmem:[%s5682_s10 + $0xa84] ss:$28 sps:$4 sm:$0xff]   ;;  %v5046_v26 = vld [vmem:[%s5682_s10 + $0x38c] ss:$28 sps:$4 sm:$0xff]  }
  0x7d   : > { %3301 = vmatpush1.bf16.msra.mxu1 %v4959_v28  ;;  %v5858_v28 = vrot.slane %v5769_v10, %v5735_v49  ;;  %v5047_v10 = vld [vmem:[%s5682_s10 + $0xab8] ss:$28 sps:$4 sm:$0xff]  }
  0x7e   : > { %3219 = vmatpush1.bf16.msra.mxu0 %v4956_v27  ;;  %3302 = vmatprep.subr.bf16.mxu1 %v4967_v30  ;;  %v5041_v27 = vld [vmem:[%s5682_s10 + $0xa80] ss:$28 sps:$4 sm:$0xff]  }
  0x7f   : > { %3220 = vmatprep.subr.bf16.mxu0 %v4964_v29  ;;  %v5044_v29 = vld [vmem:[%s5682_s10 + $0x388] ss:$28 sps:$4 sm:$0xff]   ;;  %v5049_v30 = vld [vmem:[%s5682_s10 + $0xabc] ss:$28 sps:$4 sm:$0xff]  }
  0x81   : > { %3303 = vmatpush1.bf16.msra.mxu1 %v4965_v32  ;;  %v5865_v32 = vcombine.high %v5789_v22, %v5789_v22 }
  0x82   : > { %3221 = vmatpush1.bf16.msra.mxu0 %v4962_v31  ;;  %3304 = vmatprep.subr.bf16.mxu1 %v4973_v34  ;;  %v5052_v31 = vld [vmem:[%s5682_s10 + $0x3c4] ss:$28 sps:$4 sm:$0xff]   ;;  %v5055_v34 = vld [vmem:[%s5682_s10 + $0xaf4] ss:$28 sps:$4 sm:$0xff]  }
  0x83   : > { %3222 = vmatprep.subr.bf16.mxu0 %v4970_v33  ;;  %v5050_v33 = vld [vmem:[%s5682_s10 + $0x3c0] ss:$28 sps:$4 sm:$0xff]  }
  0x85   : > { %3305 = vmatpush1.bf16.msra.mxu1 %v4971_v36  ;;  %v5053_v36 = vld [vmem:[%s5682_s10 + $0xaf0] ss:$28 sps:$4 sm:$0xff]  }
  0x86   : > { %3223 = vmatpush1.bf16.msra.mxu0 %v4968_v35  ;;  %3306 = vmatprep.subr.bf16.mxu1 %v4979_v38  ;;  %v5058_v35 = vld [vmem:[%s5682_s10 + $0x3fc] ss:$28 sps:$4 sm:$0xff]   ;;  %v5061_v38 = vld [vmem:[%s5682_s10 + $0xb2c] ss:$28 sps:$4 sm:$0xff]  }
  0x87   : > { %3224 = vmatprep.subr.bf16.mxu0 %v4976_v37  ;;  %v5056_v37 = vld [vmem:[%s5682_s10 + $0x3f8] ss:$28 sps:$4 sm:$0xff]  }
  0x89   : > { %3307 = vmatpush1.bf16.msra.mxu1 %v4977_v40  ;;  %v5059_v40 = vld [vmem:[%s5682_s10 + $0xb28] ss:$28 sps:$4 sm:$0xff]  }
  0x8a   : > { %3225 = vmatpush1.bf16.msra.mxu0 %v4974_v39  ;;  %3308 = vmatprep.subr.bf16.mxu1 %v4985_v42  ;;  %v5064_v39 = vld [vmem:[%s5682_s10 + $0x434] ss:$28 sps:$4 sm:$0xff]   ;;  %v5067_v42 = vld [vmem:[%s5682_s10 + $0xb64] ss:$28 sps:$4 sm:$0xff]  }
  0x8b   : > { %3226 = vmatprep.subr.bf16.mxu0 %v4982_v41  ;;  %v5062_v41 = vld [vmem:[%s5682_s10 + $0x430] ss:$28 sps:$4 sm:$0xff]  }
  0x8d   : > { %3309 = vmatpush1.bf16.msra.mxu1 %v4983_v45  ;;  %v5065_v45 = vld [vmem:[%s5682_s10 + $0xb60] ss:$28 sps:$4 sm:$0xff]  }
  0x8e   : > { %3227 = vmatpush1.bf16.msra.mxu0 %v4980_v44  ;;  %3310 = vmatprep.subr.bf16.mxu1 %v4991_v47  ;;  %v5070_v44 = vld [vmem:[%s5682_s10 + $0x46c] ss:$28 sps:$4 sm:$0xff]   ;;  %v5073_v47 = vld [vmem:[%s5682_s10 + $0xb9c] ss:$28 sps:$4 sm:$0xff]  }
  0x8f   : > { %3228 = vmatprep.subr.bf16.mxu0 %v4988_v46  ;;  %v5068_v46 = vld [vmem:[%s5682_s10 + $0x468] ss:$28 sps:$4 sm:$0xff]  }
  0x91   : > { %3311 = vmatpush1.bf16.msra.mxu1 %v4989_v50  ;;  %v5071_v50 = vld [vmem:[%s5682_s10 + $0xb98] ss:$28 sps:$4 sm:$0xff]  }
  0x92   : > { %3229 = vmatpush1.bf16.msra.mxu0 %v4986_v48  ;;  %3312 = vmatprep.subr.bf16.mxu1 %v4997_v52  ;;  %v5076_v48 = vld [vmem:[%s5682_s10 + $0x4a4] ss:$28 sps:$4 sm:$0xff]   ;;  %v5079_v52 = vld [vmem:[%s5682_s10 + $0xbd4] ss:$28 sps:$4 sm:$0xff]  }
  0x93   : > { %3230 = vmatprep.subr.bf16.mxu0 %v4994_v51  ;;  %v5074_v51 = vld [vmem:[%s5682_s10 + $0x4a0] ss:$28 sps:$4 sm:$0xff]  }
  0x95   : > { %3313 = vmatpush1.bf16.msra.mxu1 %v4995_v54  ;;  %v5077_v54 = vld [vmem:[%s5682_s10 + $0xbd0] ss:$28 sps:$4 sm:$0xff]  }
  0x96   : > { %3231 = vmatpush1.bf16.msra.mxu0 %v4992_v53  ;;  %3314 = vmatprep.subr.bf16.mxu1 %v5003_v56  ;;  %v5082_v53 = vld [vmem:[%s5682_s10 + $0x4dc] ss:$28 sps:$4 sm:$0xff]   ;;  %v5085_v56 = vld [vmem:[%s5682_s10 + $0xc0c] ss:$28 sps:$4 sm:$0xff]  }
  0x97   : > { %3232 = vmatprep.subr.bf16.mxu0 %v5000_v55  ;;  %v5080_v55 = vld [vmem:[%s5682_s10 + $0x4d8] ss:$28 sps:$4 sm:$0xff]  }
  0x99   : > { %3315 = vmatpush1.bf16.msra.mxu1 %v5001_v58  ;;  %v5083_v58 = vld [vmem:[%s5682_s10 + $0xc08] ss:$28 sps:$4 sm:$0xff]  }
  0x9a   : > { %3233 = vmatpush1.bf16.msra.mxu0 %v4998_v57  ;;  %3316 = vmatprep.subr.bf16.mxu1 %v5009_v61  ;;  %v5088_v57 = vld [vmem:[%s5682_s10 + $0x514] ss:$28 sps:$4 sm:$0xff]   ;;  %v5091_v61 = vld [vmem:[%s5682_s10 + $0xc44] ss:$28 sps:$4 sm:$0xff]  }
  0x9b   : > { %3234 = vmatprep.subr.bf16.mxu0 %v5006_v59  ;;  %v5086_v59 = vld [vmem:[%s5682_s10 + $0x510] ss:$28 sps:$4 sm:$0xff]  }
  0x9d   : > { %3317 = vmatpush1.bf16.msra.mxu1 %v5007_v63  ;;  %v5089_v63 = vld [vmem:[%s5682_s10 + $0xc40] ss:$28 sps:$4 sm:$0xff]  }
  0x9e   : > { %3235 = vmatpush1.bf16.msra.mxu0 %v5004_v62  ;;  %3318 = vmatprep.subr.bf16.mxu1 %v5015_v2  ;;  %v5094_v62 = vld [vmem:[%s5682_s10 + $0x54c] ss:$28 sps:$4 sm:$0xff]   ;;  %v5097_v2 = vld [vmem:[%s5682_s10 + $0xc7c] ss:$28 sps:$4 sm:$0xff]  }
  0x9f   : > { %3236 = vmatprep.subr.bf16.mxu0 %v5012_v1  ;;  %v5092_v1 = vld [vmem:[%s5682_s10 + $0x548] ss:$28 sps:$4 sm:$0xff]  }
  0xa1   : > { %3319 = vmatpush1.bf16.msra.mxu1 %v5013_v4  ;;  %v5095_v4 = vld [vmem:[%s5682_s10 + $0xc78] ss:$28 sps:$4 sm:$0xff]  }
  0xa2   : > { %3237 = vmatpush1.bf16.msra.mxu0 %v5010_v3  ;;  %3320 = vmatprep.subr.bf16.mxu1 %v5021_v6  ;;  %v5100_v3 = vld [vmem:[%s5682_s10 + $0x584] ss:$28 sps:$4 sm:$0xff]   ;;  %v5103_v6 = vld [vmem:[%s5682_s10 + $0xcb4] ss:$28 sps:$4 sm:$0xff]  }
  0xa3   : > { %3238 = vmatprep.subr.bf16.mxu0 %v5018_v5  ;;  %v5098_v5 = vld [vmem:[%s5682_s10 + $0x580] ss:$28 sps:$4 sm:$0xff]  }
  0xa5   : > { %3321 = vmatpush1.bf16.msra.mxu1 %v5019_v8  ;;  %v5101_v8 = vld [vmem:[%s5682_s10 + $0xcb0] ss:$28 sps:$4 sm:$0xff]  }
  0xa6   : > { %3239 = vmatpush1.bf16.msra.mxu0 %v5016_v7  ;;  %3322 = vmatprep.subr.bf16.mxu1 %v5027_v11  ;;  %v5106_v7 = vld [vmem:[%s5682_s10 + $0x5bc] ss:$28 sps:$4 sm:$0xff]   ;;  %v5109_v11 = vld [vmem:[%s5682_s10 + $0xcec] ss:$28 sps:$4 sm:$0xff]  }
  0xa7   : > { %3240 = vmatprep.subr.bf16.mxu0 %v5024_v9  ;;  %v5104_v9 = vld [vmem:[%s5682_s10 + $0x5b8] ss:$28 sps:$4 sm:$0xff]  }
  0xa9   : > { %3323 = vmatpush1.bf16.msra.mxu1 %v5025_v14  ;;  %v5107_v14 = vld [vmem:[%s5682_s10 + $0xce8] ss:$28 sps:$4 sm:$0xff]  }
  0xaa   : > { %3241 = vmatpush1.bf16.msra.mxu0 %v5022_v13  ;;  %3324 = vmatprep.subr.bf16.mxu1 %v5033_v16  ;;  %v5112_v13 = vld [vmem:[%s5682_s10 + $0x5f4] ss:$28 sps:$4 sm:$0xff]   ;;  %v5115_v16 = vld [vmem:[%s5682_s10 + $0xd24] ss:$28 sps:$4 sm:$0xff]  }
  0xab   : > { %3242 = vmatprep.subr.bf16.mxu0 %v5030_v15  ;;  %v5110_v15 = vld [vmem:[%s5682_s10 + $0x5f0] ss:$28 sps:$4 sm:$0xff]  }
  0xad   : > { %3325 = vmatpush1.bf16.msra.mxu1 %v5031_v19  ;;  %v5113_v19 = vld [vmem:[%s5682_s10 + $0xd20] ss:$28 sps:$4 sm:$0xff]  }
  0xae   : > { %3243 = vmatpush1.bf16.msra.mxu0 %v5028_v17  ;;  %3326 = vmatprep.subr.bf16.mxu1 %v5039_v21  ;;  %v5118_v17 = vld [vmem:[%s5682_s10 + $0x62c] ss:$28 sps:$4 sm:$0xff]   ;;  %v5121_v21 = vld [vmem:[%s5682_s10 + $0xd5c] ss:$28 sps:$4 sm:$0xff]  }
  0xaf   : > { %3244 = vmatprep.subr.bf16.mxu0 %v5036_v20  ;;  %v5116_v20 = vld [vmem:[%s5682_s10 + $0x628] ss:$28 sps:$4 sm:$0xff]  }
  0xb1   : > { %3327 = vmatpush1.bf16.msra.mxu1 %v5037_v24  ;;  %v5119_v24 = vld [vmem:[%s5682_s10 + $0xd58] ss:$28 sps:$4 sm:$0xff]  }
  0xb2   : > { %3245 = vmatpush1.bf16.msra.mxu0 %v5034_v23  ;;  %3337 = vmatprep.subr.bf16.mxu1 %v5046_v26  ;;  %v5124_v23 = vld [vmem:[%s5682_s10 + $0x664] ss:$28 sps:$4 sm:$0xff]   ;;  %v5127_v26 = vld [vmem:[%s5682_s10 + $0xd94] ss:$28 sps:$4 sm:$0xff]  }
  0xb3   : > { %3255 = vmatprep.subr.bf16.mxu0 %v5043_v25  ;;  %v5122_v25 = vld [vmem:[%s5682_s10 + $0x660] ss:$28 sps:$4 sm:$0xff]  }
  0xb4   : > { %3329 = vmatmul.mubr.bf16.vlgmr.msra.gmra.mrb[4].mxu1 %v5773_v12 }
  0xb5   : > { %3247 = vmatmul.mubr.bf16.vlgmr.msra.gmra.mrb[0].mxu0 %v5858_v28  ;;  %3338 = vmatpush1.bf16.msra.mxu1 %v5044_v29  ;;  %v5125_v29 = vld [vmem:[%s5682_s10 + $0xd90] ss:$28 sps:$4 sm:$0xff]  }
  0xb6   : > { %3256 = vmatpush1.bf16.msra.mxu0 %v5041_v27  ;;  %3339 = vmatprep.subr.bf16.mxu1 %v5052_v31  ;;  %v5130_v27 = vld [vmem:[%s5682_s10 + $0x69c] ss:$28 sps:$4 sm:$0xff]   ;;  %v5133_v31 = vld [vmem:[%s5682_s10 + $0xdcc] ss:$28 sps:$4 sm:$0xff]  }
  0xb7   : > { %3257 = vmatprep.subr.bf16.mxu0 %v5049_v30  ;;  %3287 = vmatprep.mubr.bf16.mxu0 %v5865_v32  ;;  %v5128_v30 = vld [vmem:[%s5682_s10 + $0x698] ss:$28 sps:$4 sm:$0xff]  }
  0xb8   : > { %3369 = vmatprep.mubr.bf16.mxu1 %v5756_v0 }
  0xb9   : > { %3340 = vmatpush1.bf16.msra.mxu1 %v5050_v33  ;;  %v5131_v33 = vld [vmem:[%s5682_s10 + $0xdc8] ss:$28 sps:$4 sm:$0xff]  }
  0xba   : > { %3258 = vmatpush1.bf16.msra.mxu0 %v5047_v10  ;;  %3341 = vmatprep.subr.bf16.mxu1 %v5058_v35  ;;  %v5136_v10 = vld [vmem:[%s5682_s10 + $0x6d4] ss:$28 sps:$4 sm:$0xff]   ;;  %v5139_v35 = vld [vmem:[%s5682_s10 + $0x70c] ss:$28 sps:$4 sm:$0xff]  }
  0xbb   : > { %3259 = vmatprep.subr.bf16.mxu0 %v5055_v34  ;;  %v5134_v34 = vld [vmem:[%s5682_s10 + $0x6d0] ss:$28 sps:$4 sm:$0xff]  }
  0xbd   : > { %3342 = vmatpush1.bf16.msra.mxu1 %v5056_v37  ;;  %v5933_v37 = vcombine.high %v5858_v28, %v5858_v28 }
  0xbe   : > { %3260 = vmatpush1.bf16.msra.mxu0 %v5053_v36  ;;  %3343 = vmatprep.subr.bf16.mxu1 %v5064_v39  ;;  %v5142_v36 = vld [vmem:[%s5682_s10 + $0x14] ss:$28 sps:$4 sm:$0xff]  }
  0xbf   : > { %3261 = vmatprep.subr.bf16.mxu0 %v5061_v38  ;;  %v5137_v38 = vld [vmem:[%s5682_s10 + $0x708] ss:$28 sps:$4 sm:$0xff]   ;;  %v5140_v39 = vld [vmem:[%s5682_s10 + $0x10] ss:$28 sps:$4 sm:$0xff]  }
  0xc1   : > { %3344 = vmatpush1.bf16.msra.mxu1 %v5062_v41  ;;  %v5148_v41 = vld [vmem:[%s5682_s10 + $0x4c] ss:$28 sps:$4 sm:$0xff]  }
  0xc2   : > { %3262 = vmatpush1.bf16.msra.mxu0 %v5059_v40  ;;  %3345 = vmatprep.subr.bf16.mxu1 %v5070_v44  ;;  %v5145_v40 = vld [vmem:[%s5682_s10 + $0x744] ss:$28 sps:$4 sm:$0xff]  }
  0xc3   : > { %3263 = vmatprep.subr.bf16.mxu0 %v5067_v42  ;;  %v5143_v42 = vld [vmem:[%s5682_s10 + $0x740] ss:$28 sps:$4 sm:$0xff]   ;;  %v5146_v44 = vld [vmem:[%s5682_s10 + $0x48] ss:$28 sps:$4 sm:$0xff]  }
  0xc5   : > { %3346 = vmatpush1.bf16.msra.mxu1 %v5068_v46  ;;  %v5154_v46 = vld [vmem:[%s5682_s10 + $0x84] ss:$28 sps:$4 sm:$0xff]  }
  0xc6   : > { %3264 = vmatpush1.bf16.msra.mxu0 %v5065_v45  ;;  %3347 = vmatprep.subr.bf16.mxu1 %v5076_v48  ;;  %v5151_v45 = vld [vmem:[%s5682_s10 + $0x77c] ss:$28 sps:$4 sm:$0xff]  }
  0xc7   : > { %3265 = vmatprep.subr.bf16.mxu0 %v5073_v47  ;;  %v5149_v47 = vld [vmem:[%s5682_s10 + $0x778] ss:$28 sps:$4 sm:$0xff]   ;;  %v5152_v48 = vld [vmem:[%s5682_s10 + $0x80] ss:$28 sps:$4 sm:$0xff]  }
  0xc9   : > { %3348 = vmatpush1.bf16.msra.mxu1 %v5074_v51  ;;  %v5160_v51 = vld [vmem:[%s5682_s10 + $0xbc] ss:$28 sps:$4 sm:$0xff]  }
  0xca   : > { %3266 = vmatpush1.bf16.msra.mxu0 %v5071_v50  ;;  %3349 = vmatprep.subr.bf16.mxu1 %v5082_v53  ;;  %v5157_v50 = vld [vmem:[%s5682_s10 + $0x7b4] ss:$28 sps:$4 sm:$0xff]  }
  0xcb   : > { %3267 = vmatprep.subr.bf16.mxu0 %v5079_v52  ;;  %v5155_v52 = vld [vmem:[%s5682_s10 + $0x7b0] ss:$28 sps:$4 sm:$0xff]   ;;  %v5158_v53 = vld [vmem:[%s5682_s10 + $0xb8] ss:$28 sps:$4 sm:$0xff]  }
  0xcd   : > { %3350 = vmatpush1.bf16.msra.mxu1 %v5080_v55  ;;  %v5166_v55 = vld [vmem:[%s5682_s10 + $0xf4] ss:$28 sps:$4 sm:$0xff]  }
  0xce   : > { %3268 = vmatpush1.bf16.msra.mxu0 %v5077_v54  ;;  %3351 = vmatprep.subr.bf16.mxu1 %v5088_v57  ;;  %v5163_v54 = vld [vmem:[%s5682_s10 + $0x7ec] ss:$28 sps:$4 sm:$0xff]  }
  0xcf   : > { %3269 = vmatprep.subr.bf16.mxu0 %v5085_v56  ;;  %v5161_v56 = vld [vmem:[%s5682_s10 + $0x7e8] ss:$28 sps:$4 sm:$0xff]   ;;  %v5164_v57 = vld [vmem:[%s5682_s10 + $0xf0] ss:$28 sps:$4 sm:$0xff]  }
  0xd1   : > { %3352 = vmatpush1.bf16.msra.mxu1 %v5086_v59  ;;  %v5172_v59 = vld [vmem:[%s5682_s10 + $0x12c] ss:$28 sps:$4 sm:$0xff]  }
  0xd2   : > { %3270 = vmatpush1.bf16.msra.mxu0 %v5083_v58  ;;  %3353 = vmatprep.subr.bf16.mxu1 %v5094_v62  ;;  %v5169_v58 = vld [vmem:[%s5682_s10 + $0x824] ss:$28 sps:$4 sm:$0xff]  }
  0xd3   : > { %3271 = vmatprep.subr.bf16.mxu0 %v5091_v61  ;;  %v5167_v61 = vld [vmem:[%s5682_s10 + $0x820] ss:$28 sps:$4 sm:$0xff]   ;;  %v5170_v62 = vld [vmem:[%s5682_s10 + $0x128] ss:$28 sps:$4 sm:$0xff]  }
  0xd5   : > { %3354 = vmatpush1.bf16.msra.mxu1 %v5092_v1  ;;  %v5178_v1 = vld [vmem:[%s5682_s10 + $0x164] ss:$28 sps:$4 sm:$0xff]  }
  0xd6   : > { %3272 = vmatpush1.bf16.msra.mxu0 %v5089_v63  ;;  %3355 = vmatprep.subr.bf16.mxu1 %v5100_v3  ;;  %v5175_v63 = vld [vmem:[%s5682_s10 + $0x85c] ss:$28 sps:$4 sm:$0xff]  }
  0xd7   : > { %3273 = vmatprep.subr.bf16.mxu0 %v5097_v2  ;;  %v5173_v2 = vld [vmem:[%s5682_s10 + $0x858] ss:$28 sps:$4 sm:$0xff]   ;;  %v5176_v3 = vld [vmem:[%s5682_s10 + $0x160] ss:$28 sps:$4 sm:$0xff]  }
  0xd9   : > { %3356 = vmatpush1.bf16.msra.mxu1 %v5098_v5  ;;  %v5184_v5 = vld [vmem:[%s5682_s10 + $0x19c] ss:$28 sps:$4 sm:$0xff]  }
  0xda   : > { %3274 = vmatpush1.bf16.msra.mxu0 %v5095_v4  ;;  %3357 = vmatprep.subr.bf16.mxu1 %v5106_v7  ;;  %v5181_v4 = vld [vmem:[%s5682_s10 + $0x894] ss:$28 sps:$4 sm:$0xff]  }
  0xdb   : > { %3275 = vmatprep.subr.bf16.mxu0 %v5103_v6  ;;  %v5179_v6 = vld [vmem:[%s5682_s10 + $0x890] ss:$28 sps:$4 sm:$0xff]   ;;  %v5182_v7 = vld [vmem:[%s5682_s10 + $0x198] ss:$28 sps:$4 sm:$0xff]  }
  0xdd   : > { %3358 = vmatpush1.bf16.msra.mxu1 %v5104_v9  ;;  %v5190_v9 = vld [vmem:[%s5682_s10 + $0x1d4] ss:$28 sps:$4 sm:$0xff]  }
  0xde   : > { %3276 = vmatpush1.bf16.msra.mxu0 %v5101_v8  ;;  %3359 = vmatprep.subr.bf16.mxu1 %v5112_v13  ;;  %v5187_v8 = vld [vmem:[%s5682_s10 + $0x8cc] ss:$28 sps:$4 sm:$0xff]  }
  0xdf   : > { %3277 = vmatprep.subr.bf16.mxu0 %v5109_v11  ;;  %v5185_v11 = vld [vmem:[%s5682_s10 + $0x8c8] ss:$28 sps:$4 sm:$0xff]   ;;  %v5188_v13 = vld [vmem:[%s5682_s10 + $0x1d0] ss:$28 sps:$4 sm:$0xff]  }
  0xe1   : > { %3360 = vmatpush1.bf16.msra.mxu1 %v5110_v15  ;;  %v5196_v15 = vld [vmem:[%s5682_s10 + $0x20c] ss:$28 sps:$4 sm:$0xff]  }
  0xe2   : > { %3278 = vmatpush1.bf16.msra.mxu0 %v5107_v14  ;;  %3361 = vmatprep.subr.bf16.mxu1 %v5118_v17  ;;  %v5193_v14 = vld [vmem:[%s5682_s10 + $0x904] ss:$28 sps:$4 sm:$0xff]  }
  0xe3   : > { %3279 = vmatprep.subr.bf16.mxu0 %v5115_v16  ;;  %v5191_v16 = vld [vmem:[%s5682_s10 + $0x900] ss:$28 sps:$4 sm:$0xff]   ;;  %v5194_v17 = vld [vmem:[%s5682_s10 + $0x208] ss:$28 sps:$4 sm:$0xff]  }
  0xe5   : > { %3362 = vmatpush1.bf16.msra.mxu1 %v5116_v20  ;;  %v5202_v20 = vld [vmem:[%s5682_s10 + $0x244] ss:$28 sps:$4 sm:$0xff]  }
  0xe6   : > { %3280 = vmatpush1.bf16.msra.mxu0 %v5113_v19  ;;  %3363 = vmatprep.subr.bf16.mxu1 %v5124_v23  ;;  %v5199_v19 = vld [vmem:[%s5682_s10 + $0x93c] ss:$28 sps:$4 sm:$0xff]  }
  0xe7   : > { %3281 = vmatprep.subr.bf16.mxu0 %v5121_v21  ;;  %v5197_v21 = vld [vmem:[%s5682_s10 + $0x938] ss:$28 sps:$4 sm:$0xff]   ;;  %v5200_v23 = vld [vmem:[%s5682_s10 + $0x240] ss:$28 sps:$4 sm:$0xff]  }
  0xe9   : > { %3364 = vmatpush1.bf16.msra.mxu1 %v5122_v25  ;;  %v5208_v25 = vld [vmem:[%s5682_s10 + $0x27c] ss:$28 sps:$4 sm:$0xff]  }
  0xea   : > { %3282 = vmatpush1.bf16.msra.mxu0 %v5119_v24  ;;  %3365 = vmatprep.subr.bf16.mxu1 %v5130_v27  ;;  %v5205_v24 = vld [vmem:[%s5682_s10 + $0x974] ss:$28 sps:$4 sm:$0xff]  }
  0xeb   : > { %3283 = vmatprep.subr.bf16.mxu0 %v5127_v26  ;;  %v5203_v26 = vld [vmem:[%s5682_s10 + $0x970] ss:$28 sps:$4 sm:$0xff]   ;;  %v5206_v27 = vld [vmem:[%s5682_s10 + $0x278] ss:$28 sps:$4 sm:$0xff]  }
  0xed   : > { %3366 = vmatpush1.bf16.msra.mxu1 %v5128_v30  ;;  %v5214_v30 = vld [vmem:[%s5682_s10 + $0x2b4] ss:$28 sps:$4 sm:$0xff]  }
  0xee   : > { %3284 = vmatpush1.bf16.msra.mxu0 %v5125_v29  ;;  %3367 = vmatprep.subr.bf16.mxu1 %v5136_v10  ;;  %v5211_v29 = vld [vmem:[%s5682_s10 + $0x9ac] ss:$28 sps:$4 sm:$0xff]  }
  0xef   : > { %3285 = vmatprep.subr.bf16.mxu0 %v5133_v31  ;;  %v5209_v31 = vld [vmem:[%s5682_s10 + $0x9a8] ss:$28 sps:$4 sm:$0xff]   ;;  %v5212_v10 = vld [vmem:[%s5682_s10 + $0x2b0] ss:$28 sps:$4 sm:$0xff]  }
  0xf1   : > { %3368 = vmatpush1.bf16.msra.mxu1 %v5134_v34  ;;  %v5220_v34 = vld [vmem:[%s5682_s10 + $0x2ec] ss:$28 sps:$4 sm:$0xff]  }
  0xf2   : > { %3286 = vmatpush1.bf16.msra.mxu0 %v5131_v33  ;;  %3378 = vmatprep.subr.bf16.mxu1 %v5139_v35  ;;  %v5217_v33 = vld [vmem:[%s5682_s10 + $0x9e4] ss:$28 sps:$4 sm:$0xff]  }
  0xf3   : > { %3460 = vmatprep.subr.bf16.mxu0 %v5142_v36  ;;  %v5215_v35 = vld [vmem:[%s5682_s10 + $0x9e0] ss:$28 sps:$4 sm:$0xff]   ;;  %v5218_v36 = vld [vmem:[%s5682_s10 + $0x2e8] ss:$28 sps:$4 sm:$0xff]  }
  0xf4   : > { %3370 = vmatmul.mubr.bf16.vlgmr.msra.gmra.mrb[4].mxu1 %v5783_v18 }
  0xf5   : > { %3288 = vmatmul.mubr.bf16.vlgmr.msra.gmra.mrb[0].mxu0 %v5933_v37  ;;  %3379 = vmatpush1.bf16.msra.mxu1 %v5137_v38  ;;  %v5223_v38 = vld [vmem:[%s5682_s10 + $0xa1c] ss:$28 sps:$4 sm:$0xff]  }
  0xf6   : > { %3461 = vmatpush1.bf16.msra.mxu0 %v5140_v39  ;;  %3380 = vmatprep.subr.bf16.mxu1 %v5145_v40  ;;  %v5226_v39 = vld [vmem:[%s5682_s10 + $0x324] ss:$28 sps:$4 sm:$0xff]   ;;  %v5221_v40 = vld [vmem:[%s5682_s10 + $0xa18] ss:$28 sps:$4 sm:$0xff]  }
  0xf7   : > { %3462 = vmatprep.subr.bf16.mxu0 %v5148_v41  ;;  %3410 = vmatprep.mubr.bf16.mxu1 %v5789_v22  ;;  %v5224_v41 = vld [vmem:[%s5682_s10 + $0x320] ss:$28 sps:$4 sm:$0xff]  }
  0xf8   : > { %3492 = vmatprep.mubr.bf16.mxu0 %v5749_v60 }
  0xf9   : > { %3381 = vmatpush1.bf16.msra.mxu1 %v5143_v42  ;;  %v5229_v42 = vld [vmem:[%s5682_s10 + $0xa54] ss:$28 sps:$4 sm:$0xff]  }
  0xfa   : > { %3463 = vmatpush1.bf16.msra.mxu0 %v5146_v44  ;;  %3382 = vmatprep.subr.bf16.mxu1 %v5151_v45  ;;  %v5232_v44 = vld [vmem:[%s5682_s10 + $0x35c] ss:$28 sps:$4 sm:$0xff]   ;;  %v5227_v45 = vld [vmem:[%s5682_s10 + $0xa50] ss:$28 sps:$4 sm:$0xff]  }
  0xfb   : > { %3464 = vmatprep.subr.bf16.mxu0 %v5154_v46  ;;  %v5230_v46 = vld [vmem:[%s5682_s10 + $0x358] ss:$28 sps:$4 sm:$0xff]  }
  0xfd   : > { %3383 = vmatpush1.bf16.msra.mxu1 %v5149_v47  ;;  %v5235_v47 = vld [vmem:[%s5682_s10 + $0xa8c] ss:$28 sps:$4 sm:$0xff]  }
  0xfe   : > { %3465 = vmatpush1.bf16.msra.mxu0 %v5152_v48  ;;  %3384 = vmatprep.subr.bf16.mxu1 %v5157_v50  ;;  %v5238_v48 = vld [vmem:[%s5682_s10 + $0x394] ss:$28 sps:$4 sm:$0xff]   ;;  %v5233_v50 = vld [vmem:[%s5682_s10 + $0xa88] ss:$28 sps:$4 sm:$0xff]  }
  0xff   : > { %3466 = vmatprep.subr.bf16.mxu0 %v5160_v51  ;;  %v5236_v51 = vld [vmem:[%s5682_s10 + $0x390] ss:$28 sps:$4 sm:$0xff]  }
 0x101   : > { %3385 = vmatpush1.bf16.msra.mxu1 %v5155_v52  ;;  %v5241_v52 = vld [vmem:[%s5682_s10 + $0xac4] ss:$28 sps:$4 sm:$0xff]  }
 0x102   : > { %3467 = vmatpush1.bf16.msra.mxu0 %v5158_v53  ;;  %3386 = vmatprep.subr.bf16.mxu1 %v5163_v54  ;;  %v5244_v53 = vld [vmem:[%s5682_s10 + $0x3cc] ss:$28 sps:$4 sm:$0xff]   ;;  %v5239_v54 = vld [vmem:[%s5682_s10 + $0xac0] ss:$28 sps:$4 sm:$0xff]  }
 0x103   : > { %3468 = vmatprep.subr.bf16.mxu0 %v5166_v55  ;;  %v5242_v55 = vld [vmem:[%s5682_s10 + $0x3c8] ss:$28 sps:$4 sm:$0xff]  }
 0x105   : > { %3387 = vmatpush1.bf16.msra.mxu1 %v5161_v56  ;;  %v5247_v56 = vld [vmem:[%s5682_s10 + $0xafc] ss:$28 sps:$4 sm:$0xff]  }
 0x106   : > { %3469 = vmatpush1.bf16.msra.mxu0 %v5164_v57  ;;  %3388 = vmatprep.subr.bf16.mxu1 %v5169_v58  ;;  %v5250_v57 = vld [vmem:[%s5682_s10 + $0x404] ss:$28 sps:$4 sm:$0xff]   ;;  %v5245_v58 = vld [vmem:[%s5682_s10 + $0xaf8] ss:$28 sps:$4 sm:$0xff]  }
 0x107   : > { %3470 = vmatprep.subr.bf16.mxu0 %v5172_v59  ;;  %v5248_v59 = vld [vmem:[%s5682_s10 + $0x400] ss:$28 sps:$4 sm:$0xff]  }
 0x109   : > { %3389 = vmatpush1.bf16.msra.mxu1 %v5167_v61  ;;  %v5253_v61 = vld [vmem:[%s5682_s10 + $0xb34] ss:$28 sps:$4 sm:$0xff]  }
 0x10a   : > { %3471 = vmatpush1.bf16.msra.mxu0 %v5170_v62  ;;  %3390 = vmatprep.subr.bf16.mxu1 %v5175_v63  ;;  %v5256_v62 = vld [vmem:[%s5682_s10 + $0x43c] ss:$28 sps:$4 sm:$0xff]   ;;  %v5251_v63 = vld [vmem:[%s5682_s10 + $0xb30] ss:$28 sps:$4 sm:$0xff]  }
 0x10b   : > { %3472 = vmatprep.subr.bf16.mxu0 %v5178_v1  ;;  %v5254_v1 = vld [vmem:[%s5682_s10 + $0x438] ss:$28 sps:$4 sm:$0xff]  }
 0x10d   : > { %3391 = vmatpush1.bf16.msra.mxu1 %v5173_v2  ;;  %v5259_v2 = vld [vmem:[%s5682_s10 + $0xb6c] ss:$28 sps:$4 sm:$0xff]  }
 0x10e   : > { %3473 = vmatpush1.bf16.msra.mxu0 %v5176_v3  ;;  %3392 = vmatprep.subr.bf16.mxu1 %v5181_v4  ;;  %v5262_v3 = vld [vmem:[%s5682_s10 + $0x474] ss:$28 sps:$4 sm:$0xff]   ;;  %v5257_v4 = vld [vmem:[%s5682_s10 + $0xb68] ss:$28 sps:$4 sm:$0xff]  }
 0x10f   : > { %3474 = vmatprep.subr.bf16.mxu0 %v5184_v5  ;;  %v5260_v5 = vld [vmem:[%s5682_s10 + $0x470] ss:$28 sps:$4 sm:$0xff]  }
 0x111   : > { %3393 = vmatpush1.bf16.msra.mxu1 %v5179_v6  ;;  %v5265_v6 = vld [vmem:[%s5682_s10 + $0xba4] ss:$28 sps:$4 sm:$0xff]  }
 0x112   : > { %3475 = vmatpush1.bf16.msra.mxu0 %v5182_v7  ;;  %3394 = vmatprep.subr.bf16.mxu1 %v5187_v8  ;;  %v5268_v7 = vld [vmem:[%s5682_s10 + $0x4ac] ss:$28 sps:$4 sm:$0xff]   ;;  %v5263_v8 = vld [vmem:[%s5682_s10 + $0xba0] ss:$28 sps:$4 sm:$0xff]  }
 0x113   : > { %3476 = vmatprep.subr.bf16.mxu0 %v5190_v9  ;;  %v5266_v9 = vld [vmem:[%s5682_s10 + $0x4a8] ss:$28 sps:$4 sm:$0xff]  }
 0x115   : > { %3395 = vmatpush1.bf16.msra.mxu1 %v5185_v11  ;;  %v5271_v11 = vld [vmem:[%s5682_s10 + $0xbdc] ss:$28 sps:$4 sm:$0xff]  }
 0x116   : > { %3477 = vmatpush1.bf16.msra.mxu0 %v5188_v13  ;;  %3396 = vmatprep.subr.bf16.mxu1 %v5193_v14  ;;  %v5274_v13 = vld [vmem:[%s5682_s10 + $0x4e4] ss:$28 sps:$4 sm:$0xff]  }
 0x117   : > { %3478 = vmatprep.subr.bf16.mxu0 %v5196_v15  ;;  %v5269_v15 = vld [vmem:[%s5682_s10 + $0xbd8] ss:$28 sps:$4 sm:$0xff]  }
 0x119   : > { %3397 = vmatpush1.bf16.msra.mxu1 %v5191_v16 }
 0x11a   : > { %3479 = vmatpush1.bf16.msra.mxu0 %v5194_v17  ;;  %3398 = vmatprep.subr.bf16.mxu1 %v5199_v19  ;;  %v5272_v17 = vld [vmem:[%s5682_s10 + $0x4e0] ss:$28 sps:$4 sm:$0xff]  }
 0x11b   : > { %3480 = vmatprep.subr.bf16.mxu0 %v5202_v20 }
 0x11d   : > { %3399 = vmatpush1.bf16.msra.mxu1 %v5197_v21  ;;  %v5277_v21 = vld [vmem:[%s5682_s10 + $0xc14] ss:$28 sps:$4 sm:$0xff]  }
 0x11e   : > { %3481 = vmatpush1.bf16.msra.mxu0 %v5200_v23  ;;  %3400 = vmatprep.subr.bf16.mxu1 %v5205_v24  ;;  %v5280_v23 = vld [vmem:[%s5682_s10 + $0x51c] ss:$28 sps:$4 sm:$0xff]   ;;  %v5275_v24 = vld [vmem:[%s5682_s10 + $0xc10] ss:$28 sps:$4 sm:$0xff]  }
 0x11f   : > { %3482 = vmatprep.subr.bf16.mxu0 %v5208_v25  ;;  %v5278_v25 = vld [vmem:[%s5682_s10 + $0x518] ss:$28 sps:$4 sm:$0xff]  }
 0x121   : > { %3401 = vmatpush1.bf16.msra.mxu1 %v5203_v26  ;;  %v5283_v26 = vld [vmem:[%s5682_s10 + $0xc4c] ss:$28 sps:$4 sm:$0xff]  }
 0x122   : > { %3483 = vmatpush1.bf16.msra.mxu0 %v5206_v27  ;;  %3402 = vmatprep.subr.bf16.mxu1 %v5211_v29  ;;  %v5286_v27 = vld [vmem:[%s5682_s10 + $0x554] ss:$28 sps:$4 sm:$0xff]   ;;  %v5281_v29 = vld [vmem:[%s5682_s10 + $0xc48] ss:$28 sps:$4 sm:$0xff]  }
 0x123   : > { %3484 = vmatprep.subr.bf16.mxu0 %v5214_v30  ;;  %v5284_v30 = vld [vmem:[%s5682_s10 + $0x550] ss:$28 sps:$4 sm:$0xff]  }
 0x125   : > { %3403 = vmatpush1.bf16.msra.mxu1 %v5209_v31  ;;  %v5289_v31 = vld [vmem:[%s5682_s10 + $0xc84] ss:$28 sps:$4 sm:$0xff]  }
 0x126   : > { %3485 = vmatpush1.bf16.msra.mxu0 %v5212_v10  ;;  %3404 = vmatprep.subr.bf16.mxu1 %v5217_v33  ;;  %v5292_v10 = vld [vmem:[%s5682_s10 + $0x58c] ss:$28 sps:$4 sm:$0xff]   ;;  %v5287_v33 = vld [vmem:[%s5682_s10 + $0xc80] ss:$28 sps:$4 sm:$0xff]  }
 0x127   : > { %3486 = vmatprep.subr.bf16.mxu0 %v5220_v34  ;;  %v5290_v34 = vld [vmem:[%s5682_s10 + $0x588] ss:$28 sps:$4 sm:$0xff]  }
 0x129   : > { %3405 = vmatpush1.bf16.msra.mxu1 %v5215_v35  ;;  %v5295_v35 = vld [vmem:[%s5682_s10 + $0xcbc] ss:$28 sps:$4 sm:$0xff]  }
 0x12a   : > { %3487 = vmatpush1.bf16.msra.mxu0 %v5218_v36  ;;  %3406 = vmatprep.subr.bf16.mxu1 %v5223_v38  ;;  %v5298_v36 = vld [vmem:[%s5682_s10 + $0x5c4] ss:$28 sps:$4 sm:$0xff]   ;;  %v5293_v38 = vld [vmem:[%s5682_s10 + $0xcb8] ss:$28 sps:$4 sm:$0xff]  }
 0x12b   : > { %3488 = vmatprep.subr.bf16.mxu0 %v5226_v39  ;;  %v5296_v39 = vld [vmem:[%s5682_s10 + $0x5c0] ss:$28 sps:$4 sm:$0xff]  }
 0x12d   : > { %3407 = vmatpush1.bf16.msra.mxu1 %v5221_v40  ;;  %v5301_v40 = vld [vmem:[%s5682_s10 + $0xcf4] ss:$28 sps:$4 sm:$0xff]  }
 0x12e   : > { %3489 = vmatpush1.bf16.msra.mxu0 %v5224_v41  ;;  %3408 = vmatprep.subr.bf16.mxu1 %v5229_v42  ;;  %v5304_v41 = vld [vmem:[%s5682_s10 + $0x5fc] ss:$28 sps:$4 sm:$0xff]   ;;  %v5299_v42 = vld [vmem:[%s5682_s10 + $0xcf0] ss:$28 sps:$4 sm:$0xff]  }
 0x12f   : > { %3490 = vmatprep.subr.bf16.mxu0 %v5232_v44  ;;  %v5302_v44 = vld [vmem:[%s5682_s10 + $0x5f8] ss:$28 sps:$4 sm:$0xff]  }
 0x131   : > { %3409 = vmatpush1.bf16.msra.mxu1 %v5227_v45  ;;  %v5307_v45 = vld [vmem:[%s5682_s10 + $0xd2c] ss:$28 sps:$4 sm:$0xff]  }
 0x132   : > { %3491 = vmatpush1.bf16.msra.mxu0 %v5230_v46  ;;  %3419 = vmatprep.subr.bf16.mxu1 %v5235_v47  ;;  %v5310_v46 = vld [vmem:[%s5682_s10 + $0x634] ss:$28 sps:$4 sm:$0xff]   ;;  %v5305_v47 = vld [vmem:[%s5682_s10 + $0xd28] ss:$28 sps:$4 sm:$0xff]  }
 0x133   : > { %3501 = vmatprep.subr.bf16.mxu0 %v5238_v48  ;;  %v5308_v48 = vld [vmem:[%s5682_s10 + $0x630] ss:$28 sps:$4 sm:$0xff]  }
 0x134   : > { %3411 = vmatmul.mubr.bf16.vlgmr.msra.gmra.mrb[4].mxu1 %v5858_v28 }
 0x135   : > { %3493 = vmatmul.mubr.bf16.vlgmr.msra.gmra.mrb[4].mxu0 %v5773_v12  ;;  %3420 = vmatpush1.bf16.msra.mxu1 %v5233_v50  ;;  %v5313_v50 = vld [vmem:[%s5682_s10 + $0xd64] ss:$28 sps:$4 sm:$0xff]  }
 0x136   : > { %3502 = vmatpush1.bf16.msra.mxu0 %v5236_v51  ;;  %3421 = vmatprep.subr.bf16.mxu1 %v5241_v52  ;;  %v5316_v51 = vld [vmem:[%s5682_s10 + $0x66c] ss:$28 sps:$4 sm:$0xff]   ;;  %v5311_v52 = vld [vmem:[%s5682_s10 + $0xd60] ss:$28 sps:$4 sm:$0xff]  }
 0x137   : > { %3503 = vmatprep.subr.bf16.mxu0 %v5244_v53  ;;  %3451 = vmatprep.mubr.bf16.mxu1 %v5865_v32  ;;  %v5314_v53 = vld [vmem:[%s5682_s10 + $0x668] ss:$28 sps:$4 sm:$0xff]  }
 0x138   : > { %3533 = vmatprep.mubr.bf16.mxu0 %v5756_v0 }
 0x139   : > { %3422 = vmatpush1.bf16.msra.mxu1 %v5239_v54  ;;  %v5319_v54 = vld [vmem:[%s5682_s10 + $0xd9c] ss:$28 sps:$4 sm:$0xff]  }
 0x13a   : > { %3504 = vmatpush1.bf16.msra.mxu0 %v5242_v55  ;;  %3423 = vmatprep.subr.bf16.mxu1 %v5247_v56  ;;  %v5322_v55 = vld [vmem:[%s5682_s10 + $0x6a4] ss:$28 sps:$4 sm:$0xff]   ;;  %v5317_v56 = vld [vmem:[%s5682_s10 + $0xd98] ss:$28 sps:$4 sm:$0xff]  }
 0x13b   : > { %3505 = vmatprep.subr.bf16.mxu0 %v5250_v57  ;;  %v5320_v57 = vld [vmem:[%s5682_s10 + $0x6a0] ss:$28 sps:$4 sm:$0xff]  }
 0x13d   : > { %3424 = vmatpush1.bf16.msra.mxu1 %v5245_v58  ;;  %v5325_v58 = vld [vmem:[%s5682_s10 + $0xdd4] ss:$28 sps:$4 sm:$0xff]  }
 0x13e   : > { %3506 = vmatpush1.bf16.msra.mxu0 %v5248_v59  ;;  %3425 = vmatprep.subr.bf16.mxu1 %v5253_v61  ;;  %v5328_v59 = vld [vmem:[%s5682_s10 + $0x6dc] ss:$28 sps:$4 sm:$0xff]   ;;  %v5323_v61 = vld [vmem:[%s5682_s10 + $0xdd0] ss:$28 sps:$4 sm:$0xff]  }
 0x13f   : > { %3507 = vmatprep.subr.bf16.mxu0 %v5256_v62  ;;  %v5326_v62 = vld [vmem:[%s5682_s10 + $0x6d8] ss:$28 sps:$4 sm:$0xff]  }
 0x141   : > { %3426 = vmatpush1.bf16.msra.mxu1 %v5251_v63  ;;  %v5331_v63 = vld [vmem:[%s5682_s10 + $0x714] ss:$28 sps:$4 sm:$0xff]  }
 0x142   : > { %3508 = vmatpush1.bf16.msra.mxu0 %v5254_v1  ;;  %3427 = vmatprep.subr.bf16.mxu1 %v5259_v2  ;;  %v5332_v1 = vld [vmem:[%s5682_s10 + $0x1d8] ss:$28 sps:$4 sm:$0xff]   ;;  %v5329_v2 = vld [vmem:[%s5682_s10 + $0x710] ss:$28 sps:$4 sm:$0xff]  }
 0x143   : > { %3509 = vmatprep.subr.bf16.mxu0 %v5262_v3  ;;  %v5333_v3 = vld [vmem:[%s5682_s10 + $0x18] ss:$28 sps:$4 sm:$0xff]  }
 0x145   : > { %3428 = vmatpush1.bf16.msra.mxu1 %v5257_v4  ;;  %v5336_v4 = vld [vmem:[%s5682_s10 + $0x74c] ss:$28 sps:$4 sm:$0xff]  }
 0x146   : > { %3510 = vmatpush1.bf16.msra.mxu0 %v5260_v5  ;;  %3429 = vmatprep.subr.bf16.mxu1 %v5265_v6  ;;  %v5337_v5 = vld [vmem:[%s5682_s10 + $0x210] ss:$28 sps:$4 sm:$0xff]   ;;  %v5334_v6 = vld [vmem:[%s5682_s10 + $0x748] ss:$28 sps:$4 sm:$0xff]  }
 0x147   : > { %3511 = vmatprep.subr.bf16.mxu0 %v5268_v7  ;;  %v6031_v14 = vpop.f32.mrb[0].mxu1  ;;  %v5338_v7 = vld [vmem:[%s5682_s10 + $0x50] ss:$28 sps:$4 sm:$0xff]  }
 0x148   : > { %v6034_v16 = vpop.f32.mrb[1].mxu1 }
 0x149   : > { %v3170_v19 = vpop.f32.mrb[2].mxu1  ;;  %3430 = vmatpush1.bf16.msra.mxu1 %v5263_v8  ;;  %v5341_v8 = vld [vmem:[%s5682_s10 + $0x784] ss:$28 sps:$4 sm:$0xff]  }
 0x14a   : > { %3512 = vmatpush1.bf16.msra.mxu0 %v5266_v9  ;;  %v3171_v20 = vpop.f32.mrb[3].mxu1  ;;  %3431 = vmatprep.subr.bf16.mxu1 %v5271_v11  ;;  %v5342_v9 = vld [vmem:[%s5682_s10 + $0x248] ss:$28 sps:$4 sm:$0xff]   ;;  %v5339_v11 = vld [vmem:[%s5682_s10 + $0x780] ss:$28 sps:$4 sm:$0xff]  }
 0x14b   : > { %3513 = vmatprep.subr.bf16.mxu0 %v5274_v13  ;;  %v5343_v13 = vld [vmem:[%s5682_s10 + $0x88] ss:$28 sps:$4 sm:$0xff]   ;;  %v5344_v19 = vld [vmem:[%s5682_s10 + $0x7b8] ss:$28 sps:$4 sm:$0xff]  }
 0x14c   : > { %v5351_v20 = vld [vmem:[%s5682_s10 + $0x7f4] ss:$28 sps:$4 sm:$0xff]  }
 0x14d   : > { %3432 = vmatpush1.bf16.msra.mxu1 %v5269_v15  ;;  %v5346_v15 = vld [vmem:[%s5682_s10 + $0x7bc] ss:$28 sps:$4 sm:$0xff]  }
 0x14e   : > { %3514 = vmatpush1.bf16.msra.mxu0 %v5272_v17  ;;  %3433 = vmatprep.subr.bf16.mxu1 %v5277_v21  ;;  %v5347_v17 = vld [vmem:[%s5682_s10 + $0x280] ss:$28 sps:$4 sm:$0xff]   ;;  %v5352_v21 = vld [vmem:[%s5682_s10 + $0x2b8] ss:$28 sps:$4 sm:$0xff]  }
 0x14f   : > { %3515 = vmatprep.subr.bf16.mxu0 %v5280_v23  ;;  %v5349_v23 = vld [vmem:[%s5682_s10 + $0x7f0] ss:$28 sps:$4 sm:$0xff]  }
 0x151   : > { %3434 = vmatpush1.bf16.msra.mxu1 %v5275_v24  ;;  %v5353_v24 = vld [vmem:[%s5682_s10 + $0xf8] ss:$28 sps:$4 sm:$0xff]  }
 0x152   : > { %3516 = vmatpush1.bf16.msra.mxu0 %v5278_v25  ;;  %3435 = vmatprep.subr.bf16.mxu1 %v5283_v26  ;;  %v5356_v25 = vld [vmem:[%s5682_s10 + $0x82c] ss:$28 sps:$4 sm:$0xff]  }
 0x153   : > { %3517 = vmatprep.subr.bf16.mxu0 %v5286_v27  ;;  %v5357_v26 = vld [vmem:[%s5682_s10 + $0x2f0] ss:$28 sps:$4 sm:$0xff]   ;;  %v5354_v27 = vld [vmem:[%s5682_s10 + $0x828] ss:$28 sps:$4 sm:$0xff]  }
 0x155   : > { %3436 = vmatpush1.bf16.msra.mxu1 %v5281_v29  ;;  %v5358_v29 = vld [vmem:[%s5682_s10 + $0x130] ss:$28 sps:$4 sm:$0xff]  }
 0x156   : > { %3518 = vmatpush1.bf16.msra.mxu0 %v5284_v30  ;;  %3437 = vmatprep.subr.bf16.mxu1 %v5289_v31  ;;  %v5361_v30 = vld [vmem:[%s5682_s10 + $0x864] ss:$28 sps:$4 sm:$0xff]  }
 0x157   : > { %3519 = vmatprep.subr.bf16.mxu0 %v5292_v10  ;;  %v5362_v31 = vld [vmem:[%s5682_s10 + $0x328] ss:$28 sps:$4 sm:$0xff]   ;;  %v5359_v10 = vld [vmem:[%s5682_s10 + $0x860] ss:$28 sps:$4 sm:$0xff]  }
 0x159   : > { %3438 = vmatpush1.bf16.msra.mxu1 %v5287_v33  ;;  %v5363_v33 = vld [vmem:[%s5682_s10 + $0x168] ss:$28 sps:$4 sm:$0xff]  }
 0x15a   : > { %3520 = vmatpush1.bf16.msra.mxu0 %v5290_v34  ;;  %3439 = vmatprep.subr.bf16.mxu1 %v5295_v35  ;;  %v5366_v34 = vld [vmem:[%s5682_s10 + $0x89c] ss:$28 sps:$4 sm:$0xff]  }
 0x15b   : > { %3521 = vmatprep.subr.bf16.mxu0 %v5298_v36  ;;  %v5367_v35 = vld [vmem:[%s5682_s10 + $0x360] ss:$28 sps:$4 sm:$0xff]   ;;  %v5364_v36 = vld [vmem:[%s5682_s10 + $0x898] ss:$28 sps:$4 sm:$0xff]  }
 0x15d   : > { %3440 = vmatpush1.bf16.msra.mxu1 %v5293_v38  ;;  %v5368_v38 = vld [vmem:[%s5682_s10 + $0x1a0] ss:$28 sps:$4 sm:$0xff]  }
 0x15e   : > { %3522 = vmatpush1.bf16.msra.mxu0 %v5296_v39  ;;  %3441 = vmatprep.subr.bf16.mxu1 %v5301_v40  ;;  %v5371_v39 = vld [vmem:[%s5682_s10 + $0x8d4] ss:$28 sps:$4 sm:$0xff]  }
 0x15f   : > { %3523 = vmatprep.subr.bf16.mxu0 %v5304_v41  ;;  %v5372_v40 = vld [vmem:[%s5682_s10 + $0x558] ss:$28 sps:$4 sm:$0xff]   ;;  %v5369_v41 = vld [vmem:[%s5682_s10 + $0x8d0] ss:$28 sps:$4 sm:$0xff]  }
 0x161   : > { %3442 = vmatpush1.bf16.msra.mxu1 %v5299_v42  ;;  %v5373_v42 = vld [vmem:[%s5682_s10 + $0x398] ss:$28 sps:$4 sm:$0xff]  }
 0x162   : > { %3524 = vmatpush1.bf16.msra.mxu0 %v5302_v44  ;;  %3443 = vmatprep.subr.bf16.mxu1 %v5307_v45  ;;  %v5376_v44 = vld [vmem:[%s5682_s10 + $0x90c] ss:$28 sps:$4 sm:$0xff]  }
 0x163   : > { %3525 = vmatprep.subr.bf16.mxu0 %v5310_v46  ;;  %v5377_v45 = vld [vmem:[%s5682_s10 + $0x590] ss:$28 sps:$4 sm:$0xff]   ;;  %v5374_v46 = vld [vmem:[%s5682_s10 + $0x908] ss:$28 sps:$4 sm:$0xff]  }
 0x165   : > { %3444 = vmatpush1.bf16.msra.mxu1 %v5305_v47  ;;  %v5378_v47 = vld [vmem:[%s5682_s10 + $0x3d0] ss:$28 sps:$4 sm:$0xff]  }
 0x166   : > { %3526 = vmatpush1.bf16.msra.mxu0 %v5308_v48  ;;  %3445 = vmatprep.subr.bf16.mxu1 %v5313_v50  ;;  %v5381_v48 = vld [vmem:[%s5682_s10 + $0x944] ss:$28 sps:$4 sm:$0xff]  }
 0x167   : > { %3527 = vmatprep.subr.bf16.mxu0 %v5316_v51  ;;  %v5382_v50 = vld [vmem:[%s5682_s10 + $0x5c8] ss:$28 sps:$4 sm:$0xff]   ;;  %v5379_v51 = vld [vmem:[%s5682_s10 + $0x940] ss:$28 sps:$4 sm:$0xff]  }
 0x169   : > { %3446 = vmatpush1.bf16.msra.mxu1 %v5311_v52  ;;  %v5386_v52 = vld [vmem:[%s5682_s10 + $0x97c] ss:$28 sps:$4 sm:$0xff]  }
 0x16a   : > { %3528 = vmatpush1.bf16.msra.mxu0 %v5314_v53  ;;  %3447 = vmatprep.subr.bf16.mxu1 %v5319_v54  ;;  %v5387_v53 = vld [vmem:[%s5682_s10 + $0x600] ss:$28 sps:$4 sm:$0xff]   ;;  %v5384_v54 = vld [vmem:[%s5682_s10 + $0x978] ss:$28 sps:$4 sm:$0xff]  }
 0x16b   : > { %3529 = vmatprep.subr.bf16.mxu0 %v5322_v55  ;;  %v5388_v55 = vld [vmem:[%s5682_s10 + $0x440] ss:$28 sps:$4 sm:$0xff]  }
 0x16d   : > { %3448 = vmatpush1.bf16.msra.mxu1 %v5317_v56  ;;  %v5392_v56 = vld [vmem:[%s5682_s10 + $0x638] ss:$28 sps:$4 sm:$0xff]  }
 0x16e   : > { %3530 = vmatpush1.bf16.msra.mxu0 %v5320_v57  ;;  %3449 = vmatprep.subr.bf16.mxu1 %v5325_v58  ;;  %v5389_v57 = vld [vmem:[%s5682_s10 + $0x9b0] ss:$28 sps:$4 sm:$0xff]   ;;  %v5393_v58 = vld [vmem:[%s5682_s10 + $0x478] ss:$28 sps:$4 sm:$0xff]  }
 0x16f   : > { %3531 = vmatprep.subr.bf16.mxu0 %v5328_v59  ;;  %v5396_v59 = vld [vmem:[%s5682_s10 + $0x9ec] ss:$28 sps:$4 sm:$0xff]  }
 0x171   : > { %3450 = vmatpush1.bf16.msra.mxu1 %v5323_v61  ;;  %v5397_v61 = vld [vmem:[%s5682_s10 + $0x670] ss:$28 sps:$4 sm:$0xff]  }
 0x172   : > { %3532 = vmatpush1.bf16.msra.mxu0 %v5326_v62  ;;  %4681 = vmatprep.subr.bf16.mxu1 %v5332_v1  ;;  %v5394_v62 = vld [vmem:[%s5682_s10 + $0x9e8] ss:$28 sps:$4 sm:$0xff]  }
 0x173   : > { %3542 = vmatprep.subr.bf16.mxu0 %v5331_v63  ;;  %v5398_v63 = vld [vmem:[%s5682_s10 + $0x4b0] ss:$28 sps:$4 sm:$0xff]   ;;  %v5401_v1 = vld [vmem:[%s5682_s10 + $0xa24] ss:$28 sps:$4 sm:$0xff]  }
 0x174   : > { %3452 = vmatmul.mubr.bf16.vlgmr.msra.gmra.mrb[4].mxu1 %v5933_v37 }
 0x175   : > { %3534 = vmatmul.mubr.bf16.vlgmr.msra.gmra.mrb[4].mxu0 %v5783_v18  ;;  %4682 = vmatpush3.bf16.msra.mxu1 %v5333_v3  ;;  %v5399_v3 = vld [vmem:[%s5682_s10 + $0xa20] ss:$28 sps:$4 sm:$0xff]  }
 0x176   : > { %3543 = vmatpush1.bf16.msra.mxu0 %v5329_v2  ;;  %4683 = vmatprep.subr.bf16.mxu1 %v5337_v5  ;;  %v5402_v2 = vld [vmem:[%s5682_s10 + $0x6a8] ss:$28 sps:$4 sm:$0xff]   ;;  %v5406_v5 = vld [vmem:[%s5682_s10 + $0xa5c] ss:$28 sps:$4 sm:$0xff]  }
 0x177   : > { %3544 = vmatprep.subr.bf16.mxu0 %v5336_v4  ;;  %3656 = vmatprep.mubr.bf16.mxu1 %v5749_v60  ;;  %v5348_v60 = vld [vmem:[%s5682_s10 + $0xc0] ss:$28 sps:$4 sm:$0xff]   ;;  %v5403_v4 = vld [vmem:[%s5682_s10 + $0x4e8] ss:$28 sps:$4 sm:$0xff]  }
 0x178   : > { %3574 = vmatprep.mubr.bf16.mxu0 %v5789_v22 }
 0x179   : > { %4684 = vmatpush3.bf16.msra.mxu1 %v5338_v7  ;;  %v5404_v7 = vld [vmem:[%s5682_s10 + $0xa58] ss:$28 sps:$4 sm:$0xff]  }
 0x17a   : > { %3545 = vmatpush1.bf16.msra.mxu0 %v5334_v6  ;;  %4685 = vmatprep.subr.bf16.mxu1 %v5342_v9  ;;  %v5407_v6 = vld [vmem:[%s5682_s10 + $0x6e0] ss:$28 sps:$4 sm:$0xff]   ;;  %v5411_v9 = vld [vmem:[%s5682_s10 + $0xa94] ss:$28 sps:$4 sm:$0xff]  }
 0x17b   : > { %3546 = vmatprep.subr.bf16.mxu0 %v5341_v8  ;;  %v5408_v8 = vld [vmem:[%s5682_s10 + $0x520] ss:$28 sps:$4 sm:$0xff]  }
 0x17d   : > { %4686 = vmatpush3.bf16.msra.mxu1 %v5343_v13  ;;  %v5409_v13 = vld [vmem:[%s5682_s10 + $0xa90] ss:$28 sps:$4 sm:$0xff]  }
 0x17e   : > { %3547 = vmatpush1.bf16.msra.mxu0 %v5339_v11  ;;  %4687 = vmatprep.subr.bf16.mxu1 %v5347_v17  ;;  %v5412_v11 = vld [vmem:[%s5682_s10 + $0x8d8] ss:$28 sps:$4 sm:$0xff]   ;;  %v5416_v17 = vld [vmem:[%s5682_s10 + $0xacc] ss:$28 sps:$4 sm:$0xff]  }
 0x17f   : > { %3548 = vmatprep.subr.bf16.mxu0 %v5346_v15  ;;  %v5413_v15 = vld [vmem:[%s5682_s10 + $0x718] ss:$28 sps:$4 sm:$0xff]  }
 0x181   : > { %4688 = vmatpush3.bf16.msra.mxu1 %v5348_v60  ;;  %v5414_v60 = vld [vmem:[%s5682_s10 + $0xac8] ss:$28 sps:$4 sm:$0xff]  }
 0x182   : > { %3549 = vmatpush1.bf16.msra.mxu0 %v5344_v19  ;;  %4689 = vmatprep.subr.bf16.mxu1 %v5352_v21  ;;  %v5417_v19 = vld [vmem:[%s5682_s10 + $0x910] ss:$28 sps:$4 sm:$0xff]   ;;  %v5421_v21 = vld [vmem:[%s5682_s10 + $0xb04] ss:$28 sps:$4 sm:$0xff]  }
 0x183   : > { %3550 = vmatprep.subr.bf16.mxu0 %v5351_v20  ;;  %v5418_v20 = vld [vmem:[%s5682_s10 + $0x750] ss:$28 sps:$4 sm:$0xff]  }
 0x185   : > { %4690 = vmatpush3.bf16.msra.mxu1 %v5353_v24  ;;  %v5423_v24 = vld [vmem:[%s5682_s10 + $0x788] ss:$28 sps:$4 sm:$0xff]  }
 0x186   : > { %3551 = vmatpush1.bf16.msra.mxu0 %v5349_v23  ;;  %4691 = vmatprep.subr.bf16.mxu1 %v5357_v26  ;;  %v5422_v23 = vld [vmem:[%s5682_s10 + $0x948] ss:$28 sps:$4 sm:$0xff]   ;;  %v5427_v26 = vld [vmem:[%s5682_s10 + $0x980] ss:$28 sps:$4 sm:$0xff]  }
 0x187   : > { %3552 = vmatprep.subr.bf16.mxu0 %v5356_v25  ;;  %v5426_v25 = vld [vmem:[%s5682_s10 + $0xb3c] ss:$28 sps:$4 sm:$0xff]  }
 0x189   : > { %4692 = vmatpush3.bf16.msra.mxu1 %v5358_v29  ;;  %v5431_v29 = vld [vmem:[%s5682_s10 + $0xb74] ss:$28 sps:$4 sm:$0xff]  }
 0x18a   : > { %3553 = vmatpush1.bf16.msra.mxu0 %v5354_v27  ;;  %4693 = vmatprep.subr.bf16.mxu1 %v5362_v31  ;;  %v5424_v27 = vld [vmem:[%s5682_s10 + $0xb38] ss:$28 sps:$4 sm:$0xff]   ;;  %v5429_v31 = vld [vmem:[%s5682_s10 + $0xb70] ss:$28 sps:$4 sm:$0xff]  }
 0x18b   : > { %3554 = vmatprep.subr.bf16.mxu0 %v5361_v30  ;;  %v5432_v30 = vld [vmem:[%s5682_s10 + $0x9b8] ss:$28 sps:$4 sm:$0xff]  }
 0x18d   : > { %4694 = vmatpush3.bf16.msra.mxu1 %v5363_v33  ;;  %v5436_v33 = vld [vmem:[%s5682_s10 + $0xbac] ss:$28 sps:$4 sm:$0xff]  }
 0x18e   : > { %3555 = vmatpush1.bf16.msra.mxu0 %v5359_v10  ;;  %4695 = vmatprep.subr.bf16.mxu1 %v5367_v35  ;;  %v5433_v10 = vld [vmem:[%s5682_s10 + $0x7f8] ss:$28 sps:$4 sm:$0xff]   ;;  %v5434_v35 = vld [vmem:[%s5682_s10 + $0xba8] ss:$28 sps:$4 sm:$0xff]  }
 0x18f   : > { %3556 = vmatprep.subr.bf16.mxu0 %v5366_v34  ;;  %v5437_v34 = vld [vmem:[%s5682_s10 + $0x9f0] ss:$28 sps:$4 sm:$0xff]  }
 0x191   : > { %4696 = vmatpush3.bf16.msra.mxu1 %v5368_v38  ;;  %v5441_v38 = vld [vmem:[%s5682_s10 + $0xbe4] ss:$28 sps:$4 sm:$0xff]  }
 0x192   : > { %3557 = vmatpush1.bf16.msra.mxu0 %v5364_v36  ;;  %4703 = vmatprep.subr.bf16.mxu1 %v5372_v40  ;;  %v5438_v36 = vld [vmem:[%s5682_s10 + $0x830] ss:$28 sps:$4 sm:$0xff]  }
 0x193   : > { %3558 = vmatprep.subr.bf16.mxu0 %v5371_v39  ;;  %v5442_v39 = vld [vmem:[%s5682_s10 + $0xa28] ss:$28 sps:$4 sm:$0xff]  }
 0x194   : > { %3657 = vmatmul.mubr.bf16.vlgmr.msra.gmra.mrb[8].mxu1 %v5773_v12  ;;  %v5383_v12 = vld [vmem:[%s5682_s10 + $0x408] ss:$28 sps:$4 sm:$0xff]  }
 0x195   : > { %4704 = vmatpush3.bf16.msra.mxu1 %v5373_v42  ;;  %3696 = vmatprep.mubr.bf16.mxu1 %v5756_v0  ;;  %v5391_v0 = vld [vmem:[%s5682_s10 + $0x9b4] ss:$28 sps:$4 sm:$0xff]  }
 0x196   : > { %3559 = vmatpush1.bf16.msra.mxu0 %v5369_v41  ;;  %4705 = vmatprep.subr.bf16.mxu1 %v5377_v45 }
 0x197   : > { %3560 = vmatprep.subr.bf16.mxu0 %v5376_v44 }
 0x199   : > { %4706 = vmatpush3.bf16.msra.mxu1 %v5378_v47  ;;  %v5443_v47 = vld [vmem:[%s5682_s10 + $0x868] ss:$28 sps:$4 sm:$0xff]  }
 0x19a   : > { %3561 = vmatpush1.bf16.msra.mxu0 %v5374_v46  ;;  %4707 = vmatprep.subr.bf16.mxu1 %v5382_v50  ;;  %v5439_v46 = vld [vmem:[%s5682_s10 + $0xbe0] ss:$28 sps:$4 sm:$0xff]  }
 0x19b   : > { %3562 = vmatprep.subr.bf16.mxu0 %v5381_v48 }
 0x19d   : > { %4708 = vmatpush3.bf16.msra.mxu1 %v5383_v12  ;;  %v5447_v12 = vld [vmem:[%s5682_s10 + $0xa60] ss:$28 sps:$4 sm:$0xff]  }
 0x19e   : > { %3563 = vmatpush1.bf16.msra.mxu0 %v5379_v51  ;;  %4709 = vmatprep.subr.bf16.mxu1 %v5387_v53  ;;  %v5446_v51 = vld [vmem:[%s5682_s10 + $0xc1c] ss:$28 sps:$4 sm:$0xff]  }
 0x19f   : > { %3564 = vmatprep.subr.bf16.mxu0 %v5386_v52 }
 0x1a1   : > { %4710 = vmatpush3.bf16.msra.mxu1 %v5388_v55  ;;  %v5448_v55 = vld [vmem:[%s5682_s10 + $0x8a0] ss:$28 sps:$4 sm:$0xff]  }
 0x1a2   : > { %3565 = vmatpush1.bf16.msra.mxu0 %v5384_v54  ;;  %4711 = vmatprep.subr.bf16.mxu1 %v5392_v56  ;;  %v5444_v54 = vld [vmem:[%s5682_s10 + $0xc18] ss:$28 sps:$4 sm:$0xff]  }
 0x1a3   : > { %3566 = vmatprep.subr.bf16.mxu0 %v5391_v0  ;;  %v5451_v56 = vld [vmem:[%s5682_s10 + $0xc54] ss:$28 sps:$4 sm:$0xff]  }
 0x1a5   : > { %4712 = vmatpush3.bf16.msra.mxu1 %v5393_v58 }
 0x1a6   : > { %3567 = vmatpush1.bf16.msra.mxu0 %v5389_v57  ;;  %4713 = vmatprep.subr.bf16.mxu1 %v5397_v61  ;;  %v5452_v57 = vld [vmem:[%s5682_s10 + $0xc58] ss:$28 sps:$4 sm:$0xff]  }
 0x1a7   : > { %3568 = vmatprep.subr.bf16.mxu0 %v5396_v59 }
 0x1a9   : > { %4714 = vmatpush3.bf16.msra.mxu1 %v5398_v63  ;;  %v5453_v63 = vld [vmem:[%s5682_s10 + $0xa98] ss:$28 sps:$4 sm:$0xff]  }
 0x1aa   : > { %3569 = vmatpush1.bf16.msra.mxu0 %v5394_v62  ;;  %4715 = vmatprep.subr.bf16.mxu1 %v5402_v2  ;;  %v5449_v62 = vld [vmem:[%s5682_s10 + $0xc50] ss:$28 sps:$4 sm:$0xff]  }
 0x1ab   : > { %3570 = vmatprep.subr.bf16.mxu0 %v5401_v1  ;;  %v5456_v2 = vld [vmem:[%s5682_s10 + $0xc8c] ss:$28 sps:$4 sm:$0xff]  }
 0x1ad   : > { %4716 = vmatpush3.bf16.msra.mxu1 %v5403_v4 }
 0x1ae   : > { %3571 = vmatpush1.bf16.msra.mxu0 %v5399_v3  ;;  %4717 = vmatprep.subr.bf16.mxu1 %v5407_v6  ;;  %v5457_v3 = vld [vmem:[%s5682_s10 + $0xc90] ss:$28 sps:$4 sm:$0xff]  }
 0x1af   : > { %3572 = vmatprep.subr.bf16.mxu0 %v5406_v5 }
 0x1b1   : > { %4718 = vmatpush3.bf16.msra.mxu1 %v5408_v8  ;;  %v5458_v8 = vld [vmem:[%s5682_s10 + $0xad0] ss:$28 sps:$4 sm:$0xff]  }
 0x1b2   : > { %3573 = vmatpush1.bf16.msra.mxu0 %v5404_v7  ;;  %4725 = vmatprep.subr.bf16.mxu1 %v5412_v11  ;;  %v5454_v7 = vld [vmem:[%s5682_s10 + $0xc88] ss:$28 sps:$4 sm:$0xff]  }
 0x1b3   : > { %3583 = vmatprep.subr.bf16.mxu0 %v5411_v9  ;;  %v5461_v11 = vld [vmem:[%s5682_s10 + $0xcc4] ss:$28 sps:$4 sm:$0xff]  }
 0x1b4   : > { %3697 = vmatmul.mubr.bf16.vlgmr.msra.gmra.mrb[12].mxu1 %v5783_v18  ;;  %v5419_v18 = vld [vmem:[%s5682_s10 + $0xb00] ss:$28 sps:$4 sm:$0xff]  }
 0x1b5   : > { %3575 = vmatmul.mubr.bf16.vlgmr.msra.gmra.mrb[4].mxu0 %v5858_v28  ;;  %4726 = vmatpush3.bf16.msra.mxu1 %v5413_v15 }
 0x1b6   : > { %3584 = vmatpush1.bf16.msra.mxu0 %v5409_v13  ;;  %4727 = vmatprep.subr.bf16.mxu1 %v5417_v19  ;;  %v5462_v13 = vld [vmem:[%s5682_s10 + $0xcc8] ss:$28 sps:$4 sm:$0xff]   ;;  %v5459_v19 = vld [vmem:[%s5682_s10 + $0xcc0] ss:$28 sps:$4 sm:$0xff]  }
 0x1b7   : > { %3585 = vmatprep.subr.bf16.mxu0 %v5416_v17  ;;  %3736 = vmatprep.mubr.bf16.mxu1 %v5789_v22  ;;  %v5428_v22 = vld [vmem:[%s5682_s10 + $0x7c0] ss:$28 sps:$4 sm:$0xff]  }
 0x1b8   : > { %3615 = vmatprep.mubr.bf16.mxu0 %v5865_v32 }
 0x1b9   : > { %4728 = vmatpush3.bf16.msra.mxu1 %v5418_v20 }
 0x1ba   : > { %3586 = vmatpush1.bf16.msra.mxu0 %v5414_v60  ;;  %4729 = vmatprep.subr.bf16.mxu1 %v5422_v23  ;;  %v5463_v60 = vld [vmem:[%s5682_s10 + $0xb08] ss:$28 sps:$4 sm:$0xff]   ;;  %v5467_v23 = vld [vmem:[%s5682_s10 + $0xd00] ss:$28 sps:$4 sm:$0xff]  }
 0x1bb   : > { %3587 = vmatprep.subr.bf16.mxu0 %v5421_v21  ;;  %v5466_v21 = vld [vmem:[%s5682_s10 + $0xcfc] ss:$28 sps:$4 sm:$0xff]  }
 0x1bd   : > { %4730 = vmatpush3.bf16.msra.mxu1 %v5423_v24 }
 0x1be   : > { %3588 = vmatpush1.bf16.msra.mxu0 %v5419_v18  ;;  %4731 = vmatprep.subr.bf16.mxu1 %v5427_v26  ;;  %v5468_v26 = vld [vmem:[%s5682_s10 + $0xb40] ss:$28 sps:$4 sm:$0xff]  }
 0x1bf   : > { %3589 = vmatprep.subr.bf16.mxu0 %v5426_v25  ;;  %v5464_v25 = vld [vmem:[%s5682_s10 + $0xcf8] ss:$28 sps:$4 sm:$0xff]  }
 0x1c1   : > { %4732 = vmatpush3.bf16.msra.mxu1 %v5428_v22 }
 0x1c2   : > { %3590 = vmatpush1.bf16.msra.mxu0 %v5424_v27  ;;  %4733 = vmatprep.subr.bf16.mxu1 %v5432_v30  ;;  %v5472_v30 = vld [vmem:[%s5682_s10 + $0xd38] ss:$28 sps:$4 sm:$0xff]  }
 0x1c3   : > { %3591 = vmatprep.subr.bf16.mxu0 %v5431_v29  ;;  %v5471_v29 = vld [vmem:[%s5682_s10 + $0xd34] ss:$28 sps:$4 sm:$0xff]  }
 0x1c5   : > { %4734 = vmatpush3.bf16.msra.mxu1 %v5433_v10 }
 0x1c6   : > { %3592 = vmatpush1.bf16.msra.mxu0 %v5429_v31  ;;  %4735 = vmatprep.subr.bf16.mxu1 %v5437_v34  ;;  %v5469_v34 = vld [vmem:[%s5682_s10 + $0xd30] ss:$28 sps:$4 sm:$0xff]  }
 0x1c7   : > { %3593 = vmatprep.subr.bf16.mxu0 %v5436_v33 }
 0x1c8   : > { %v3289_v40 = vpop.f32.mrb[0].mxu0 }
 0x1c9   : > { %v4769_v41 = vadd.f32 %v3289_v40, %v6031_v14  ;;  %v3291_v42 = vpop.f32.mrb[1].mxu0  ;;  %4736 = vmatpush3.bf16.msra.mxu1 %v5438_v36 }
 0x1ca   : > { %v4770_v44 = vadd.f32 %v3291_v42, %v6034_v16  ;;  %v3293_v45 = vpop.f32.mrb[2].mxu0  ;;  %3594 = vmatpush1.bf16.msra.mxu0 %v5434_v35  ;;  %4737 = vmatprep.subr.bf16.mxu1 %v5442_v39  ;;  %v5473_v35 = vld [vmem:[%s5682_s10 + $0xb78] ss:$28 sps:$4 sm:$0xff]   ;;  %v5477_v39 = vld [vmem:[%s5682_s10 + $0xd70] ss:$28 sps:$4 sm:$0xff]  }
 0x1cb   : > { %v3785_v48 = vsel %vm3784_vm0, %v4769_v41, 0.0  ;;  %v3294_v50 = vpop.f32.mrb[3].mxu0  ;;  %3595 = vmatprep.subr.bf16.mxu0 %v5441_v38  ;;  %v5476_v38 = vld [vmem:[%s5682_s10 + $0xd6c] ss:$28 sps:$4 sm:$0xff]  }
 0x1cc   : > { %v3786_v14 = vrot.slane %v3785_v48, 4  ;;  %v3792_v52 = vsel %vm3784_vm0, %v4770_v44, 0.0  ;;  %v5478_v45 = vld [vmem:[%s5682_s10 + $0xbb0] ss:$28 sps:$4 sm:$0xff]  }
 0x1cd   : > { %v3793_v16 = vrot.slane %v3792_v52, 4  ;;  %4738 = vmatpush3.bf16.msra.mxu1 %v5443_v47  ;;  %v5481_v47 = vld [vmem:[%s5682_s10 + $0xda4] ss:$28 sps:$4 sm:$0xff]  }
 0x1ce   : > { %v3787_v53 = vadd.f32 %v3786_v14, %v3785_v48  ;;  %3596 = vmatpush1.bf16.msra.mxu0 %v5439_v46  ;;  %4739 = vmatprep.subr.bf16.mxu1 %v5447_v12  ;;  %v5482_v48 = vld [vmem:[%s5682_s10 + $0xda8] ss:$28 sps:$4 sm:$0xff]   ;;  %v5479_v14 = vld [vmem:[%s5682_s10 + $0xda0] ss:$28 sps:$4 sm:$0xff]  }
 0x1cf   : > { %v3794_v0 = vadd.f32 %v3793_v16, %v3792_v52  ;;  %3597 = vmatprep.subr.bf16.mxu0 %v5446_v51  ;;  %v5483_v52 = vld [vmem:[%s5682_s10 + $0xbe8] ss:$28 sps:$4 sm:$0xff]  }
 0x1d0   : > { %v3788_v58 = vrot.slane %v3787_v53, 2 }
 0x1d1   : > { %v3795_v59 = vrot.slane %v3794_v0, 2  ;;  %4740 = vmatpush3.bf16.msra.mxu1 %v5448_v55 }
 0x1d2   : > { %v3789_v61 = vadd.f32 %v3788_v58, %v3787_v53  ;;  %3598 = vmatpush1.bf16.msra.mxu0 %v5444_v54  ;;  %4747 = vmatprep.subr.bf16.mxu1 %v5452_v57  ;;  %v5486_v53 = vld [vmem:[%s5682_s10 + $0xddc] ss:$28 sps:$4 sm:$0xff]  }
 0x1d3   : > { %v3796_v1 = vadd.f32 %v3795_v59, %v3794_v0  ;;  %3599 = vmatprep.subr.bf16.mxu0 %v5451_v56  ;;  %v5487_v54 = vld [vmem:[%s5682_s10 + $0xde0] ss:$28 sps:$4 sm:$0xff]   ;;  %v5484_v57 = vld [vmem:[%s5682_s10 + $0xdd8] ss:$28 sps:$4 sm:$0xff]  }
 0x1d4   : > { %v3790_v4 = vrot.slane %v3789_v61, 1  ;;  %3737 = vmatmul.mubr.bf16.vlgmr.msra.gmra.mrb[16].mxu1 %v5858_v28  ;;  %v5488_v58 = vld [vmem:[%s5682_s10 + $0xc20] ss:$28 sps:$4 sm:$0xff]  }
 0x1d5   : > { %v3797_v5 = vrot.slane %v3796_v1, 1  ;;  %4748 = vmatpush3.bf16.msra.mxu1 %v5453_v63  ;;  %3776 = vmatprep.mubr.bf16.mxu1 %v5865_v32 }
 0x1d6   : > { %v3791_v6 = vadd.f32 %v3790_v4, %v3789_v61  ;;  %3600 = vmatpush1.bf16.msra.mxu0 %v5449_v62  ;;  %4749 = vmatprep.subr.bf16.mxu1 %v5457_v3 }
 0x1d7   : > { %v3798_v9 = vadd.f32 %v3797_v5, %v3796_v1  ;;  %3601 = vmatprep.subr.bf16.mxu0 %v5456_v2 }
 0x1d8   : > { %v3835_v15 = vmul.f32 0.5, %v3791_v6 }
 0x1d9   : > { %v3836_v17 = vmul.f32 0.5, %v3798_v9  ;;  %4750 = vmatpush3.bf16.msra.mxu1 %v5458_v8 }
 0x1da   : > { %v6195_v28 = vsub.f32 %v4769_v41, %v3835_v15  ;;  %3602 = vmatpush1.bf16.msra.mxu0 %v5454_v7  ;;  %4751 = vmatprep.subr.bf16.mxu1 %v5462_v13 }
 0x1db   : > { %v6199_v20 = vsub.f32 %v4770_v44, %v3836_v17  ;;  %3603 = vmatprep.subr.bf16.mxu0 %v5461_v11  ;;  %v5474_v44 = vld [vmem:[%s5682_s10 + $0xd68] ss:$28 sps:$4 sm:$0xff]  }
 0x1dc   : > { %v3849_v32 = vmul.f32 %v6195_v28, %v6195_v28 }
 0x1dd   : > { %v3850_v18 = vmul.f32 %v6199_v20, %v6199_v20  ;;  %4752 = vmatpush3.bf16.msra.mxu1 %v5463_v60 }
 0x1de   : > { %v3856_v24 = vsel %vm3784_vm0, %v3849_v32, 0.0  ;;  %3604 = vmatpush1.bf16.msra.mxu0 %v5459_v19  ;;  %4753 = vmatprep.subr.bf16.mxu1 %v5467_v23 }
 0x1df   : > { %v3857_v27 = vrot.slane %v3856_v24, 4  ;;  %v3863_v22 = vsel %vm3784_vm0, %v3850_v18, 0.0  ;;  %3605 = vmatprep.subr.bf16.mxu0 %v5466_v21 }
 0x1e0   : > { %v3864_v31 = vrot.slane %v3863_v22, 4 }
 0x1e1   : > { %v3858_v10 = vadd.f32 %v3857_v27, %v3856_v24  ;;  %4754 = vmatpush3.bf16.msra.mxu1 %v5468_v26 }
 0x1e2   : > { %v3865_v33 = vadd.f32 %v3864_v31, %v3863_v22  ;;  %3606 = vmatpush1.bf16.msra.mxu0 %v5464_v25  ;;  %4755 = vmatprep.subr.bf16.mxu1 %v5472_v30 }
 0x1e3   : > { %v3859_v36 = vrot.slane %v3858_v10, 2  ;;  %3607 = vmatprep.subr.bf16.mxu0 %v5471_v29 }
 0x1e4   : > { %v3866_v40 = vrot.slane %v3865_v33, 2 }
 0x1e5   : > { %v3860_v41 = vadd.f32 %v3859_v36, %v3858_v10  ;;  %4756 = vmatpush3.bf16.msra.mxu1 %v5473_v35 }
 0x1e6   : > { %v3867_v42 = vadd.f32 %v3866_v40, %v3865_v33  ;;  %3608 = vmatpush1.bf16.msra.mxu0 %v5469_v34  ;;  %4757 = vmatprep.subr.bf16.mxu1 %v5477_v39 }
 0x1e7   : > { %v3861_v46 = vrot.slane %v3860_v41, 1  ;;  %3609 = vmatprep.subr.bf16.mxu0 %v5476_v38 }
 0x1e8   : > { %v3868_v50 = vrot.slane %v3867_v42, 1 }
 0x1e9   : > { %v3862_v51 = vadd.f32 %v3861_v46, %v3860_v41  ;;  %4758 = vmatpush3.bf16.msra.mxu1 %v5478_v45 }
 0x1ea   : > { %v3869_v12 = vadd.f32 %v3868_v50, %v3867_v42  ;;  %3610 = vmatpush1.bf16.msra.mxu0 %v5474_v44  ;;  %4759 = vmatprep.subr.bf16.mxu1 %v5482_v48 }
 0x1eb   : > { %v3905_v16 = vmul.f32 0.5, %v3862_v51  ;;  %3611 = vmatprep.subr.bf16.mxu0 %v5481_v47 }
 0x1ec   : > { %v3906_v55 = vmul.f32 0.5, %v3869_v12 }
 0x1ed   : > { %v3913_v0 = vadd.f32 1e-05, %v3905_v16  ;;  %4760 = vmatpush3.bf16.msra.mxu1 %v5483_v52 }
 0x1ee   : > { %v3914_v56 = vadd.f32 1e-05, %v3906_v55  ;;  %3612 = vmatpush1.bf16.msra.mxu0 %v5479_v14  ;;  %4761 = vmatprep.subr.bf16.mxu1 %v5487_v54 }
 0x1ef   : > { %5489 = vrsqrt.f32 %v3913_v0  ;;  %3613 = vmatprep.subr.bf16.mxu0 %v5486_v53 }
 0x1f0   : > { %5491 = vrsqrt.f32 %v3914_v56 }
 0x1f1   : > { %4762 = vmatpush3.bf16.msra.mxu1 %v5488_v58 }
 0x1f2   : > { %3614 = vmatpush1.bf16.msra.mxu0 %v5484_v57 }
 0x1f4   : > { %3777 = vmatmul.mubr.bf16.vlgmr.msra.gmra.mrb[20].mxu1 %v5933_v37 }
 0x1f5   : > { %3616 = vmatmul.mubr.bf16.vlgmr.msra.gmra.mrb[4].mxu0 %v5933_v37 }
 0x1f9   : > { %v5490_v59 = vpop.eup %5489 }
 0x1fa   : > { %v5492_v61 = vpop.eup %5491 }
 0x1fb   : > { %v3934_v62 = vcombine.low %v5490_v59, %v5492_v61 }
 0x1fd   : > { %v6242_v53 = vrot.slane %v3934_v62, %v5735_v49 }
 0x247   : > { %v3453_v63 = vpop.f32.mrb[4].mxu1 }
 0x248   : > { %v3799_v1 = vsel %vm3784_vm0, %v3453_v63, 0.0  ;;  %v3455_v2 = vpop.f32.mrb[5].mxu1 }
 0x249   : > { %v3800_v3 = vrot.slane %v3799_v1, 4  ;;  %v3806_v4 = vsel %vm3784_vm0, %v3455_v2, 0.0  ;;  %v3457_v5 = vpop.f32.mrb[6].mxu1 }
 0x24a   : > { %v3807_v6 = vrot.slane %v3806_v4, 4  ;;  %v3458_v7 = vpop.f32.mrb[7].mxu1 }
 0x24b   : > { %v3801_v8 = vadd.f32 %v3800_v3, %v3799_v1 }
 0x24c   : > { %v3808_v9 = vadd.f32 %v3807_v6, %v3806_v4 }
 0x24d   : > { %v3802_v11 = vrot.slane %v3801_v8, 2 }
 0x24e   : > { %v3809_v13 = vrot.slane %v3808_v9, 2 }
 0x24f   : > { %v3803_v15 = vadd.f32 %v3802_v11, %v3801_v8 }
 0x250   : > { %v3810_v17 = vadd.f32 %v3809_v13, %v3808_v9 }
 0x251   : > { %v3804_v37 = vrot.slane %v3803_v15, 1 }
 0x252   : > { %v3811_v19 = vrot.slane %v3810_v17, 1 }
 0x253   : > { %v3805_v60 = vadd.f32 %v3804_v37, %v3803_v15 }
 0x254   : > { %v3812_v21 = vadd.f32 %v3811_v19, %v3810_v17 }
 0x255   : > { %v3837_v23 = vmul.f32 0.5, %v3805_v60 }
 0x256   : > { %v3838_v32 = vmul.f32 0.5, %v3812_v21 }
 0x257   : > { %v6231_v18 = vsub.f32 %v3453_v63, %v3837_v23 }
 0x258   : > { %v6233_v24 = vsub.f32 %v3455_v2, %v3838_v32 }
 0x259   : > { %v3851_v25 = vmul.f32 %v6231_v18, %v6231_v18 }
 0x25a   : > { %v3852_v26 = vmul.f32 %v6233_v24, %v6233_v24 }
 0x25b   : > { %v3870_v27 = vsel %vm3784_vm0, %v3851_v25, 0.0 }
 0x25c   : > { %v3871_v22 = vrot.slane %v3870_v27, 4  ;;  %v3877_v29 = vsel %vm3784_vm0, %v3852_v26, 0.0 }
 0x25d   : > { %v3878_v30 = vrot.slane %v3877_v29, 4 }
 0x25e   : > { %v3872_v31 = vadd.f32 %v3871_v22, %v3870_v27 }
 0x25f   : > { %v3879_v10 = vadd.f32 %v3878_v30, %v3877_v29 }
 0x260   : > { %v3873_v33 = vrot.slane %v3872_v31, 2 }
 0x261   : > { %v3880_v34 = vrot.slane %v3879_v10, 2 }
 0x262   : > { %v3874_v35 = vadd.f32 %v3873_v33, %v3872_v31 }
 0x263   : > { %v3881_v36 = vadd.f32 %v3880_v34, %v3879_v10 }
 0x264   : > { %v3875_v38 = vrot.slane %v3874_v35, 1 }
 0x265   : > { %v3882_v39 = vrot.slane %v3881_v36, 1 }
 0x266   : > { %v3876_v40 = vadd.f32 %v3875_v38, %v3874_v35 }
 0x267   : > { %v3883_v41 = vadd.f32 %v3882_v39, %v3881_v36  ;;  %v4697_v42 = vpop.f32.mrb[8].mxu1 }
 0x268   : > { %v3907_v44 = vmul.f32 0.5, %v3876_v40  ;;  %v4698_v45 = vpop.f32.mrb[9].mxu1 }
 0x269   : > { %v3908_v46 = vmul.f32 0.5, %v3883_v41  ;;  %v4699_v47 = vadd.f32 %v4698_v45, %v4697_v42  ;;  %v4700_v48 = vpop.f32.mrb[10].mxu1 }
 0x26a   : > { %v3915_v50 = vadd.f32 1e-05, %v3907_v44  ;;  %v4701_v51 = vpop.f32.mrb[11].mxu1 }
 0x26b   : > { %v3916_v12 = vadd.f32 1e-05, %v3908_v46 }
 0x26c   : > { %5493 = vrsqrt.f32 %v3915_v50 }
 0x26d   : > { %5495 = vrsqrt.f32 %v3916_v12 }
 0x276   : > { %v5494_v14 = vpop.eup %5493 }
 0x277   : > { %v5496_v52 = vpop.eup %5495 }
 0x278   : > { %v3935_v16 = vcombine.low %v5494_v14, %v5496_v52 }
 0x27a   : > { %v6245_v54 = vrot.slane %v3935_v16, %v5735_v49 }
 0x27c   : > { %v3965_v55 = vcombine.low %v6242_v53, %v6245_v54  ;;  %v4011_v53 = vsub.s32 6, %v5727_v43 }
 0x287   : > { %v4719_v0 = vpop.f32.mrb[12].mxu1 }
 0x288   : > { %v4720_v56 = vpop.f32.mrb[13].mxu1 }
 0x289   : > { %v4721_v57 = vadd.f32 %v4720_v56, %v4719_v0  ;;  %v4722_v58 = vpop.f32.mrb[14].mxu1 }
 0x28a   : > { %v4723_v59 = vpop.f32.mrb[15].mxu1 }
 0x28b   : > { %v3699_v61 = vadd.f32 %v4721_v57, %v4699_v47 }
 0x2a7   : > { %v4741_v63 = vpop.f32.mrb[16].mxu1 }
 0x2a8   : > { %v4742_v1 = vpop.f32.mrb[17].mxu1 }
 0x2a9   : > { %v4743_v2 = vadd.f32 %v4742_v1, %v4741_v63  ;;  %v4744_v3 = vpop.f32.mrb[18].mxu1 }
 0x2aa   : > { %v4745_v4 = vpop.f32.mrb[19].mxu1 }
 0x2ab   : > { %v3739_v5 = vadd.f32 %v4743_v2, %v3699_v61 }
 0x2c7   : > { %v4763_v6 = vpop.f32.mrb[20].mxu1 }
 0x2c8   : > { %v3617_v62 = vpop.f32.mrb[4].mxu0  ;;  %v4764_v9 = vpop.f32.mrb[21].mxu1 }
 0x2c9   : > { %v3813_v7 = vsel %vm3784_vm0, %v3617_v62, 0.0  ;;  %v3619_v8 = vpop.f32.mrb[5].mxu0  ;;  %v4765_v15 = vadd.f32 %v4764_v9, %v4763_v6  ;;  %v4766_v37 = vpop.f32.mrb[22].mxu1 }
 0x2ca   : > { %v3814_v11 = vrot.slane %v3813_v7, 4  ;;  %v3820_v13 = vsel %vm3784_vm0, %v3619_v8, 0.0  ;;  %v3621_v17 = vpop.f32.mrb[6].mxu0  ;;  %v4767_v21 = vpop.f32.mrb[23].mxu1 }
 0x2cb   : > { %v3821_v19 = vrot.slane %v3820_v13, 4  ;;  %v3622_v60 = vpop.f32.mrb[7].mxu0  ;;  %v3779_v32 = vadd.f32 %v4765_v15, %v3739_v5 }
 0x2cc   : > { %v3815_v23 = vadd.f32 %v3814_v11, %v3813_v7 }
 0x2cd   : > { %v3822_v25 = vadd.f32 %v3821_v19, %v3820_v13  ;;  %v3827_v27 = vsel %vm3784_vm0, %v3779_v32, 0.0 }
 0x2ce   : > { %v3816_v26 = vrot.slane %v3815_v23, 2  ;;  %v3828_v29 = vrot.slane %v3827_v27, 4 }
 0x2cf   : > { %v3823_v22 = vrot.slane %v3822_v25, 2 }
 0x2d0   : > { %v3817_v30 = vadd.f32 %v3816_v26, %v3815_v23  ;;  %v3829_v10 = vadd.f32 %v3828_v29, %v3827_v27  ;;  %v3973_v29 = vrot.slane %v3965_v55, %v5735_v49 }
 0x2d1   : > { %v3824_v31 = vadd.f32 %v3823_v22, %v3822_v25 }
 0x2d2   : > { %v3818_v33 = vrot.slane %v3817_v30, 1  ;;  %v3830_v35 = vrot.slane %v3829_v10, 2 }
 0x2d3   : > { %v3825_v34 = vrot.slane %v3824_v31, 1 }
 0x2d4   : > { %v3819_v36 = vadd.f32 %v3818_v33, %v3817_v30  ;;  %v3831_v39 = vadd.f32 %v3830_v35, %v3829_v10  ;;  %v3987_v10 = vsub.s32 0, %v5727_v43  ;;  %v4027_v33 = vld [vmem:[%s249_s19] sm:$0xff]  ;;  %v3991_v35 = vsub.s32 1, %v5727_v43 }
 0x2d5   : > { %v3826_v38 = vadd.f32 %v3825_v34, %v3824_v31  ;;  %v3912_v31 = vld [vmem:[%s244_s11] sm:$0xff] }
 0x2d6   : > { %v3839_v40 = vmul.f32 0.5, %v3819_v36  ;;  %v3832_v42 = vrot.slane %v3831_v39, 1  ;;  %v3995_v36 = vsub.s32 2, %v5727_v43  ;;  %v4032_v55 = vrot.slane %v4027_v33, %v3987_v10 }
 0x2d7   : > { %v3840_v41 = vmul.f32 0.5, %v3826_v38  ;;  %v3999_v38 = vsub.s32 3, %v5727_v43 }
 0x2d8   : > { %v6252_v44 = vsub.f32 %v3617_v62, %v3839_v40  ;;  %v3833_v46 = vadd.f32 %v3832_v42, %v3831_v39  ;;  %v4003_v39 = vsub.s32 4, %v5727_v43  ;;  %v4007_v40 = vsub.s32 5, %v5727_v43 }
 0x2d9   : > { %v6254_v45 = vsub.f32 %v3619_v8, %v3840_v41  ;;  %v4036_v41 = vrot.slane %v4027_v33, %v3991_v35  ;;  %v4040_v42 = vrot.slane %v4027_v33, %v3995_v36 }
 0x2da   : > { %v3853_v47 = vmul.f32 %v6252_v44, %v6252_v44  ;;  %v3841_v50 = vmul.f32 0.5, %v3833_v46  ;;  %v4044_v46 = vrot.slane %v4027_v33, %v3999_v38 }
 0x2db   : > { %v3854_v48 = vmul.f32 %v6254_v45, %v6254_v45 }
 0x2dc   : > { %v3884_v51 = vsel %vm3784_vm0, %v3853_v47, 0.0  ;;  %v6262_v52 = vsub.f32 %v3779_v32, %v3841_v50  ;;  %v4048_v47 = vrot.slane %v4027_v33, %v4003_v39 }
 0x2dd   : > { %v3885_v12 = vrot.slane %v3884_v51, 4  ;;  %v3891_v14 = vsel %vm3784_vm0, %v3854_v48, 0.0  ;;  %v4052_v48 = vrot.slane %v4027_v33, %v4007_v40 }
 0x2de   : > { %v3892_v16 = vrot.slane %v3891_v14, 4  ;;  %v3855_v56 = vmul.f32 %v6262_v52, %v6262_v52 }
 0x2df   : > { %v3886_v0 = vadd.f32 %v3885_v12, %v3884_v51 }
 0x2e0   : > { %v3893_v57 = vadd.f32 %v3892_v16, %v3891_v14  ;;  %v3898_v59 = vsel %vm3784_vm0, %v3855_v56, 0.0 }
 0x2e1   : > { %v3887_v58 = vrot.slane %v3886_v0, 2  ;;  %v3899_v63 = vrot.slane %v3898_v59, 4 }
 0x2e2   : > { %v3894_v61 = vrot.slane %v3893_v57, 2 }
 0x2e3   : > { %v3888_v1 = vadd.f32 %v3887_v58, %v3886_v0  ;;  %v3900_v3 = vadd.f32 %v3899_v63, %v3898_v59 }
 0x2e4   : > { %v3895_v2 = vadd.f32 %v3894_v61, %v3893_v57  ;;  %v4056_v57 = vrot.slane %v4027_v33, %v4011_v53 }
 0x2e5   : > { %v3889_v4 = vrot.slane %v3888_v1, 1  ;;  %v3901_v62 = vrot.slane %v3900_v3, 2 }
 0x2e6   : > { %v3896_v5 = vrot.slane %v3895_v2, 1 }
 0x2e7   : > { %v3890_v6 = vadd.f32 %v3889_v4, %v3888_v1  ;;  %v3902_v8 = vadd.f32 %v3901_v62, %v3900_v3 }
 0x2e8   : > { %v3897_v7 = vadd.f32 %v3896_v5, %v3895_v2 }
 0x2e9   : > { %v3909_v9 = vmul.f32 0.5, %v3890_v6  ;;  %v3903_v13 = vrot.slane %v3902_v8, 1 }
 0x2ea   : > { %v3910_v11 = vmul.f32 0.5, %v3897_v7 }
 0x2eb   : > { %v3917_v15 = vadd.f32 1e-05, %v3909_v9  ;;  %v3904_v37 = vadd.f32 %v3903_v13, %v3902_v8 }
 0x2ec   : > { %v3918_v17 = vadd.f32 1e-05, %v3910_v11 }
 0x2ed   : > { %5497 = vrsqrt.f32 %v3917_v15  ;;  %v3911_v19 = vmul.f32 0.5, %v3904_v37 }
 0x2ee   : > { %5499 = vrsqrt.f32 %v3918_v17 }
 0x2ef   : > { %v3919_v60 = vadd.f32 1e-05, %v3911_v19 }
 0x2f1   : > { %5501 = vrsqrt.f32 %v3919_v60 }
 0x2f7   : > { %v5498_v21 = vpop.eup %5497 }
 0x2f8   : > { %v5500_v23 = vpop.eup %5499 }
 0x2f9   : > { %v3936_v32 = vcombine.low %v5498_v21, %v5500_v23 }
 0x2fb   : > { %v5502_v25 = vpop.eup %5501  ;;  %v3957_v26 = vrot.slane %v3936_v32, %v5735_v49 }
 0x2fc   : > { %v3964_v27 = vrot.slane %v5502_v25, %v5735_v49 }
 0x2fe   : > { %v3966_v22 = vcombine.low %v3957_v26, %v3964_v27 }
 0x300   : > { %v3980_v30 = vrot.slane %v3966_v22, %v5735_v49 }
 0x302   : > { %v3981_v34 = vcombine.low %v3973_v29, %v3980_v30 }
 0x304   : > { %v3983_v54 = vmul.f32 %v3981_v34, %v3912_v31 }
 0x306   : > { %v3988_v50 = vrot.slane %v3983_v54, %v3987_v10  ;;  %v3992_v51 = vrot.slane %v3983_v54, %v3991_v35  ;;  %v3996_v12 = vrot.slane %v3983_v54, %v3995_v36  ;;  %v4000_v14 = vrot.slane %v3983_v54, %v3999_v38 }
 0x307   : > { %v4004_v16 = vrot.slane %v3983_v54, %v4003_v39  ;;  %v4008_v0 = vrot.slane %v3983_v54, %v4007_v40  ;;  %v4012_v56 = vrot.slane %v3983_v54, %v4011_v53 }
 0x308   : > { %v4020_v58 = vmul.f32 %v3988_v50, %v6195_v28  ;;  %v4021_v59 = vmul.f32 %v3992_v51, %v6199_v20  ;;  %v4022_v43 = vmul.f32 %v3996_v12, %v6231_v18  ;;  %v4023_v61 = vmul.f32 %v4000_v14, %v6233_v24 }
 0x309   : > { %v4024_v63 = vmul.f32 %v4004_v16, %v6252_v44  ;;  %v4025_v1 = vmul.f32 %v4008_v0, %v6254_v45  ;;  %v4026_v2 = vmul.f32 %v4012_v56, %v6262_v52 }
 0x30a   : > { %v4064_v3 = vadd.f32 %v4032_v55, %v4020_v58  ;;  %v4065_v4 = vadd.f32 %v4036_v41, %v4021_v59  ;;  %v4066_v5 = vadd.f32 %v4040_v42, %v4022_v43  ;;  %v4067_v62 = vadd.f32 %v4044_v46, %v4023_v61 }
 0x30b   : > { %v4068_v6 = vadd.f32 %v4048_v47, %v4024_v63  ;;  %v4069_v7 = vadd.f32 %v4052_v48, %v4025_v1  ;;  %v4070_v8 = vadd.f32 %v4056_v57, %v4026_v2 }
 0x30c   : > { %v4071_v28 = vmax.f32 %v4064_v3, 0.0  ;;  %v4072_v9 = vmax.f32 %v4065_v4, 0.0  ;;  %v4073_v20 = vmax.f32 %v4066_v5, 0.0  ;;  %v4074_v11 = vmax.f32 %v4067_v62, 0.0 }
 0x30d   : > { %v4075_v18 = vmax.f32 %v4068_v6, 0.0  ;;  %v4076_v24 = vmax.f32 %v4069_v7, 0.0  ;;  %v4077_v13 = vmax.f32 %v4070_v8, 0.0 }
 0x30e   : > { %v4675_v44 = vpack.c.bf16 %v4072_v9, %v4071_v28  ;;  %v4676_v15 = vpack.c.bf16 %v4074_v11, %v4073_v20 }
 0x30f   : > { %v4084_v45 = vpack.c.bf16 %v4077_v13, %v4077_v13  ;;  %v4677_v17 = vpack.c.bf16 %v4076_v24, %v4075_v18 }
 0x310   : > { %v4101_v52 = vrot.slane %v4675_v44, %v5735_v49  ;;  %v4108_v37 = vrot.slane %v4676_v15, %v5735_v49 }
 0x311   : > { %v4115_v19 = vrot.slane %v4677_v17, %v5735_v49  ;;  %v4122_v60 = vrot.slane %v4084_v45, %v5735_v49 }
 0x312   : > { %v4123_v21 = vcombine.low %v4101_v52, %v4108_v37 }
 0x313   : > { %v4124_v23 = vcombine.low %v4115_v19, %v4122_v60 }
 0x314   : > { %v4131_v32 = vrot.slane %v4123_v21, %v5735_v49 }
 0x315   : > { %v4138_v25 = vrot.slane %v4124_v23, %v5735_v49 }
 0x317   : > { %v4139_v26 = vcombine.low %v4131_v32, %v4138_v25 }
 0x319   : > { %4141 = vst [vmem:[%s254_s15] sm:$0x7f] %v4139_v26 }
 0x31a PF: > { %p14_p8 = scmp.ge.s32.totalorder %s5619_s20, 9   ;;  %s6330_s15 = smov %s5559_s16 }
 0x31b   : > { %s6331_s16 = smov %s5563_s17  ;;  %s6332_s17 = smov %s5629_s23 }
 0x31c   : > { %s6333_s18 = smov %s5619_s20  ;;  %16 = sbr.rel (!%p14_p8) target bundleno = 3 (0x3), region = 82 }
 0x323   :  { %4162 = vsyncpa [#allocation3], 1 }
 0x324   :  { %4164 = vsyncpa [#allocation3 + $0x1], 1 }

// kernel: generator_forward.9
= control target key start
LH: loop header
LB: loop body
LE: loop exit
PB: predicated region body
PF: predicated region fallthrough
CT: control target
= control target key end

     0   :  { %vm87_vm0 = vcmask 1043456   ;;  %s992_s0 = inlined_call_operand.vmem [shape: bf16[196,128], index: 0, kind: input, shape index: {}]   ;;  %s993_s1 = inlined_call_operand.vmem [shape: f32[1,128], index: 1, kind: input, shape index: {}]   ;;  %s994_s2 = inlined_call_operand.vmem [shape: f32[1,128], index: 2, kind: input, shape index: {}]   ;;  %s995_s3 = inlined_call_operand.vmem [shape: bf16[196,128], index: 3, kind: output, shape index: {}]  }
   0x1   :  { %v622_v0 = vld [vmem:[%s992_s0] sm:$0xff]   ;;  %v627_v1 = vld [vmem:[%s992_s0 + $0x8] sm:$0xff]   ;;  %v635_v5 = vld [vmem:[%s992_s0 + $0x10] sm:$0xff]  }
   0x2   :  { %v467_v2 = vunpack.c.l.bf16 %v622_v0  ;;  %v468_v3 = vunpack.c.h.bf16 %v622_v0  ;;  %v471_v4 = vunpack.c.l.bf16 %v627_v1  ;;  %v472_v6 = vunpack.c.h.bf16 %v627_v1  ;;  %v648_v10 = vld [vmem:[%s992_s0 + $0x18] sm:$0xff]   ;;  %v659_v15 = vld [vmem:[%s992_s0 + $0x20] sm:$0xff]   ;;  %v670_v20 = vld [vmem:[%s992_s0 + $0x28] sm:$0xff]  }
   0x3   :  { %v475_v8 = vunpack.c.l.bf16 %v635_v5  ;;  %v476_v11 = vunpack.c.h.bf16 %v635_v5  ;;  %v479_v13 = vunpack.c.l.bf16 %v648_v10  ;;  %v480_v16 = vunpack.c.h.bf16 %v648_v10  ;;  %v681_v25 = vld [vmem:[%s992_s0 + $0x30] sm:$0xff]   ;;  %v692_v30 = vld [vmem:[%s992_s0 + $0x38] sm:$0xff]   ;;  %v703_v35 = vld [vmem:[%s992_s0 + $0x40] sm:$0xff]  }
   0x4   :  { %v64_v7 = vadd.f32 %v468_v3, %v467_v2  ;;  %v483_v18 = vunpack.c.l.bf16 %v659_v15  ;;  %v484_v21 = vunpack.c.h.bf16 %v659_v15  ;;  %v487_v23 = vunpack.c.l.bf16 %v670_v20  ;;  %v714_v40 = vld [vmem:[%s992_s0 + $0x48] sm:$0xff]   ;;  %v725_v45 = vld [vmem:[%s992_s0 + $0x50] sm:$0xff]   ;;  %v736_v50 = vld [vmem:[%s992_s0 + $0x58] sm:$0xff]  }
   0x5   :  { %v488_v26 = vunpack.c.h.bf16 %v670_v20  ;;  %v491_v28 = vunpack.c.l.bf16 %v681_v25  ;;  %v492_v31 = vunpack.c.h.bf16 %v681_v25  ;;  %v495_v33 = vunpack.c.l.bf16 %v692_v30  ;;  %v742_v52 = vld [vmem:[%s992_s0 + $0x60] sm:$0x3]  ;;  %s598_s0 = smov 64  }
   0x6   :  { %v65_v9 = vadd.f32 %v471_v4, %v64_v7  ;;  %v496_v36 = vunpack.c.h.bf16 %v692_v30  ;;  %v499_v38 = vunpack.c.l.bf16 %v703_v35  ;;  %v500_v41 = vunpack.c.h.bf16 %v703_v35 }
   0x7   :  { %v503_v43 = vunpack.c.l.bf16 %v714_v40  ;;  %v504_v46 = vunpack.c.h.bf16 %v714_v40  ;;  %v507_v48 = vunpack.c.l.bf16 %v725_v45  ;;  %v508_v51 = vunpack.c.h.bf16 %v725_v45 }
   0x8   :  { %v66_v12 = vadd.f32 %v472_v6, %v65_v9  ;;  %v511_v54 = vunpack.c.l.bf16 %v736_v50  ;;  %v63_v56 = vunpack.c.l.bf16 %v742_v52  ;;  %v512_v57 = vunpack.c.h.bf16 %v736_v50 }
   0xa   :  { %v67_v14 = vadd.f32 %v475_v8, %v66_v12  ;;  %v88_v60 = vsel %vm87_vm0, %v63_v56, 0.0 }
   0xc   :  { %v68_v17 = vadd.f32 %v476_v11, %v67_v14 }
   0xe   :  { %v69_v19 = vadd.f32 %v479_v13, %v68_v17 }
  0x10   :  { %v70_v22 = vadd.f32 %v480_v16, %v69_v19 }
  0x12   :  { %v71_v24 = vadd.f32 %v483_v18, %v70_v22  ;;  %v102_v22 = vlaneseq }
  0x14   :  { %v72_v27 = vadd.f32 %v484_v21, %v71_v24  ;;  %v761_v24 = vshrl.u32 %v102_v22, 7 }
  0x16   :  { %v73_v29 = vadd.f32 %v487_v23, %v72_v27 }
  0x18   :  { %v74_v32 = vadd.f32 %v488_v26, %v73_v29 }
  0x1a   :  { %v75_v34 = vadd.f32 %v491_v28, %v74_v32 }
  0x1c   :  { %v76_v37 = vadd.f32 %v492_v31, %v75_v34  ;;  %v104_v34 = vsub.s32 0, %v761_v24 }
  0x1e   :  { %v77_v39 = vadd.f32 %v495_v33, %v76_v37 }
  0x20   :  { %v78_v42 = vadd.f32 %v496_v36, %v77_v39 }
  0x22   :  { %v79_v44 = vadd.f32 %v499_v38, %v78_v42 }
  0x24   :  { %v80_v47 = vadd.f32 %v500_v41, %v79_v44 }
  0x26   :  { %v81_v49 = vadd.f32 %v503_v43, %v80_v47 }
  0x28   :  { %v82_v53 = vadd.f32 %v504_v46, %v81_v49 }
  0x2a   :  { %v83_v55 = vadd.f32 %v507_v48, %v82_v53 }
  0x2c   :  { %v84_v58 = vadd.f32 %v508_v51, %v83_v55 }
  0x2e   :  { %v85_v59 = vadd.f32 %v511_v54, %v84_v58 }
  0x30   :  { %v86_v61 = vadd.f32 %v512_v57, %v85_v59 }
  0x32   :  { %v89_v62 = vadd.f32 %v88_v60, %v86_v61 }
  0x34   :  { %v90_v63 = vrot.slane %v89_v62, 4 }
  0x36   :  { %v91_v7 = vadd.f32 %v90_v63, %v89_v62 }
  0x38   :  { %v92_v9 = vrot.slane %v91_v7, 2 }
  0x3a   :  { %v93_v12 = vadd.f32 %v92_v9, %v91_v7 }
  0x3c   :  { %v94_v14 = vrot.slane %v93_v12, 1 }
  0x3e   :  { %v95_v17 = vadd.f32 %v94_v14, %v93_v12 }
  0x40   :  { %v97_v19 = vmul.f32 0.0051020407, %v95_v17 }
  0x42   :  { %98 = vrot.lane.b32.xlu0 %v97_v19, %s598_s0 }
  0xb4   :  { %v99_v27 = vpop.permute.xlu0 %98 }
  0xb5   :  { %v100_v29 = vadd.f32 %v99_v27, %v97_v19 }
  0xb7   :  { %v101_v32 = vmul.f32 0.5, %v100_v29 }
  0xb9   :  { %v766_v37 = vrot.slane %v101_v32, %v104_v34 }
  0xbb   :  { %v771_v39 = vsub.f32 %v467_v2, %v766_v37  ;;  %v776_v42 = vsub.f32 %v468_v3, %v766_v37  ;;  %v781_v44 = vsub.f32 %v471_v4, %v766_v37  ;;  %v790_v2 = vsub.f32 %v472_v6, %v766_v37 }
  0xbc   :  { %v795_v0 = vsub.f32 %v475_v8, %v766_v37  ;;  %v802_v53 = vsub.f32 %v476_v11, %v766_v37  ;;  %v809_v6 = vsub.f32 %v479_v13, %v766_v37  ;;  %v816_v59 = vsub.f32 %v480_v16, %v766_v37 }
  0xbd   :  { %v131_v47 = vmul.f32 %v771_v39, %v771_v39  ;;  %v132_v49 = vmul.f32 %v776_v42, %v776_v42  ;;  %v133_v3 = vmul.f32 %v781_v44, %v781_v44  ;;  %v134_v55 = vmul.f32 %v790_v2, %v790_v2 }
  0xbe   :  { %v135_v8 = vmul.f32 %v795_v0, %v795_v0  ;;  %v136_v5 = vmul.f32 %v802_v53, %v802_v53  ;;  %v823_v60 = vsub.f32 %v483_v18, %v766_v37  ;;  %v137_v13 = vmul.f32 %v809_v6, %v809_v6 }
  0xbf   :  { %v156_v4 = vadd.f32 %v132_v49, %v131_v47  ;;  %v830_v62 = vsub.f32 %v484_v21, %v766_v37  ;;  %v138_v10 = vmul.f32 %v816_v59, %v816_v59  ;;  %v837_v63 = vsub.f32 %v487_v23, %v766_v37 }
  0xc0   :  { %v139_v18 = vmul.f32 %v823_v60, %v823_v60  ;;  %v844_v9 = vsub.f32 %v488_v26, %v766_v37  ;;  %v851_v12 = vsub.f32 %v491_v28, %v766_v37  ;;  %v858_v17 = vsub.f32 %v492_v31, %v766_v37 }
  0xc1   :  { %v157_v1 = vadd.f32 %v156_v4, %v133_v3  ;;  %v140_v15 = vmul.f32 %v830_v62, %v830_v62  ;;  %v141_v23 = vmul.f32 %v837_v63, %v837_v63  ;;  %v865_v19 = vsub.f32 %v495_v33, %v766_v37 }
  0xc2   :  { %v142_v20 = vmul.f32 %v844_v9, %v844_v9  ;;  %v143_v28 = vmul.f32 %v851_v12, %v851_v12  ;;  %v872_v27 = vsub.f32 %v496_v36, %v766_v37  ;;  %v144_v25 = vmul.f32 %v858_v17, %v858_v17 }
  0xc3   :  { %v158_v58 = vadd.f32 %v157_v1, %v134_v55  ;;  %v879_v29 = vsub.f32 %v499_v38, %v766_v37  ;;  %v145_v33 = vmul.f32 %v865_v19, %v865_v19  ;;  %v886_v47 = vsub.f32 %v500_v41, %v766_v37 }
  0xc4   :  { %v146_v30 = vmul.f32 %v872_v27, %v872_v27  ;;  %v893_v49 = vsub.f32 %v503_v43, %v766_v37  ;;  %v900_v4 = vsub.f32 %v504_v46, %v766_v37  ;;  %v126_v55 = vsub.f32 %v507_v48, %v766_v37 }
  0xc5   :  { %v159_v11 = vadd.f32 %v158_v58, %v135_v8  ;;  %v147_v38 = vmul.f32 %v879_v29, %v879_v29  ;;  %v148_v35 = vmul.f32 %v886_v47, %v886_v47  ;;  %v127_v8 = vsub.f32 %v508_v51, %v766_v37 }
  0xc6   :  { %v149_v43 = vmul.f32 %v893_v49, %v893_v49  ;;  %v150_v40 = vmul.f32 %v900_v4, %v900_v4  ;;  %v128_v58 = vsub.f32 %v511_v54, %v766_v37  ;;  %v130_v48 = vsub.f32 %v63_v56, %v766_v37 }
  0xc7   :  { %v160_v61 = vadd.f32 %v159_v11, %v136_v5  ;;  %v151_v5 = vmul.f32 %v126_v55, %v126_v55  ;;  %v152_v45 = vmul.f32 %v127_v8, %v127_v8 }
  0xc9   :  { %v161_v16 = vadd.f32 %v160_v61, %v137_v13  ;;  %v129_v13 = vsub.f32 %v512_v57, %v766_v37  ;;  %v153_v61 = vmul.f32 %v128_v58, %v128_v58 }
  0xcb   :  { %v162_v7 = vadd.f32 %v161_v16, %v138_v10  ;;  %v155_v16 = vmul.f32 %v130_v48, %v130_v48 }
  0xcd   :  { %v163_v21 = vadd.f32 %v162_v7, %v139_v18  ;;  %v154_v18 = vmul.f32 %v129_v13, %v129_v13  ;;  %v179_v54 = vsel %vm87_vm0, %v155_v16, 0.0 }
  0xcf   :  { %v164_v14 = vadd.f32 %v163_v21, %v140_v15 }
  0xd1   :  { %v165_v26 = vadd.f32 %v164_v14, %v141_v23 }
  0xd3   :  { %v166_v22 = vadd.f32 %v165_v26, %v142_v20 }
  0xd5   :  { %v167_v31 = vadd.f32 %v166_v22, %v143_v28 }
  0xd7   :  { %v168_v32 = vadd.f32 %v167_v31, %v144_v25  ;;  %v192_v25 = vld [vmem:[%s993_s1] sm:$0x1] }
  0xd9   :  { %v169_v36 = vadd.f32 %v168_v32, %v145_v33 }
  0xdb   :  { %v170_v3 = vadd.f32 %v169_v36, %v146_v30 }
  0xdd   :  { %v171_v41 = vadd.f32 %v170_v3, %v147_v38 }
  0xdf   :  { %v172_v1 = vadd.f32 %v171_v41, %v148_v35 }
  0xe1   :  { %v173_v46 = vadd.f32 %v172_v1, %v149_v43 }
  0xe3   :  { %v174_v11 = vadd.f32 %v173_v46, %v150_v40 }
  0xe5   :  { %v175_v51 = vadd.f32 %v174_v11, %v151_v5 }
  0xe7   :  { %v176_v10 = vadd.f32 %v175_v51, %v152_v45 }
  0xe9   :  { %v177_v7 = vadd.f32 %v176_v10, %v153_v61 }
  0xeb   :  { %v178_v15 = vadd.f32 %v177_v7, %v154_v18 }
  0xed   :  { %v180_v21 = vadd.f32 %v179_v54, %v178_v15 }
  0xef   :  { %v181_v23 = vrot.slane %v180_v21, 4 }
  0xf1   :  { %v182_v14 = vadd.f32 %v181_v23, %v180_v21 }
  0xf3   :  { %v183_v20 = vrot.slane %v182_v14, 2 }
  0xf5   :  { %v184_v52 = vadd.f32 %v183_v20, %v182_v14 }
  0xf7   :  { %v185_v56 = vrot.slane %v184_v52, 1 }
  0xf9   :  { %v186_v26 = vadd.f32 %v185_v56, %v184_v52 }
  0xfb   :  { %v187_v28 = vmul.f32 0.0051020407, %v186_v26 }
  0xfd   :  { %188 = vrot.lane.b32.xlu0 %v187_v28, %s598_s0 }
 0x16f   :  { %v189_v50 = vpop.permute.xlu0 %188 }
 0x170   :  { %v190_v57 = vadd.f32 %v189_v50, %v187_v28 }
 0x172   :  { %v191_v37 = vmul.f32 0.5, %v190_v57 }
 0x174   :  { %v193_v22 = vadd.f32 1e-05, %v191_v37 }
 0x176   :  { %596 = vrsqrt.f32 %v193_v22 }
 0x180   :  { %v597_v31 = vpop.eup %596 }
 0x181   :  { %v195_v33 = vmul.f32 %v597_v31, %v192_v25 }
 0x183   :  { %v200_v32 = vrot.slane %v195_v33, %v104_v34 }
 0x185   :  { %v202_v30 = vmul.f32 %v200_v32, %v771_v39  ;;  %v203_v36 = vmul.f32 %v200_v32, %v776_v42  ;;  %v204_v38 = vmul.f32 %v200_v32, %v781_v44  ;;  %v205_v3 = vmul.f32 %v200_v32, %v790_v2 }
 0x186   :  { %v206_v35 = vmul.f32 %v200_v32, %v795_v0  ;;  %v207_v41 = vmul.f32 %v200_v32, %v802_v53  ;;  %v208_v43 = vmul.f32 %v200_v32, %v809_v6  ;;  %v209_v1 = vmul.f32 %v200_v32, %v816_v59  ;;  %v414_v53 = vld [vmem:[%s994_s2] ss:$0 sm:$0xff] }
 0x187   :  { %v210_v40 = vmul.f32 %v200_v32, %v823_v60  ;;  %v211_v24 = vmul.f32 %v200_v32, %v830_v62  ;;  %v212_v34 = vmul.f32 %v200_v32, %v837_v63  ;;  %v213_v39 = vmul.f32 %v200_v32, %v844_v9 }
 0x188   :  { %v214_v42 = vmul.f32 %v200_v32, %v851_v12  ;;  %v215_v44 = vmul.f32 %v200_v32, %v858_v17  ;;  %v216_v2 = vmul.f32 %v200_v32, %v865_v19  ;;  %v217_v0 = vmul.f32 %v200_v32, %v872_v27 }
 0x189   :  { %v218_v6 = vmul.f32 %v200_v32, %v879_v29  ;;  %v219_v59 = vmul.f32 %v200_v32, %v886_v47  ;;  %v220_v60 = vmul.f32 %v200_v32, %v893_v49  ;;  %v221_v62 = vmul.f32 %v200_v32, %v900_v4 }
 0x18a   :  { %v222_v63 = vmul.f32 %v200_v32, %v126_v55  ;;  %v223_v9 = vmul.f32 %v200_v32, %v127_v8  ;;  %v224_v12 = vmul.f32 %v200_v32, %v128_v58  ;;  %v225_v17 = vmul.f32 %v200_v32, %v129_v13 }
 0x18b   :  { %v226_v46 = vmul.f32 %v200_v32, %v130_v48  ;;  %v234_v19 = vadd.f32 %v414_v53, %v202_v30  ;;  %v235_v5 = vadd.f32 %v414_v53, %v203_v36  ;;  %v236_v27 = vadd.f32 %v414_v53, %v204_v38 }
 0x18c   :  { %v237_v11 = vadd.f32 %v414_v53, %v205_v3  ;;  %v238_v45 = vadd.f32 %v414_v53, %v206_v35  ;;  %v239_v51 = vadd.f32 %v414_v53, %v207_v41  ;;  %v240_v61 = vadd.f32 %v414_v53, %v208_v43 }
 0x18d   :  { %v241_v10 = vadd.f32 %v414_v53, %v209_v1  ;;  %v242_v29 = vadd.f32 %v414_v53, %v210_v40  ;;  %v243_v16 = vadd.f32 %v414_v53, %v211_v24  ;;  %v244_v47 = vadd.f32 %v414_v53, %v212_v34 }
 0x18e   :  { %v245_v18 = vadd.f32 %v414_v53, %v213_v39  ;;  %v246_v49 = vadd.f32 %v414_v53, %v214_v42  ;;  %v247_v7 = vadd.f32 %v414_v53, %v215_v44  ;;  %v248_v4 = vadd.f32 %v414_v53, %v216_v2 }
 0x18f   :  { %v249_v55 = vadd.f32 %v414_v53, %v217_v0  ;;  %v250_v8 = vadd.f32 %v414_v53, %v218_v6  ;;  %v251_v58 = vadd.f32 %v414_v53, %v219_v59  ;;  %v252_v13 = vadd.f32 %v414_v53, %v220_v60 }
 0x190   :  { %v253_v48 = vadd.f32 %v414_v53, %v221_v62  ;;  %v254_v15 = vadd.f32 %v414_v53, %v222_v63  ;;  %v255_v54 = vadd.f32 %v414_v53, %v223_v9  ;;  %v256_v21 = vadd.f32 %v414_v53, %v224_v12 }
 0x191   :  { %v257_v23 = vadd.f32 %v414_v53, %v225_v17  ;;  %v258_v14 = vadd.f32 %v414_v53, %v226_v46  ;;  %v259_v20 = vmax.f32 %v234_v19, 0.0  ;;  %v260_v52 = vmax.f32 %v235_v5, 0.0 }
 0x192   :  { %v261_v56 = vmax.f32 %v236_v27, 0.0  ;;  %v262_v26 = vmax.f32 %v237_v11, 0.0  ;;  %v263_v28 = vmax.f32 %v238_v45, 0.0  ;;  %v264_v50 = vmax.f32 %v239_v51, 0.0 }
 0x193   :  { %v265_v57 = vmax.f32 %v240_v61, 0.0  ;;  %v266_v37 = vmax.f32 %v241_v10, 0.0  ;;  %v267_v22 = vmax.f32 %v242_v29, 0.0  ;;  %v268_v25 = vmax.f32 %v243_v16, 0.0 }
 0x194   :  { %v269_v31 = vmax.f32 %v244_v47, 0.0  ;;  %v270_v33 = vmax.f32 %v245_v18, 0.0  ;;  %v271_v32 = vmax.f32 %v246_v49, 0.0  ;;  %v272_v30 = vmax.f32 %v247_v7, 0.0 }
 0x195   :  { %v273_v36 = vmax.f32 %v248_v4, 0.0  ;;  %v274_v38 = vmax.f32 %v249_v55, 0.0  ;;  %v275_v3 = vmax.f32 %v250_v8, 0.0  ;;  %v276_v35 = vmax.f32 %v251_v58, 0.0 }
 0x196   :  { %v277_v41 = vmax.f32 %v252_v13, 0.0  ;;  %v278_v43 = vmax.f32 %v253_v48, 0.0  ;;  %v279_v1 = vmax.f32 %v254_v15, 0.0  ;;  %v280_v40 = vmax.f32 %v255_v54, 0.0 }
 0x197   :  { %v281_v24 = vmax.f32 %v256_v21, 0.0  ;;  %v282_v34 = vmax.f32 %v257_v23, 0.0  ;;  %v283_v39 = vmax.f32 %v258_v14, 0.0  ;;  %v516_v42 = vpack.c.bf16 %v260_v52, %v259_v20 }
 0x198   :  { %v521_v44 = vpack.c.bf16 %v262_v26, %v261_v56  ;;  %v526_v2 = vpack.c.bf16 %v264_v50, %v263_v28  ;;  %v531_v0 = vpack.c.bf16 %v266_v37, %v265_v57  ;;  %v536_v53 = vpack.c.bf16 %v268_v25, %v267_v22 }
 0x199   :  { %v464_v6 = vpack.c.bf16 %v283_v39, %v283_v39  ;;  %517 = vst [vmem:[%s995_s3] sm:$0xff] %v516_v42   ;;  %v541_v59 = vpack.c.bf16 %v270_v33, %v269_v31  ;;  %v546_v60 = vpack.c.bf16 %v272_v30, %v271_v32  ;;  %v551_v62 = vpack.c.bf16 %v274_v38, %v273_v36 }
 0x19a   :  { %584 = vst [vmem:[%s995_s3 + $0x8] sm:$0xff] %v521_v44   ;;  %585 = vst [vmem:[%s995_s3 + $0x10] sm:$0xff] %v526_v2   ;;  %v556_v63 = vpack.c.bf16 %v276_v35, %v275_v3  ;;  %v561_v9 = vpack.c.bf16 %v278_v43, %v277_v41  ;;  %v566_v12 = vpack.c.bf16 %v280_v40, %v279_v1 }
 0x19b   :  { %586 = vst [vmem:[%s995_s3 + $0x18] sm:$0xff] %v531_v0   ;;  %587 = vst [vmem:[%s995_s3 + $0x20] sm:$0xff] %v536_v53   ;;  %v571_v17 = vpack.c.bf16 %v282_v34, %v281_v24 }
 0x19c   :  { %588 = vst [vmem:[%s995_s3 + $0x28] sm:$0xff] %v541_v59   ;;  %589 = vst [vmem:[%s995_s3 + $0x30] sm:$0xff] %v546_v60  }
 0x19d   :  { %590 = vst [vmem:[%s995_s3 + $0x38] sm:$0xff] %v551_v62   ;;  %409 = vst [vmem:[%s995_s3 + $0x60] sm:$0x3] %v464_v6 }
 0x19e   :  { %591 = vst [vmem:[%s995_s3 + $0x40] sm:$0xff] %v556_v63   ;;  %592 = vst [vmem:[%s995_s3 + $0x48] sm:$0xff] %v561_v9  }
 0x19f   :  { %593 = vst [vmem:[%s995_s3 + $0x50] sm:$0xff] %v566_v12   ;;  %594 = vst [vmem:[%s995_s3 + $0x58] sm:$0xff] %v571_v17  }

// kernel: generator_forward.10
= control target key start
LH: loop header
LB: loop body
LE: loop exit
PB: predicated region body
PF: predicated region fallthrough
CT: control target
= control target key end

     0   :  { %v1245_v0 = vmov 0.0   ;;  %vm1246_vm0 = vmmov 0   ;;  %vm216_vm1 = vcmask 523264   ;;  %s1507_s1 = inlined_call_operand.vmem [shape: bf16[64,128], index: 1, kind: input, shape index: {}]   ;;  %s1508_s0 = inlined_call_operand.vmem [shape: bf16[392,64], index: 0, kind: input, shape index: {}]   ;;  %s1509_s2 = inlined_call_operand.vmem [shape: bf16[392,128], index: 2, kind: output, shape index: {}]  }
   0x1   :  { %1098 = vmatprep.subr.bf16.mxu0 %v1245_v0  ;;  %v1216_v1 = vld [vmem:[%s1507_s1] sm:$0xff]   ;;  %1206 = vmatprep.subr.bf16.mxu1 %v1245_v0  ;;  %v1217_v2 = vld [vmem:[%s1507_s1 + $0x8] sm:$0xff]   ;;  %v1218_v3 = vld [vmem:[%s1507_s1 + $0x10] sm:$0xff]  }
   0x2   :  { %1106 = vmatprep.mubr.msk.bf16.mxu0 %vm1246_vm0, %v1245_v0  ;;  %1158 = vmatprep.mubr.msk.bf16.mxu1 %vm1246_vm0, %v1245_v0  ;;  %v1219_v4 = vld [vmem:[%s1507_s1 + $0x18] sm:$0xff]   ;;  %v1220_v5 = vld [vmem:[%s1508_s0] sm:$0xff]   ;;  %v1221_v6 = vld [vmem:[%s1508_s0 + $0x68] sm:$0xff]  }
   0x3   :  { %1099 = vmatpush3.bf16.msra.mxu0 %v1216_v1  ;;  %1210 = vmatpush3.bf16.msra.mxu1 %v1216_v1  ;;  %v1222_v7 = vld [vmem:[%s1508_s0 + $0x8] sm:$0xff]   ;;  %v1223_v8 = vld [vmem:[%s1508_s0 + $0x70] sm:$0xff]   ;;  %v1225_v10 = vld [vmem:[%s1508_s0 + $0x78] sm:$0xff]  }
   0x4   :  { %1100 = vmatprep.subr.bf16.mxu0 %v1245_v0  ;;  %1207 = vmatprep.subr.bf16.mxu1 %v1245_v0  ;;  %v1224_v9 = vld [vmem:[%s1508_s0 + $0x10] sm:$0xff]   ;;  %v1226_v11 = vld [vmem:[%s1508_s0 + $0x18] sm:$0xff]   ;;  %v1227_v12 = vld [vmem:[%s1508_s0 + $0x80] sm:$0xff]  }
   0x5   :  { %v1228_v13 = vld [vmem:[%s1508_s0 + $0x20] sm:$0xff]   ;;  %v1229_v14 = vld [vmem:[%s1508_s0 + $0x88] sm:$0xff]   ;;  %v1231_v16 = vld [vmem:[%s1508_s0 + $0x90] sm:$0xff]  }
   0x6   :  { %v1230_v15 = vld [vmem:[%s1508_s0 + $0x28] sm:$0xff]   ;;  %v1232_v17 = vld [vmem:[%s1508_s0 + $0x30] sm:$0xff]   ;;  %v1233_v18 = vld [vmem:[%s1508_s0 + $0x98] sm:$0xff]  }
   0x7   :  { %1101 = vmatpush3.bf16.msra.mxu0 %v1217_v2  ;;  %1211 = vmatpush3.bf16.msra.mxu1 %v1217_v2  ;;  %v1234_v19 = vld [vmem:[%s1508_s0 + $0x38] sm:$0xff]   ;;  %v1235_v20 = vld [vmem:[%s1508_s0 + $0xa0] sm:$0xff]   ;;  %v1237_v22 = vld [vmem:[%s1508_s0 + $0xa8] sm:$0xff]  }
   0x8   :  { %1102 = vmatprep.subr.bf16.mxu0 %v1245_v0  ;;  %1208 = vmatprep.subr.bf16.mxu1 %v1245_v0  ;;  %v1236_v21 = vld [vmem:[%s1508_s0 + $0x40] sm:$0xff]   ;;  %v1238_v23 = vld [vmem:[%s1508_s0 + $0x48] sm:$0xff]   ;;  %v1239_v24 = vld [vmem:[%s1508_s0 + $0xb0] sm:$0xff]  }
   0x9   :  { %v1240_v25 = vld [vmem:[%s1508_s0 + $0x50] sm:$0xff]   ;;  %v1241_v26 = vld [vmem:[%s1508_s0 + $0xb8] sm:$0xff]   ;;  %v1243_v28 = vld [vmem:[%s1508_s0 + $0xc0] ss:$0 sps:$4 sm:$0xff]  }
   0xa   :  { %v1242_v27 = vld [vmem:[%s1508_s0 + $0x58] sm:$0xff]   ;;  %v1244_v29 = vld [vmem:[%s1508_s0 + $0x60] sm:$0xff]  }
   0xb   :  { %1103 = vmatpush3.bf16.msra.mxu0 %v1218_v3  ;;  %1212 = vmatpush3.bf16.msra.mxu1 %v1218_v3 }
   0xc   :  { %1104 = vmatprep.subr.bf16.mxu0 %v1245_v0  ;;  %1209 = vmatprep.subr.bf16.mxu1 %v1245_v0 }
   0xf   :  { %1105 = vmatpush3.bf16.msra.mxu0 %v1219_v4  ;;  %1213 = vmatpush3.bf16.msra.mxu1 %v1219_v4 }
  0x12   :  { %1107 = vmatmul.mubr.msk.bf16.vlgmr.msra.gmra.mrb[0].mxu0 %vm216_vm1, %v1220_v5  ;;  %1159 = vmatmul.mubr.msk.bf16.vlgmr.msra.gmra.mrb[0].mxu1 %vm216_vm1, %v1221_v6 }
  0x13   :  { %1110 = vmatprep.mubr.msk.bf16.mxu0 %vm1246_vm0, %v1245_v0  ;;  %1162 = vmatprep.mubr.msk.bf16.mxu1 %vm1246_vm0, %v1245_v0 }
  0x1a   :  { %1111 = vmatmul.mubr.msk.bf16.gmra.mrb[4].mxu0 %vm216_vm1, %v1222_v7  ;;  %1163 = vmatmul.mubr.msk.bf16.gmra.mrb[4].mxu1 %vm216_vm1, %v1223_v8 }
  0x1b   :  { %1114 = vmatprep.mubr.msk.bf16.mxu0 %vm1246_vm0, %v1245_v0  ;;  %1166 = vmatprep.mubr.msk.bf16.mxu1 %vm1246_vm0, %v1245_v0 }
  0x22   :  { %1115 = vmatmul.mubr.msk.bf16.gmra.mrb[8].mxu0 %vm216_vm1, %v1224_v9  ;;  %1167 = vmatmul.mubr.msk.bf16.gmra.mrb[8].mxu1 %vm216_vm1, %v1225_v10 }
  0x23   :  { %1118 = vmatprep.mubr.msk.bf16.mxu0 %vm1246_vm0, %v1245_v0  ;;  %1170 = vmatprep.mubr.msk.bf16.mxu1 %vm1246_vm0, %v1245_v0 }
  0x2a   :  { %1119 = vmatmul.mubr.msk.bf16.gmra.mrb[12].mxu0 %vm216_vm1, %v1226_v11  ;;  %1171 = vmatmul.mubr.msk.bf16.gmra.mrb[12].mxu1 %vm216_vm1, %v1227_v12 }
  0x2b   :  { %1122 = vmatprep.mubr.msk.bf16.mxu0 %vm1246_vm0, %v1245_v0  ;;  %1174 = vmatprep.mubr.msk.bf16.mxu1 %vm1246_vm0, %v1245_v0 }
  0x32   :  { %1123 = vmatmul.mubr.msk.bf16.gmra.mrb[16].mxu0 %vm216_vm1, %v1228_v13  ;;  %1175 = vmatmul.mubr.msk.bf16.gmra.mrb[16].mxu1 %vm216_vm1, %v1229_v14 }
  0x33   :  { %1126 = vmatprep.mubr.msk.bf16.mxu0 %vm1246_vm0, %v1245_v0  ;;  %1178 = vmatprep.mubr.msk.bf16.mxu1 %vm1246_vm0, %v1245_v0 }
  0x3a   :  { %1127 = vmatmul.mubr.msk.bf16.gmra.mrb[20].mxu0 %vm216_vm1, %v1230_v15  ;;  %1179 = vmatmul.mubr.msk.bf16.gmra.mrb[20].mxu1 %vm216_vm1, %v1231_v16 }
  0x3b   :  { %1130 = vmatprep.mubr.msk.bf16.mxu0 %vm1246_vm0, %v1245_v0  ;;  %1182 = vmatprep.mubr.msk.bf16.mxu1 %vm1246_vm0, %v1245_v0 }
  0x42   :  { %1131 = vmatmul.mubr.msk.bf16.gmra.mrb[24].mxu0 %vm216_vm1, %v1232_v17  ;;  %1183 = vmatmul.mubr.msk.bf16.gmra.mrb[24].mxu1 %vm216_vm1, %v1233_v18 }
  0x43   :  { %1134 = vmatprep.mubr.msk.bf16.mxu0 %vm1246_vm0, %v1245_v0  ;;  %1186 = vmatprep.mubr.msk.bf16.mxu1 %vm1246_vm0, %v1245_v0 }
  0x4a   :  { %1135 = vmatmul.mubr.msk.bf16.gmra.mrb[28].mxu0 %vm216_vm1, %v1234_v19  ;;  %1187 = vmatmul.mubr.msk.bf16.gmra.mrb[28].mxu1 %vm216_vm1, %v1235_v20 }
  0x4b   :  { %1138 = vmatprep.mubr.msk.bf16.mxu0 %vm1246_vm0, %v1245_v0  ;;  %1190 = vmatprep.mubr.msk.bf16.mxu1 %vm1246_vm0, %v1245_v0 }
  0x52   :  { %1139 = vmatmul.mubr.msk.bf16.gmra.mrb[32].mxu0 %vm216_vm1, %v1236_v21  ;;  %1191 = vmatmul.mubr.msk.bf16.gmra.mrb[32].mxu1 %vm216_vm1, %v1237_v22 }
  0x53   :  { %1142 = vmatprep.mubr.msk.bf16.mxu0 %vm1246_vm0, %v1245_v0  ;;  %1194 = vmatprep.mubr.msk.bf16.mxu1 %vm1246_vm0, %v1245_v0 }
  0x5a   :  { %1143 = vmatmul.mubr.msk.bf16.gmra.mrb[36].mxu0 %vm216_vm1, %v1238_v23  ;;  %1195 = vmatmul.mubr.msk.bf16.gmra.mrb[36].mxu1 %vm216_vm1, %v1239_v24 }
  0x5b   :  { %1146 = vmatprep.mubr.msk.bf16.mxu0 %vm1246_vm0, %v1245_v0  ;;  %1198 = vmatprep.mubr.msk.bf16.mxu1 %vm1246_vm0, %v1245_v0 }
  0x62   :  { %1147 = vmatmul.mubr.msk.bf16.gmra.mrb[40].mxu0 %vm216_vm1, %v1240_v25  ;;  %1199 = vmatmul.mubr.msk.bf16.gmra.mrb[40].mxu1 %vm216_vm1, %v1241_v26 }
  0x63   :  { %1150 = vmatprep.mubr.msk.bf16.mxu0 %vm1246_vm0, %v1245_v0  ;;  %1202 = vmatprep.mubr.msk.bf16.mxu1 %vm1246_vm0, %v1245_v0 }
  0x6a   :  { %1151 = vmatmul.mubr.msk.bf16.gmra.mrb[44].mxu0 %vm216_vm1, %v1242_v27  ;;  %1203 = vmatmul.mubr.msk.bf16.gmra.mrb[44].mxu1 %vm216_vm1, %v1243_v28 }
  0x6b   :  { %1154 = vmatprep.mubr.msk.bf16.mxu0 %vm1246_vm0, %v1245_v0 }
  0x72   :  { %1155 = vmatmul.mubr.msk.bf16.gmra.mrb[48].mxu0 %vm216_vm1, %v1244_v29 }
  0xe5   :  { %v326_v30 = vpop.f32.mrb[0].mxu0  ;;  %v430_v31 = vpop.f32.mrb[0].mxu1 }
  0xe6   :  { %v1108_v32 = vpop.f32.mrb[1].mxu0  ;;  %v1160_v33 = vpop.f32.mrb[1].mxu1 }
  0xe7   :  { %v329_v34 = vpop.f32.mrb[2].mxu0  ;;  %v433_v35 = vpop.f32.mrb[2].mxu1 }
  0xe8   :  { %v929_v36 = vpack.c.bf16 %v329_v34, %v326_v30  ;;  %v1109_v37 = vpop.f32.mrb[3].mxu0  ;;  %v994_v38 = vpack.c.bf16 %v433_v35, %v430_v31  ;;  %v1161_v39 = vpop.f32.mrb[3].mxu1 }
  0xea   :  { %930 = vst [vmem:[%s1509_s2] sm:$0xff] %v929_v36   ;;  %1058 = vst [vmem:[%s1509_s2 + $0x68] sm:$0xff] %v994_v38  }
  0xed   :  { %v334_v40 = vpop.f32.mrb[4].mxu0  ;;  %v438_v41 = vpop.f32.mrb[4].mxu1 }
  0xee   :  { %v1112_v42 = vpop.f32.mrb[5].mxu0  ;;  %v1164_v43 = vpop.f32.mrb[5].mxu1 }
  0xef   :  { %v337_v44 = vpop.f32.mrb[6].mxu0  ;;  %v441_v45 = vpop.f32.mrb[6].mxu1 }
  0xf0   :  { %v934_v46 = vpack.c.bf16 %v337_v44, %v334_v40  ;;  %v1113_v47 = vpop.f32.mrb[7].mxu0  ;;  %v999_v48 = vpack.c.bf16 %v441_v45, %v438_v41  ;;  %v1165_v49 = vpop.f32.mrb[7].mxu1 }
  0xf2   :  { %1046 = vst [vmem:[%s1509_s2 + $0x8] sm:$0xff] %v934_v46   ;;  %1059 = vst [vmem:[%s1509_s2 + $0x70] sm:$0xff] %v999_v48  }
  0xf5   :  { %v342_v50 = vpop.f32.mrb[8].mxu0  ;;  %v446_v51 = vpop.f32.mrb[8].mxu1 }
  0xf6   :  { %v1116_v52 = vpop.f32.mrb[9].mxu0  ;;  %v1168_v53 = vpop.f32.mrb[9].mxu1 }
  0xf7   :  { %v345_v54 = vpop.f32.mrb[10].mxu0  ;;  %v449_v55 = vpop.f32.mrb[10].mxu1 }
  0xf8   :  { %v939_v56 = vpack.c.bf16 %v345_v54, %v342_v50  ;;  %v1117_v57 = vpop.f32.mrb[11].mxu0  ;;  %v1004_v58 = vpack.c.bf16 %v449_v55, %v446_v51  ;;  %v1169_v59 = vpop.f32.mrb[11].mxu1 }
  0xfa   :  { %1047 = vst [vmem:[%s1509_s2 + $0x10] sm:$0xff] %v939_v56   ;;  %1060 = vst [vmem:[%s1509_s2 + $0x78] sm:$0xff] %v1004_v58  }
  0xfd   :  { %v350_v60 = vpop.f32.mrb[12].mxu0  ;;  %v454_v61 = vpop.f32.mrb[12].mxu1 }
  0xfe   :  { %v1120_v62 = vpop.f32.mrb[13].mxu0  ;;  %v1172_v63 = vpop.f32.mrb[13].mxu1 }
  0xff   :  { %v353_v0 = vpop.f32.mrb[14].mxu0  ;;  %v457_v1 = vpop.f32.mrb[14].mxu1 }
 0x100   :  { %v944_v2 = vpack.c.bf16 %v353_v0, %v350_v60  ;;  %v1121_v3 = vpop.f32.mrb[15].mxu0  ;;  %v1009_v4 = vpack.c.bf16 %v457_v1, %v454_v61  ;;  %v1173_v5 = vpop.f32.mrb[15].mxu1 }
 0x102   :  { %1048 = vst [vmem:[%s1509_s2 + $0x18] sm:$0xff] %v944_v2   ;;  %1061 = vst [vmem:[%s1509_s2 + $0x80] sm:$0xff] %v1009_v4  }
 0x105   :  { %v358_v6 = vpop.f32.mrb[16].mxu0  ;;  %v462_v7 = vpop.f32.mrb[16].mxu1 }
 0x106   :  { %v1124_v8 = vpop.f32.mrb[17].mxu0  ;;  %v1176_v9 = vpop.f32.mrb[17].mxu1 }
 0x107   :  { %v361_v10 = vpop.f32.mrb[18].mxu0  ;;  %v465_v11 = vpop.f32.mrb[18].mxu1 }
 0x108   :  { %v949_v12 = vpack.c.bf16 %v361_v10, %v358_v6  ;;  %v1125_v13 = vpop.f32.mrb[19].mxu0  ;;  %v1014_v14 = vpack.c.bf16 %v465_v11, %v462_v7  ;;  %v1177_v15 = vpop.f32.mrb[19].mxu1 }
 0x10a   :  { %1049 = vst [vmem:[%s1509_s2 + $0x20] sm:$0xff] %v949_v12   ;;  %1062 = vst [vmem:[%s1509_s2 + $0x88] sm:$0xff] %v1014_v14  }
 0x10d   :  { %v366_v16 = vpop.f32.mrb[20].mxu0  ;;  %v470_v17 = vpop.f32.mrb[20].mxu1 }
 0x10e   :  { %v1128_v18 = vpop.f32.mrb[21].mxu0  ;;  %v1180_v19 = vpop.f32.mrb[21].mxu1 }
 0x10f   :  { %v369_v20 = vpop.f32.mrb[22].mxu0  ;;  %v473_v21 = vpop.f32.mrb[22].mxu1 }
 0x110   :  { %v954_v22 = vpack.c.bf16 %v369_v20, %v366_v16  ;;  %v1129_v23 = vpop.f32.mrb[23].mxu0  ;;  %v1019_v24 = vpack.c.bf16 %v473_v21, %v470_v17  ;;  %v1181_v25 = vpop.f32.mrb[23].mxu1 }
 0x112   :  { %1050 = vst [vmem:[%s1509_s2 + $0x28] sm:$0xff] %v954_v22   ;;  %1063 = vst [vmem:[%s1509_s2 + $0x90] sm:$0xff] %v1019_v24  }
 0x115   :  { %v374_v26 = vpop.f32.mrb[24].mxu0  ;;  %v478_v27 = vpop.f32.mrb[24].mxu1 }
 0x116   :  { %v1132_v28 = vpop.f32.mrb[25].mxu0  ;;  %v1184_v29 = vpop.f32.mrb[25].mxu1 }
 0x117   :  { %v377_v30 = vpop.f32.mrb[26].mxu0  ;;  %v481_v31 = vpop.f32.mrb[26].mxu1 }
 0x118   :  { %v959_v32 = vpack.c.bf16 %v377_v30, %v374_v26  ;;  %v1133_v33 = vpop.f32.mrb[27].mxu0  ;;  %v1024_v34 = vpack.c.bf16 %v481_v31, %v478_v27  ;;  %v1185_v35 = vpop.f32.mrb[27].mxu1 }
 0x11a   :  { %1051 = vst [vmem:[%s1509_s2 + $0x30] sm:$0xff] %v959_v32   ;;  %1064 = vst [vmem:[%s1509_s2 + $0x98] sm:$0xff] %v1024_v34  }
 0x11d   :  { %v382_v36 = vpop.f32.mrb[28].mxu0  ;;  %v486_v37 = vpop.f32.mrb[28].mxu1 }
 0x11e   :  { %v1136_v38 = vpop.f32.mrb[29].mxu0  ;;  %v1188_v39 = vpop.f32.mrb[29].mxu1 }
 0x11f   :  { %v385_v40 = vpop.f32.mrb[30].mxu0  ;;  %v489_v41 = vpop.f32.mrb[30].mxu1 }
 0x120   :  { %v964_v42 = vpack.c.bf16 %v385_v40, %v382_v36  ;;  %v1137_v43 = vpop.f32.mrb[31].mxu0  ;;  %v1029_v44 = vpack.c.bf16 %v489_v41, %v486_v37  ;;  %v1189_v45 = vpop.f32.mrb[31].mxu1 }
 0x122   :  { %1052 = vst [vmem:[%s1509_s2 + $0x38] sm:$0xff] %v964_v42   ;;  %1065 = vst [vmem:[%s1509_s2 + $0xa0] sm:$0xff] %v1029_v44  }
 0x125   :  { %v390_v46 = vpop.f32.mrb[32].mxu0  ;;  %v494_v47 = vpop.f32.mrb[32].mxu1 }
 0x126   :  { %v1140_v48 = vpop.f32.mrb[33].mxu0  ;;  %v1192_v49 = vpop.f32.mrb[33].mxu1 }
 0x127   :  { %v393_v50 = vpop.f32.mrb[34].mxu0  ;;  %v497_v51 = vpop.f32.mrb[34].mxu1 }
 0x128   :  { %v969_v52 = vpack.c.bf16 %v393_v50, %v390_v46  ;;  %v1141_v53 = vpop.f32.mrb[35].mxu0  ;;  %v1034_v54 = vpack.c.bf16 %v497_v51, %v494_v47  ;;  %v1193_v55 = vpop.f32.mrb[35].mxu1 }
 0x12a   :  { %1053 = vst [vmem:[%s1509_s2 + $0x40] sm:$0xff] %v969_v52   ;;  %1066 = vst [vmem:[%s1509_s2 + $0xa8] sm:$0xff] %v1034_v54  }
 0x12d   :  { %v398_v56 = vpop.f32.mrb[36].mxu0  ;;  %v502_v57 = vpop.f32.mrb[36].mxu1 }
 0x12e   :  { %v1144_v58 = vpop.f32.mrb[37].mxu0  ;;  %v1196_v59 = vpop.f32.mrb[37].mxu1 }
 0x12f   :  { %v401_v60 = vpop.f32.mrb[38].mxu0  ;;  %v505_v61 = vpop.f32.mrb[38].mxu1 }
 0x130   :  { %v974_v62 = vpack.c.bf16 %v401_v60, %v398_v56  ;;  %v1145_v63 = vpop.f32.mrb[39].mxu0  ;;  %v1039_v0 = vpack.c.bf16 %v505_v61, %v502_v57  ;;  %v1197_v1 = vpop.f32.mrb[39].mxu1 }
 0x132   :  { %1054 = vst [vmem:[%s1509_s2 + $0x48] sm:$0xff] %v974_v62   ;;  %1067 = vst [vmem:[%s1509_s2 + $0xb0] sm:$0xff] %v1039_v0  }
 0x135   :  { %v406_v2 = vpop.f32.mrb[40].mxu0  ;;  %v510_v3 = vpop.f32.mrb[40].mxu1 }
 0x136   :  { %v1148_v4 = vpop.f32.mrb[41].mxu0  ;;  %v1200_v5 = vpop.f32.mrb[41].mxu1 }
 0x137   :  { %v409_v6 = vpop.f32.mrb[42].mxu0  ;;  %v513_v7 = vpop.f32.mrb[42].mxu1 }
 0x138   :  { %v979_v8 = vpack.c.bf16 %v409_v6, %v406_v2  ;;  %v1149_v9 = vpop.f32.mrb[43].mxu0  ;;  %v1044_v10 = vpack.c.bf16 %v513_v7, %v510_v3  ;;  %v1201_v11 = vpop.f32.mrb[43].mxu1 }
 0x13a   :  { %1055 = vst [vmem:[%s1509_s2 + $0x50] sm:$0xff] %v979_v8   ;;  %1068 = vst [vmem:[%s1509_s2 + $0xb8] sm:$0xff] %v1044_v10  }
 0x13d   :  { %v414_v12 = vpop.f32.mrb[44].mxu0  ;;  %v518_v13 = vpop.f32.mrb[44].mxu1 }
 0x13e   :  { %v1152_v14 = vpop.f32.mrb[45].mxu0  ;;  %v925_v15 = vpack.c.bf16 %v518_v13, %v518_v13  ;;  %v1204_v16 = vpop.f32.mrb[45].mxu1 }
 0x13f   :  { %v417_v17 = vpop.f32.mrb[46].mxu0  ;;  %v521_v18 = vpop.f32.mrb[46].mxu1 }
 0x140   :  { %v984_v19 = vpack.c.bf16 %v417_v17, %v414_v12  ;;  %v1153_v20 = vpop.f32.mrb[47].mxu0  ;;  %769 = vst [vmem:[%s1509_s2 + $0xc0] sm:$0xf] %v925_v15  ;;  %v1205_v21 = vpop.f32.mrb[47].mxu1 }
 0x142   :  { %1056 = vst [vmem:[%s1509_s2 + $0x58] sm:$0xff] %v984_v19  }
 0x145   :  { %v422_v22 = vpop.f32.mrb[48].mxu0 }
 0x146   :  { %v1156_v23 = vpop.f32.mrb[49].mxu0 }
 0x147   :  { %v425_v24 = vpop.f32.mrb[50].mxu0 }
 0x148   :  { %v989_v25 = vpack.c.bf16 %v425_v24, %v422_v22  ;;  %v1157_v26 = vpop.f32.mrb[51].mxu0 }
 0x14a   :  { %1057 = vst [vmem:[%s1509_s2 + $0x60] sm:$0xff] %v989_v25  }

// kernel: generator_forward.11
= control target key start
LH: loop header
LB: loop body
LE: loop exit
PB: predicated region body
PF: predicated region fallthrough
CT: control target
= control target key end

     0   :  { %v15_v0 = vlaneseq  ;;  %v98_v1 = vmov 1983009808   ;;  %vm83_vm0 = vcmask 1041408   ;;  %vm84_vm1 = vcmask 1043458   ;;  %s129_s1 = inlined_call_operand.vmem [shape: f32[1,784], index: 1, kind: input, shape index: {}]   ;;  %s130_s0 = inlined_call_operand.vmem [shape: f32[2,784], index: 0, kind: input, shape index: {}]   ;;  %s131_s2 = inlined_call_operand.vmem [shape: f32[2,784], index: 2, kind: output, shape index: {}]  }
   0x1   :  { %v46_v2 = vunpack.c.l.s4 %v98_v1  ;;  %v13_v4 = vld [vmem:[%s129_s1] sm:$0x7f]  ;;  %v12_v29 = vld [vmem:[%s130_s0 + $0x8] sm:$0x3f]  ;;  %vm85_vm2 = vmor %vm84_vm1, %vm83_vm0  ;;  %vm86_vm3 = vcmask 128004  }
   0x2   :  { %v16_v3 = vshrl.u32 %v15_v0, 7  ;;  %v11_v27 = vld [vmem:[%s130_s0] sm:$0xff]  ;;  %vm87_vm4 = vmor %vm86_vm3, %vm85_vm2 }
   0x3   :  { %v47_v5 = vunpack.c.0.s8 %v46_v2 }
   0x4   :  { %v17_v6 = vsub.s32 0, %v16_v3  ;;  %v21_v7 = vsub.s32 1, %v16_v3  ;;  %v25_v8 = vsub.s32 2, %v16_v3  ;;  %v29_v9 = vsub.s32 3, %v16_v3 }
   0x5   :  { %v33_v10 = vsub.s32 4, %v16_v3  ;;  %v37_v11 = vsub.s32 5, %v16_v3  ;;  %v41_v12 = vsub.s32 6, %v16_v3  ;;  %v50_v13 = vsub.s32 %v47_v5, %v16_v3 }
   0x6   :  { %v18_v14 = vrot.slane %v13_v4, %v17_v6  ;;  %v22_v15 = vrot.slane %v13_v4, %v21_v7  ;;  %v26_v16 = vrot.slane %v13_v4, %v25_v8  ;;  %v30_v17 = vrot.slane %v13_v4, %v29_v9 }
   0x7   :  { %v34_v18 = vrot.slane %v13_v4, %v33_v10  ;;  %v38_v19 = vrot.slane %v13_v4, %v37_v11  ;;  %v42_v20 = vrot.slane %v13_v4, %v41_v12 }
   0x8   :  { %v43_v21 = vcombine.low %v18_v14, %v22_v15  ;;  %v44_v22 = vcombine.low %v26_v16, %v30_v17 }
   0x9   :  { %v60_v23 = vcombine.low %v34_v18, %v38_v19  ;;  %v74_v24 = vrot.slane %v42_v20, %v50_v13 }
   0xa   :  { %v51_v25 = vrot.slane %v43_v21, %v50_v13  ;;  %v58_v26 = vrot.slane %v44_v22, %v50_v13 }
   0xb   :  { %v67_v28 = vrot.slane %v60_v23, %v50_v13 }
   0xc   :  { %v59_v30 = vcombine.low %v51_v25, %v58_v26 }
   0xd   :  { %v75_v31 = vcombine.low %v67_v28, %v74_v24 }
   0xe   :  { %v78_v32 = vadd.f32 %v59_v30, %v11_v27 }
   0xf   :  { %v79_v33 = vadd.f32 %v75_v31, %v12_v29 }
  0x10   :  { %94 = vtanh.f32 %v78_v32 }
  0x11   :  { %96 = vtanh.f32 %v79_v33 }
  0x1a   :  { %v95_v34 = vpop.eup %94 }
  0x1b   :  { %v97_v35 = vpop.eup %96  ;;  %82 = vst [vmem:[%s131_s2] sm:$0xff] %v95_v34 }
  0x1c   :  { %88 = vst.msk [vmem:[%s131_s2 + $0x8] sm:$0x3f] %vm87_vm4, %v97_v35 }

</bundles_post_ra>
